<compile_context>
chip_gen: v6e
topology: v6e:2x2x1
jax: 0.10.0
libtpu: 0.0.40
codegen_flags: <defaults>
</compile_context>

<pallas_src>
import numpy as np
import jax
import jax.numpy as jnp
from jax.experimental import pallas as pl
from jax.experimental.pallas import tpu as pltpu

_LANE = 128
_VMEM_BUDGET = 32 * 1024 * 1024      # per-grid-step working-set target (bytes)
_VMEM_LIMIT = 48 * 1024 * 1024       # scoped VMEM limit handed to Mosaic (<= v7x 64 MiB physical)


def _round_up(x, m):
    return (x + m - 1) // m * m


# ----------------------------------------------------------------------------- glue helpers
def _phase_decompose(x, pad, stride):
    """(N,H,W,C) -> (s,s,N,Hs,Ws,C) where out[pi,pj,n,a,b,:] = x_padded[n, a*s+pi, b*s+pj, :]."""
    n, h, w, c = x.shape
    hp, wp = h + 2 * pad, w + 2 * pad
    hs, ws = -(-hp // stride), -(-wp // stride)
    xp = jnp.pad(x, ((0, 0),
                     (pad, hs * stride - hp + pad),
                     (pad, ws * stride - wp + pad),
                     (0, 0)))
    xp = xp.reshape(n, hs, stride, ws, stride, c)
    return jnp.transpose(xp, (2, 4, 0, 1, 3, 5))


# ----------------------------------------------------------------------------- fused kernel
def _fused_block_kernel(stride, hout, wout, bt, cin, planes, cout_p, has_sc_conv):
    """conv1(3x3,s)+bn1+relu -> conv2(3x3,1)+bn2 -> +shortcut -> relu, all for one (estimator, batch-tile)."""
    s = stride
    m = bt * hout * wout
    phase_in = s != 1

    def kernel(*refs):
        x_ref, w1_ref, a1_ref, b1_ref, w2_ref, a2_ref, b2_ref = refs[:7]
        k = 7
        if has_sc_conv:
            ws_ref, as_ref, bs_ref = refs[7:10]
            k = 10
        o_ref = refs[k]
        h1pad_ref = refs[k + 1]
        xpad_ref = None if phase_in else refs[k + 2]

        # ------------------------- input taps (contiguous slices -> (m, cin) im2col pieces)
        if phase_in:
            def x_tap(i, j):
                pi, pj = i % s, j % s
                oi, oj = i // s, j // s
                p = x_ref[pi, pj, :, oi:oi + hout, oj:oj + wout, :]      # (bt, hout, wout, cin)
                return p.reshape(m, cin)

            x_center = lambda: x_tap(1, 1)         # 1x1 / stride-s / pad-0 conv tap == identity residual tap
        else:
            # pad x in VMEM (no XLA-side pad pass over x for the stride-1 path)
            xpad_ref[...] = jnp.zeros_like(xpad_ref)
            xpad_ref[:, 1:hout + 1, 1:wout + 1, :] = x_ref[...]

            def x_tap(i, j):
                return xpad_ref[:, i:i + hout, j:j + wout, :].reshape(m, cin)

            x_center = lambda: x_ref[...].reshape(m, cin)

        # ------------------------- stage 1: conv1 as one K = 9*cin matmul, + BN1 + ReLU
        lhs1 = jnp.concatenate([x_tap(i, j) for i in range(3) for j in range(3)], axis=-1)
        h1 = jnp.dot(lhs1, w1_ref[0], preferred_element_type=jnp.float32)
        h1 = jnp.maximum(h1 * a1_ref[...] + b1_ref[...], 0.0)           # (m, planes)

        # stash into a zero-padded VMEM scratch so conv2's taps are plain slices (out1 never hits HBM)
        h1pad_ref[...] = jnp.zeros_like(h1pad_ref)
        h1pad_ref[:, 1:hout + 1, 1:wout + 1, :] = h1.reshape(bt, hout, wout, planes)

        # ------------------------- shortcut / residual, already in padded-cout lanes
        if has_sc_conv:
            res = jnp.dot(x_center(), ws_ref[0], preferred_element_type=jnp.float32)
            res = res * as_ref[...] + bs_ref[...]                        # (m, cout_p)
        else:
            res = x_center()                                             # identity: stride==1, cin==planes
            if cout_p > planes:
                res = jnp.concatenate(
                    [res, jnp.zeros((m, cout_p - planes), jnp.float32)], axis=-1)

        # ------------------------- stage 2: conv2 as one K = 9*planes matmul, + BN2 + add + ReLU
        lhs2 = jnp.concatenate(
            [h1pad_ref[:, i:i + hout, j:j + wout, :].reshape(m, planes)
             for i in range(3) for j in range(3)], axis=-1)
        out = jnp.dot(lhs2, w2_ref[0], preferred_element_type=jnp.float32)
        out = jnp.maximum(out * a2_ref[...] + b2_ref[...] + res, 0.0)
        o_ref[...] = out.reshape(1, bt, hout, wout, cout_p).astype(o_ref.dtype)

    return kernel


# ----------------------------------------------------------------------------- wrapper
def masked_basic_block_nhwc(x, params, *, stride):
    """x: (N, H, W, Cin) NHWC, samples grouped estimator-major (first N/E samples use mask 0, ...)."""
    n, h, w, cin = x.shape
    masks_in = params["mask_in"]
    masks_pl = params["mask_planes"]
    num_est = masks_in.shape[0]
    assert n % num_est == 0, "batch must be a multiple of num_estimators"
    bsz = n // num_est

    planes = params["w1"].shape[-1]
    cout_p = _round_up(planes, _LANE)               # lane-dense output stores
    pad = 1
    hout = (h + 2 * pad - 3) // stride + 1
    wout = (w + 2 * pad - 3) // stride + 1

    has_sc_conv = params["has_shortcut"]
    if not has_sc_conv:
        assert stride == 1 and cin == planes, "identity shortcut requires stride==1 and cin==planes"

    f32 = jnp.float32
    # ---- fold per-estimator mask into weights, conv bias into BN shift, pad cout lanes to 128-multiple
    w1_flat = params["w1"].reshape(9 * cin, planes).astype(f32)                       # (9*cin, planes)
    w1m = jnp.tile(masks_in, (1, 9))[:, :, None] * w1_flat[None]                      # (E, 9*cin, planes)
    a1 = params["bn1_scale"].reshape(1, planes).astype(f32)
    b1 = (params["b1"] * params["bn1_scale"] + params["bn1_shift"]).reshape(1, planes).astype(f32)

    pad_c = lambda v: jnp.pad(v.astype(f32), ((0, 0), (0, cout_p - planes)))
    w2_flat = pad_c(params["w2"].reshape(9 * planes, planes))                         # (9*planes, cout_p)
    w2m = jnp.tile(masks_pl, (1, 9))[:, :, None] * w2_flat[None]                      # (E, 9*planes, cout_p)
    a2 = pad_c(params["bn2_scale"].reshape(1, planes))
    b2 = pad_c((params["b2"] * params["bn2_scale"] + params["bn2_shift"]).reshape(1, planes))

    weight_args = [w1m, a1, b1, w2m, a2, b2]
    if has_sc_conv:
        ws_flat = pad_c(params["ws"].reshape(cin, planes))                            # (cin, cout_p)
        wsm = masks_in[:, :, None] * ws_flat[None]                                    # (E, cin, cout_p)
        as_ = pad_c(params["bns_scale"].reshape(1, planes))
        bs_ = pad_c((params["bs"] * params["bns_scale"] + params["bns_shift"]).reshape(1, planes))
        weight_args += [wsm, as_, bs_]

    # ---- input layout: stride==1 pads in-kernel; stride>1 phase-decomposes once in glue
    if stride == 1:
        x_in = x.astype(f32)
        hs = wsd = None
    else:
        x_in = _phase_decompose(x.astype(f32), pad, stride)        # (s, s, N, Hs, Ws, Cin)
        hs, wsd = x_in.shape[3], x_in.shape[4]

    # ---- batch-tile (M-axis) choice against a VMEM budget (re-derived for v7x's 64 MiB)
    def vmem_estimate(bt):
        m = bt * hout * wout
        if stride == 1:
            x_blk = bt * h * w * cin * 4 * 2
            xpad_scr = bt * (hout + 2) * (wout + 2) * cin * 4
        else:
            x_blk = stride * stride * bt * hs * wsd * cin * 4 * 2
            xpad_scr = 0
        out_blk = m * cout_p * 4 * 2
        w_blk = (9 * cin * planes + 9 * planes * cout_p
                 + (cin * cout_p if has_sc_conv else 0) + 8 * cout_p) * 4 * 2
        h1pad_scr = bt * (hout + 2) * (wout + 2) * planes * 4
        temps = m * (9 * cin + 9 * planes + 3 * cout_p + planes) * 4   # im2col LHS / acc / residual values
        return x_blk + out_blk + w_blk + xpad_scr + h1pad_scr + temps

    bt = 1
    for d in range(bsz, 0, -1):
        if bsz % d == 0 and vmem_estimate(d) <= _VMEM_BUDGET:
            bt = d
            break
    nbt = bsz // bt

    # ---- specs: weight/BN blocks indexed only by the estimator axis -> resident across inner M tiles
    if stride == 1:
        x_spec = pl.BlockSpec((bt, h, w, cin), lambda e, b: (e * nbt + b, 0, 0, 0))
    else:
        x_spec = pl.BlockSpec((stride, stride, bt, hs, wsd, cin),
                              lambda e, b: (0, 0, e * nbt + b, 0, 0, 0))

    def est_spec(shape):
        return pl.BlockSpec(shape, lambda e, b: (e,) + (0,) * (len(shape) - 1))

    def bcast_spec(shape):
        return pl.BlockSpec(shape, lambda e, b: (0,) * len(shape))

    in_specs = [x_spec,
                est_spec((1, 9 * cin, planes)), bcast_spec((1, planes)), bcast_spec((1, planes)),
                est_spec((1, 9 * planes, cout_p)), bcast_spec((1, cout_p)), bcast_spec((1, cout_p))]
    if has_sc_conv:
        in_specs += [est_spec((1, cin, cout_p)), bcast_spec((1, cout_p)), bcast_spec((1, cout_p))]

    scratch = [pltpu.VMEM((bt, hout + 2, wout + 2, planes), f32)]      # padded out1 (stays in VMEM)
    if stride == 1:
        scratch.append(pltpu.VMEM((bt, hout + 2, wout + 2, cin), f32))  # padded x (in-kernel pad)

    out = pl.pallas_call(
        _fused_block_kernel(stride, hout, wout, bt, cin, planes, cout_p, has_sc_conv),
        grid=(num_est, nbt),
        in_specs=in_specs,
        out_specs=pl.BlockSpec((1, bt, hout, wout, cout_p), lambda e, b: (e, b, 0, 0, 0)),
        out_shape=jax.ShapeDtypeStruct((num_est, bsz, hout, wout, cout_p), f32),
        scratch_shapes=scratch,
        compiler_params=pltpu.CompilerParams(
            dimension_semantics=("parallel", "parallel"),
            vmem_limit_bytes=_VMEM_LIMIT),
    )(x_in, *weight_args)

    return out.reshape(n, hout, wout, cout_p)[..., :planes]


def basic_block_forward(params, x_nchw, *, stride):
    x = jnp.transpose(x_nchw, (0, 2, 3, 1))                        # NCHW -> NHWC
    out = masked_basic_block_nhwc(x, params, stride=stride)
    return jnp.transpose(out, (0, 3, 1, 2))                        # NHWC -> NCHW


# ----------------------------------------------------------------------------- params
def make_masks(num_estimators, channels, scale):
    # TODO(synk): deterministic stand-in for masksembles' randomized mask search;
    # each mask keeps ~channels/scale channels, rotated per estimator (same shape/semantics).
    keep = max(1, int(round(channels / scale)))
    masks = np.zeros((num_estimators, channels), np.float32)
    for e in range(num_estimators):
        idx = (np.arange(keep) + e * keep) % channels
        masks[e, idx] = 1.0
    return jnp.asarray(masks)


def init_basic_block(key, in_planes, planes, stride, num_estimators, scale, conv_bias):
    def conv_params(k, cin, cout, ks):
        kw_, kb_ = jax.random.split(k)
        w_oihw = jax.random.normal(kw_, (cout, cin, ks, ks), jnp.float32) / np.sqrt(cin * ks * ks)
        w_hwio = jnp.transpose(w_oihw, (2, 3, 1, 0))               # (KH, KW, Cin, Cout)
        b = (0.1 * jax.random.normal(kb_, (cout,), jnp.float32)
             if conv_bias else jnp.zeros((cout,), jnp.float32))
        return w_hwio, b

    def bn_params(k, c):
        k1, k2, k3, k4 = jax.random.split(k, 4)
        gamma = 1.0 + 0.1 * jax.random.normal(k1, (c,), jnp.float32)
        beta = 0.1 * jax.random.normal(k2, (c,), jnp.float32)
        mean = 0.1 * jax.random.normal(k3, (c,), jnp.float32)
        var = 1.0 + 0.1 * jax.random.uniform(k4, (c,), jnp.float32)
        eps = 1e-5
        s = gamma / jnp.sqrt(var + eps)
        return s, beta - mean * s

    keys = jax.random.split(key, 6)
    p = {}
    p["w1"], p["b1"] = conv_params(keys[0], in_planes, planes, 3)
    p["bn1_scale"], p["bn1_shift"] = bn_params(keys[1], planes)
    p["w2"], p["b2"] = conv_params(keys[2], planes, planes, 3)
    p["bn2_scale"], p["bn2_shift"] = bn_params(keys[3], planes)
    p["has_shortcut"] = (stride != 1 or in_planes != planes)
    if p["has_shortcut"]:
        p["ws"], p["bs"] = conv_params(keys[4], in_planes, planes, 1)
        p["bns_scale"], p["bns_shift"] = bn_params(keys[5], planes)
    p["mask_in"] = make_masks(num_estimators, in_planes, scale)
    p["mask_planes"] = make_masks(num_estimators, planes, scale)
    return p


# ----------------------------------------------------------------------------- reference
def ref_forward(params, x_nchw, *, stride):
    x = jnp.transpose(x_nchw, (0, 2, 3, 1))

    def masked_conv(xx, masks, w_hwio, b, s, pad):
        n, e = xx.shape[0], masks.shape[0]
        xm = xx.reshape(e, n // e, *xx.shape[1:]) * masks[:, None, None, None, :]
        xm = xm.reshape(xx.shape)
        out = jax.lax.conv_general_dilated(
            xm, w_hwio, (s, s), [(pad, pad), (pad, pad)],
            dimension_numbers=("NHWC", "HWIO", "NHWC"),
            precision=jax.lax.Precision.HIGHEST)
        return out + b

    bn = lambda z, sc, sh: z * sc + sh
    h1 = jax.nn.relu(bn(masked_conv(x, params["mask_in"], params["w1"], params["b1"], stride, 1),
                        params["bn1_scale"], params["bn1_shift"]))
    h2 = bn(masked_conv(h1, params["mask_planes"], params["w2"], params["b2"], 1, 1),
            params["bn2_scale"], params["bn2_shift"])
    if params["has_shortcut"]:
        sc = bn(masked_conv(x, params["mask_in"], params["ws"], params["bs"], stride, 0),
                params["bns_scale"], params["bns_shift"])
    else:
        sc = x
    return jnp.transpose(jax.nn.relu(h2 + sc), (0, 3, 1, 2))


# ----------------------------------------------------------------------------- main
if __name__ == "__main__":
    def run_case(key, n, in_planes, planes, h, w, stride, num_estimators, scale, conv_bias):
        kx, kp = jax.random.split(key)
        x = jax.random.normal(kx, (n, in_planes, h, w), jnp.float32)      # NCHW like PyTorch
        params = init_basic_block(kp, in_planes, planes, stride, num_estimators, scale, conv_bias)
        out = jax.block_until_ready(basic_block_forward(params, x, stride=stride))
        ref = jax.block_until_ready(ref_forward(params, x, stride=stride))
        hout = (h + 2 - 3) // stride + 1
        wout = (w + 2 - 3) // stride + 1
        assert out.shape == ref.shape == (n, planes, hout, wout), out.shape
        np.testing.assert_allclose(np.asarray(out), np.asarray(ref), rtol=1e-4, atol=1e-4)

    key0 = jax.random.PRNGKey(0)
    k1, k2, k3 = jax.random.split(key0, 3)

    # downsampling block: stride 2, 1x1 conv shortcut, phase-decomposed input path
    run_case(k1, n=4, in_planes=8, planes=16, h=16, w=16,
             stride=2, num_estimators=2, scale=2.0, conv_bias=False)
    # identity-shortcut block: stride 1, in==planes (in-kernel-pad path + conv bias)
    run_case(k2, n=4, in_planes=16, planes=16, h=8, w=8,
             stride=1, num_estimators=2, scale=2.0, conv_bias=True)
    # channel-expanding block at stride 1: conv shortcut on the in-kernel-pad path
    run_case(k3, n=4, in_planes=8, planes=16, h=8, w=8,
             stride=1, num_estimators=2, scale=2.0, conv_bias=True)

    print("KERNEL_OK")
</pallas_src>

<mosaic_0001>
module attributes {stable_mosaic.version = 11 : i64} {
  func.func @kernel(%arg0: i32, %arg1: i32, %arg2: memref<2x2x2x9x9x8xf32, #tpu.memory_space<vmem>>, %arg3: memref<1x72x16xf32, #tpu.memory_space<vmem>>, %arg4: memref<1x16xf32, #tpu.memory_space<vmem>>, %arg5: memref<1x16xf32, #tpu.memory_space<vmem>>, %arg6: memref<1x144x128xf32, #tpu.memory_space<vmem>>, %arg7: memref<1x128xf32, #tpu.memory_space<vmem>>, %arg8: memref<1x128xf32, #tpu.memory_space<vmem>>, %arg9: memref<1x8x128xf32, #tpu.memory_space<vmem>>, %arg10: memref<1x128xf32, #tpu.memory_space<vmem>>, %arg11: memref<1x128xf32, #tpu.memory_space<vmem>>, %arg12: memref<1x2x8x8x128xf32, #tpu.memory_space<vmem>>, %arg13: memref<2x10x10x16xf32, #tpu.memory_space<vmem>>) attributes {dimension_semantics = [#tpu.dimension_semantics<parallel>, #tpu.dimension_semantics<parallel>], iteration_bounds = array<i64: 2, 1>, scalar_prefetch = 0 : i64, scratch_operands = 1 : i64, tpu.core_type = #tpu.core_type<tc>, window_params = [{transform_indices = @transform_0, window_bounds = array<i64: 2, 2, 2, 9, 9, 8>}, {transform_indices = @transform_1, window_bounds = array<i64: 1, 72, 16>}, {pipeline_mode = #tpu.pipeline_mode<synchronous>, transform_indices = @transform_2, window_bounds = array<i64: 1, 16>}, {pipeline_mode = #tpu.pipeline_mode<synchronous>, transform_indices = @transform_3, window_bounds = array<i64: 1, 16>}, {transform_indices = @transform_4, window_bounds = array<i64: 1, 144, 128>}, {pipeline_mode = #tpu.pipeline_mode<synchronous>, transform_indices = @transform_5, window_bounds = array<i64: 1, 128>}, {pipeline_mode = #tpu.pipeline_mode<synchronous>, transform_indices = @transform_6, window_bounds = array<i64: 1, 128>}, {transform_indices = @transform_7, window_bounds = array<i64: 1, 8, 128>}, {pipeline_mode = #tpu.pipeline_mode<synchronous>, transform_indices = @transform_8, window_bounds = array<i64: 1, 128>}, {pipeline_mode = #tpu.pipeline_mode<synchronous>, transform_indices = @transform_9, window_bounds = array<i64: 1, 128>}, {transform_indices = @transform_10, window_bounds = array<i64: 1, 2, 8, 8, 128>}]} {
    %c0 = arith.constant 0 : index
    %c0_0 = arith.constant 0 : index
    %c0_1 = arith.constant 0 : index
    %c0_2 = arith.constant 0 : index
    %c0_3 = arith.constant 0 : index
    %c0_4 = arith.constant 0 : index
    %0 = vector.load %arg2[%c0, %c0_0, %c0_1, %c0_2, %c0_3, %c0_4] : memref<2x2x2x9x9x8xf32, #tpu.memory_space<vmem>>, vector<1x1x2x8x8x8xf32>
    %1 = vector.shape_cast %0 : vector<1x1x2x8x8x8xf32> to vector<2x8x8x8xf32>
    %2 = vector.shape_cast %1 : vector<2x8x8x8xf32> to vector<128x8xf32>
    %c0_5 = arith.constant 0 : index
    %c1 = arith.constant 1 : index
    %c0_6 = arith.constant 0 : index
    %c0_7 = arith.constant 0 : index
    %c0_8 = arith.constant 0 : index
    %c0_9 = arith.constant 0 : index
    %3 = vector.load %arg2[%c0_5, %c1, %c0_6, %c0_7, %c0_8, %c0_9] : memref<2x2x2x9x9x8xf32, #tpu.memory_space<vmem>>, vector<1x1x2x8x8x8xf32>
    %4 = vector.shape_cast %3 : vector<1x1x2x8x8x8xf32> to vector<2x8x8x8xf32>
    %5 = vector.shape_cast %4 : vector<2x8x8x8xf32> to vector<128x8xf32>
    %c0_10 = arith.constant 0 : index
    %c0_11 = arith.constant 0 : index
    %c0_12 = arith.constant 0 : index
    %c0_13 = arith.constant 0 : index
    %c1_14 = arith.constant 1 : index
    %c0_15 = arith.constant 0 : index
    %6 = vector.load %arg2[%c0_10, %c0_11, %c0_12, %c0_13, %c1_14, %c0_15] : memref<2x2x2x9x9x8xf32, #tpu.memory_space<vmem>>, vector<1x1x2x8x8x8xf32>
    %7 = vector.shape_cast %6 : vector<1x1x2x8x8x8xf32> to vector<2x8x8x8xf32>
    %8 = vector.shape_cast %7 : vector<2x8x8x8xf32> to vector<128x8xf32>
    %c1_16 = arith.constant 1 : index
    %c0_17 = arith.constant 0 : index
    %c0_18 = arith.constant 0 : index
    %c0_19 = arith.constant 0 : index
    %c0_20 = arith.constant 0 : index
    %c0_21 = arith.constant 0 : index
    %9 = vector.load %arg2[%c1_16, %c0_17, %c0_18, %c0_19, %c0_20, %c0_21] : memref<2x2x2x9x9x8xf32, #tpu.memory_space<vmem>>, vector<1x1x2x8x8x8xf32>
    %10 = vector.shape_cast %9 : vector<1x1x2x8x8x8xf32> to vector<2x8x8x8xf32>
    %11 = vector.shape_cast %10 : vector<2x8x8x8xf32> to vector<128x8xf32>
    %c1_22 = arith.constant 1 : index
    %c1_23 = arith.constant 1 : index
    %c0_24 = arith.constant 0 : index
    %c0_25 = arith.constant 0 : index
    %c0_26 = arith.constant 0 : index
    %c0_27 = arith.constant 0 : index
    %12 = vector.load %arg2[%c1_22, %c1_23, %c0_24, %c0_25, %c0_26, %c0_27] : memref<2x2x2x9x9x8xf32, #tpu.memory_space<vmem>>, vector<1x1x2x8x8x8xf32>
    %13 = vector.shape_cast %12 : vector<1x1x2x8x8x8xf32> to vector<2x8x8x8xf32>
    %14 = vector.shape_cast %13 : vector<2x8x8x8xf32> to vector<128x8xf32>
    %c1_28 = arith.constant 1 : index
    %c0_29 = arith.constant 0 : index
    %c0_30 = arith.constant 0 : index
    %c0_31 = arith.constant 0 : index
    %c1_32 = arith.constant 1 : index
    %c0_33 = arith.constant 0 : index
    %15 = vector.load %arg2[%c1_28, %c0_29, %c0_30, %c0_31, %c1_32, %c0_33] : memref<2x2x2x9x9x8xf32, #tpu.memory_space<vmem>>, vector<1x1x2x8x8x8xf32>
    %16 = vector.shape_cast %15 : vector<1x1x2x8x8x8xf32> to vector<2x8x8x8xf32>
    %17 = vector.shape_cast %16 : vector<2x8x8x8xf32> to vector<128x8xf32>
    %c0_34 = arith.constant 0 : index
    %c0_35 = arith.constant 0 : index
    %c0_36 = arith.constant 0 : index
    %c1_37 = arith.constant 1 : index
    %c0_38 = arith.constant 0 : index
    %c0_39 = arith.constant 0 : index
    %18 = vector.load %arg2[%c0_34, %c0_35, %c0_36, %c1_37, %c0_38, %c0_39] : memref<2x2x2x9x9x8xf32, #tpu.memory_space<vmem>>, vector<1x1x2x8x8x8xf32>
    %19 = vector.shape_cast %18 : vector<1x1x2x8x8x8xf32> to vector<2x8x8x8xf32>
    %20 = vector.shape_cast %19 : vector<2x8x8x8xf32> to vector<128x8xf32>
    %c0_40 = arith.constant 0 : index
    %c1_41 = arith.constant 1 : index
    %c0_42 = arith.constant 0 : index
    %c1_43 = arith.constant 1 : index
    %c0_44 = arith.constant 0 : index
    %c0_45 = arith.constant 0 : index
    %21 = vector.load %arg2[%c0_40, %c1_41, %c0_42, %c1_43, %c0_44, %c0_45] : memref<2x2x2x9x9x8xf32, #tpu.memory_space<vmem>>, vector<1x1x2x8x8x8xf32>
    %22 = vector.shape_cast %21 : vector<1x1x2x8x8x8xf32> to vector<2x8x8x8xf32>
    %23 = vector.shape_cast %22 : vector<2x8x8x8xf32> to vector<128x8xf32>
    %c0_46 = arith.constant 0 : index
    %c0_47 = arith.constant 0 : index
    %c0_48 = arith.constant 0 : index
    %c1_49 = arith.constant 1 : index
    %c1_50 = arith.constant 1 : index
    %c0_51 = arith.constant 0 : index
    %24 = vector.load %arg2[%c0_46, %c0_47, %c0_48, %c1_49, %c1_50, %c0_51] : memref<2x2x2x9x9x8xf32, #tpu.memory_space<vmem>>, vector<1x1x2x8x8x8xf32>
    %25 = vector.shape_cast %24 : vector<1x1x2x8x8x8xf32> to vector<2x8x8x8xf32>
    %26 = vector.shape_cast %25 : vector<2x8x8x8xf32> to vector<128x8xf32>
    %27 = tpu.concatenate %2, %5, %8, %11, %14, %17, %20, %23, %26 in 1 : vector<128x8xf32>, vector<128x8xf32>, vector<128x8xf32>, vector<128x8xf32>, vector<128x8xf32>, vector<128x8xf32>, vector<128x8xf32>, vector<128x8xf32>, vector<128x8xf32> -> vector<128x72xf32>
    %c0_52 = arith.constant 0 : index
    %c0_53 = arith.constant 0 : index
    %c0_54 = arith.constant 0 : index
    %28 = vector.load %arg3[%c0_52, %c0_53, %c0_54] : memref<1x72x16xf32, #tpu.memory_space<vmem>>, vector<1x72x16xf32>
    %29 = vector.shape_cast %28 : vector<1x72x16xf32> to vector<72x16xf32>
    %cst = arith.constant dense<0.000000e+00> : vector<128x16xf32>
    %30 = tpu.matmul %27, %29, %cst {dimension_numbers = #tpu.dot_dimension_numbers<[1], [0], [0], [1], [0, 0, 1, 1], [], []>} : vector<128x72xf32>, vector<72x16xf32>, vector<128x16xf32> -> vector<128x16xf32>
    %c0_55 = arith.constant 0 : index
    %c0_56 = arith.constant 0 : index
    %31 = vector.load %arg4[%c0_55, %c0_56] : memref<1x16xf32, #tpu.memory_space<vmem>>, vector<1x16xf32>
    %32 = vector.broadcast %31 : vector<1x16xf32> to vector<128x16xf32>
    %33 = arith.mulf %30, %32 : vector<128x16xf32>
    %c0_57 = arith.constant 0 : index
    %c0_58 = arith.constant 0 : index
    %34 = vector.load %arg5[%c0_57, %c0_58] : memref<1x16xf32, #tpu.memory_space<vmem>>, vector<1x16xf32>
    %35 = vector.broadcast %34 : vector<1x16xf32> to vector<128x16xf32>
    %36 = arith.addf %33, %35 : vector<128x16xf32>
    %cst_59 = arith.constant 0.000000e+00 : f32
    %37 = vector.broadcast %cst_59 : f32 to vector<128x16xf32>
    %38 = arith.maximumf %36, %37 : vector<128x16xf32>
    %cst_60 = arith.constant 0.000000e+00 : f32
    %39 = vector.broadcast %cst_60 : f32 to vector<2x10x10x16xf32>
    %c0_61 = arith.constant 0 : index
    %c0_62 = arith.constant 0 : index
    %c0_63 = arith.constant 0 : index
    %c0_64 = arith.constant 0 : index
    %40 = vector.load %arg13[%c0_61, %c0_62, %c0_63, %c0_64] : memref<2x10x10x16xf32, #tpu.memory_space<vmem>>, vector<2x10x10x16xf32>
    tpu.vector_store %arg13[%c0_61, %c0_62, %c0_63, %c0_64], %39 {strides = array<i32>} : memref<2x10x10x16xf32, #tpu.memory_space<vmem>>, vector<2x10x10x16xf32>,
    %41 = vector.shape_cast %38 : vector<128x16xf32> to vector<2x8x8x16xf32>
    %c0_65 = arith.constant 0 : index
    %c1_66 = arith.constant 1 : index
    %c1_67 = arith.constant 1 : index
    %c0_68 = arith.constant 0 : index
    %42 = vector.load %arg13[%c0_65, %c1_66, %c1_67, %c0_68] : memref<2x10x10x16xf32, #tpu.memory_space<vmem>>, vector<2x8x8x16xf32>
    tpu.vector_store %arg13[%c0_65, %c1_66, %c1_67, %c0_68], %41 {strides = array<i32>} : memref<2x10x10x16xf32, #tpu.memory_space<vmem>>, vector<2x8x8x16xf32>,
    %c1_69 = arith.constant 1 : index
    %c1_70 = arith.constant 1 : index
    %c0_71 = arith.constant 0 : index
    %c0_72 = arith.constant 0 : index
    %c0_73 = arith.constant 0 : index
    %c0_74 = arith.constant 0 : index
    %43 = vector.load %arg2[%c1_69, %c1_70, %c0_71, %c0_72, %c0_73, %c0_74] : memref<2x2x2x9x9x8xf32, #tpu.memory_space<vmem>>, vector<1x1x2x8x8x8xf32>
    %44 = vector.shape_cast %43 : vector<1x1x2x8x8x8xf32> to vector<2x8x8x8xf32>
    %45 = vector.shape_cast %44 : vector<2x8x8x8xf32> to vector<128x8xf32>
    %c0_75 = arith.constant 0 : index
    %c0_76 = arith.constant 0 : index
    %c0_77 = arith.constant 0 : index
    %46 = vector.load %arg9[%c0_75, %c0_76, %c0_77] : memref<1x8x128xf32, #tpu.memory_space<vmem>>, vector<1x8x128xf32>
    %47 = vector.shape_cast %46 : vector<1x8x128xf32> to vector<8x128xf32>
    %cst_78 = arith.constant dense<0.000000e+00> : vector<128x128xf32>
    %48 = tpu.matmul %45, %47, %cst_78 {dimension_numbers = #tpu.dot_dimension_numbers<[1], [0], [0], [1], [0, 0, 1, 1], [], []>} : vector<128x8xf32>, vector<8x128xf32>, vector<128x128xf32> -> vector<128x128xf32>
    %c0_79 = arith.constant 0 : index
    %c0_80 = arith.constant 0 : index
    %49 = vector.load %arg10[%c0_79, %c0_80] : memref<1x128xf32, #tpu.memory_space<vmem>>, vector<1x128xf32>
    %50 = vector.broadcast %49 : vector<1x128xf32> to vector<128x128xf32>
    %51 = arith.mulf %48, %50 : vector<128x128xf32>
    %c0_81 = arith.constant 0 : index
    %c0_82 = arith.constant 0 : index
    %52 = vector.load %arg11[%c0_81, %c0_82] : memref<1x128xf32, #tpu.memory_space<vmem>>, vector<1x128xf32>
    %53 = vector.broadcast %52 : vector<1x128xf32> to vector<128x128xf32>
    %54 = arith.addf %51, %53 : vector<128x128xf32>
    %c0_83 = arith.constant 0 : index
    %c0_84 = arith.constant 0 : index
    %c0_85 = arith.constant 0 : index
    %c0_86 = arith.constant 0 : index
    %55 = vector.load %arg13[%c0_83, %c0_84, %c0_85, %c0_86] : memref<2x10x10x16xf32, #tpu.memory_space<vmem>>, vector<2x8x8x16xf32>
    %56 = vector.shape_cast %55 : vector<2x8x8x16xf32> to vector<128x16xf32>
    %c0_87 = arith.constant 0 : index
    %c0_88 = arith.constant 0 : index
    %c1_89 = arith.constant 1 : index
    %c0_90 = arith.constant 0 : index
    %57 = vector.load %arg13[%c0_87, %c0_88, %c1_89, %c0_90] : memref<2x10x10x16xf32, #tpu.memory_space<vmem>>, vector<2x8x8x16xf32>
    %58 = vector.shape_cast %57 : vector<2x8x8x16xf32> to vector<128x16xf32>
    %c0_91 = arith.constant 0 : index
    %c0_92 = arith.constant 0 : index
    %c2 = arith.constant 2 : index
    %c0_93 = arith.constant 0 : index
    %59 = vector.load %arg13[%c0_91, %c0_92, %c2, %c0_93] : memref<2x10x10x16xf32, #tpu.memory_space<vmem>>, vector<2x8x8x16xf32>
    %60 = vector.shape_cast %59 : vector<2x8x8x16xf32> to vector<128x16xf32>
    %c0_94 = arith.constant 0 : index
    %c1_95 = arith.constant 1 : index
    %c0_96 = arith.constant 0 : index
    %c0_97 = arith.constant 0 : index
    %61 = vector.load %arg13[%c0_94, %c1_95, %c0_96, %c0_97] : memref<2x10x10x16xf32, #tpu.memory_space<vmem>>, vector<2x8x8x16xf32>
    %62 = vector.shape_cast %61 : vector<2x8x8x16xf32> to vector<128x16xf32>
    %c0_98 = arith.constant 0 : index
    %c1_99 = arith.constant 1 : index
    %c1_100 = arith.constant 1 : index
    %c0_101 = arith.constant 0 : index
    %63 = vector.load %arg13[%c0_98, %c1_99, %c1_100, %c0_101] : memref<2x10x10x16xf32, #tpu.memory_space<vmem>>, vector<2x8x8x16xf32>
    %64 = vector.shape_cast %63 : vector<2x8x8x16xf32> to vector<128x16xf32>
    %c0_102 = arith.constant 0 : index
    %c1_103 = arith.constant 1 : index
    %c2_104 = arith.constant 2 : index
    %c0_105 = arith.constant 0 : index
    %65 = vector.load %arg13[%c0_102, %c1_103, %c2_104, %c0_105] : memref<2x10x10x16xf32, #tpu.memory_space<vmem>>, vector<2x8x8x16xf32>
    %66 = vector.shape_cast %65 : vector<2x8x8x16xf32> to vector<128x16xf32>
    %c0_106 = arith.constant 0 : index
    %c2_107 = arith.constant 2 : index
    %c0_108 = arith.constant 0 : index
    %c0_109 = arith.constant 0 : index
    %67 = vector.load %arg13[%c0_106, %c2_107, %c0_108, %c0_109] : memref<2x10x10x16xf32, #tpu.memory_space<vmem>>, vector<2x8x8x16xf32>
    %68 = vector.shape_cast %67 : vector<2x8x8x16xf32> to vector<128x16xf32>
    %c0_110 = arith.constant 0 : index
    %c2_111 = arith.constant 2 : index
    %c1_112 = arith.constant 1 : index
    %c0_113 = arith.constant 0 : index
    %69 = vector.load %arg13[%c0_110, %c2_111, %c1_112, %c0_113] : memref<2x10x10x16xf32, #tpu.memory_space<vmem>>, vector<2x8x8x16xf32>
    %70 = vector.shape_cast %69 : vector<2x8x8x16xf32> to vector<128x16xf32>
    %c0_114 = arith.constant 0 : index
    %c2_115 = arith.constant 2 : index
    %c2_116 = arith.constant 2 : index
    %c0_117 = arith.constant 0 : index
    %71 = vector.load %arg13[%c0_114, %c2_115, %c2_116, %c0_117] : memref<2x10x10x16xf32, #tpu.memory_space<vmem>>, vector<2x8x8x16xf32>
    %72 = vector.shape_cast %71 : vector<2x8x8x16xf32> to vector<128x16xf32>
    %73 = tpu.concatenate %56, %58, %60, %62, %64, %66, %68, %70, %72 in 1 : vector<128x16xf32>, vector<128x16xf32>, vector<128x16xf32>, vector<128x16xf32>, vector<128x16xf32>, vector<128x16xf32>, vector<128x16xf32>, vector<128x16xf32>, vector<128x16xf32> -> vector<128x144xf32>
    %c0_118 = arith.constant 0 : index
    %c0_119 = arith.constant 0 : index
    %c0_120 = arith.constant 0 : index
    %74 = vector.load %arg6[%c0_118, %c0_119, %c0_120] : memref<1x144x128xf32, #tpu.memory_space<vmem>>, vector<1x144x128xf32>
    %75 = vector.shape_cast %74 : vector<1x144x128xf32> to vector<144x128xf32>
    %cst_121 = arith.constant dense<0.000000e+00> : vector<128x128xf32>
    %76 = tpu.matmul %73, %75, %cst_121 {dimension_numbers = #tpu.dot_dimension_numbers<[1], [0], [0], [1], [0, 0, 1, 1], [], []>} : vector<128x144xf32>, vector<144x128xf32>, vector<128x128xf32> -> vector<128x128xf32>
    %c0_122 = arith.constant 0 : index
    %c0_123 = arith.constant 0 : index
    %77 = vector.load %arg7[%c0_122, %c0_123] : memref<1x128xf32, #tpu.memory_space<vmem>>, vector<1x128xf32>
    %78 = vector.broadcast %77 : vector<1x128xf32> to vector<128x128xf32>
    %79 = arith.mulf %76, %78 : vector<128x128xf32>
    %c0_124 = arith.constant 0 : index
    %c0_125 = arith.constant 0 : index
    %80 = vector.load %arg8[%c0_124, %c0_125] : memref<1x128xf32, #tpu.memory_space<vmem>>, vector<1x128xf32>
    %81 = vector.broadcast %80 : vector<1x128xf32> to vector<128x128xf32>
    %82 = arith.addf %79, %81 : vector<128x128xf32>
    %83 = arith.addf %82, %54 : vector<128x128xf32>
    %cst_126 = arith.constant 0.000000e+00 : f32
    %84 = vector.broadcast %cst_126 : f32 to vector<128x128xf32>
    %85 = arith.maximumf %83, %84 : vector<128x128xf32>
    %86 = vector.shape_cast %85 : vector<128x128xf32> to vector<1x2x8x8x128xf32>
    %c0_127 = arith.constant 0 : index
    %c0_128 = arith.constant 0 : index
    %c0_129 = arith.constant 0 : index
    %c0_130 = arith.constant 0 : index
    %c0_131 = arith.constant 0 : index
    %87 = vector.load %arg12[%c0_127, %c0_128, %c0_129, %c0_130, %c0_131] : memref<1x2x8x8x128xf32, #tpu.memory_space<vmem>>, vector<1x2x8x8x128xf32>
    tpu.vector_store %arg12[%c0_127, %c0_128, %c0_129, %c0_130, %c0_131], %86 {strides = array<i32>} : memref<1x2x8x8x128xf32, #tpu.memory_space<vmem>>, vector<1x2x8x8x128xf32>,
    return
  }
  func.func @transform_0(%arg0: i32, %arg1: i32) -> (i32, i32, i32, i32, i32, i32) {
    %c1_i32 = arith.constant 1 : i32
    %0 = arith.muli %arg0, %c1_i32 : i32
    %1 = arith.addi %0, %arg1 : i32
    %c0_i32 = arith.constant 0 : i32
    %c0_i32_0 = arith.constant 0 : i32
    %c0_i32_1 = arith.constant 0 : i32
    %c0_i32_2 = arith.constant 0 : i32
    %c0_i32_3 = arith.constant 0 : i32
    %c0_i32_4 = arith.constant 0 : i32
    return %c0_i32, %c0_i32_0, %1, %c0_i32_1, %c0_i32_2, %c0_i32_3 : i32, i32, i32, i32, i32, i32
  }
  func.func @transform_1(%arg0: i32, %arg1: i32) -> (i32, i32, i32) {
    %c0_i32 = arith.constant 0 : i32
    %c0_i32_0 = arith.constant 0 : i32
    %c0_i32_1 = arith.constant 0 : i32
    return %arg0, %c0_i32, %c0_i32_0 : i32, i32, i32
  }
  func.func @transform_2(%arg0: i32, %arg1: i32) -> (i32, i32) {
    %c0_i32 = arith.constant 0 : i32
    %c0_i32_0 = arith.constant 0 : i32
    %c0_i32_1 = arith.constant 0 : i32
    return %c0_i32, %c0_i32_0 : i32, i32
  }
  func.func @transform_3(%arg0: i32, %arg1: i32) -> (i32, i32) {
    %c0_i32 = arith.constant 0 : i32
    %c0_i32_0 = arith.constant 0 : i32
    %c0_i32_1 = arith.constant 0 : i32
    return %c0_i32, %c0_i32_0 : i32, i32
  }
  func.func @transform_4(%arg0: i32, %arg1: i32) -> (i32, i32, i32) {
    %c0_i32 = arith.constant 0 : i32
    %c0_i32_0 = arith.constant 0 : i32
    %c0_i32_1 = arith.constant 0 : i32
    return %arg0, %c0_i32, %c0_i32_0 : i32, i32, i32
  }
  func.func @transform_5(%arg0: i32, %arg1: i32) -> (i32, i32) {
    %c0_i32 = arith.constant 0 : i32
    %c0_i32_0 = arith.constant 0 : i32
    %c0_i32_1 = arith.constant 0 : i32
    return %c0_i32, %c0_i32_0 : i32, i32
  }
  func.func @transform_6(%arg0: i32, %arg1: i32) -> (i32, i32) {
    %c0_i32 = arith.constant 0 : i32
    %c0_i32_0 = arith.constant 0 : i32
    %c0_i32_1 = arith.constant 0 : i32
    return %c0_i32, %c0_i32_0 : i32, i32
  }
  func.func @transform_7(%arg0: i32, %arg1: i32) -> (i32, i32, i32) {
    %c0_i32 = arith.constant 0 : i32
    %c0_i32_0 = arith.constant 0 : i32
    %c0_i32_1 = arith.constant 0 : i32
    return %arg0, %c0_i32, %c0_i32_0 : i32, i32, i32
  }
  func.func @transform_8(%arg0: i32, %arg1: i32) -> (i32, i32) {
    %c0_i32 = arith.constant 0 : i32
    %c0_i32_0 = arith.constant 0 : i32
    %c0_i32_1 = arith.constant 0 : i32
    return %c0_i32, %c0_i32_0 : i32, i32
  }
  func.func @transform_9(%arg0: i32, %arg1: i32) -> (i32, i32) {
    %c0_i32 = arith.constant 0 : i32
    %c0_i32_0 = arith.constant 0 : i32
    %c0_i32_1 = arith.constant 0 : i32
    return %c0_i32, %c0_i32_0 : i32, i32
  }
  func.func @transform_10(%arg0: i32, %arg1: i32) -> (i32, i32, i32, i32, i32) {
    %c0_i32 = arith.constant 0 : i32
    %c0_i32_0 = arith.constant 0 : i32
    %c0_i32_1 = arith.constant 0 : i32
    %c0_i32_2 = arith.constant 0 : i32
    return %arg0, %arg1, %c0_i32, %c0_i32_0, %c0_i32_1 : i32, i32, i32, i32, i32
  }
}

</mosaic_0001>

<bundles_post_ra>
// kernel: tpu_custom_call.1
= control target key start
LH: loop header
LB: loop body
LE: loop exit
PB: predicated region body
PF: predicated region fallthrough
CT: control target
= control target key end

     0   :  { %s6172_s0 = inlined_call_operand.vmem [shape: f32[2,2,4,9,9,8], index: 0, kind: input, shape index: {}]   ;;  %s6173_s1 = inlined_call_operand.vmem [shape: f32[2,72,16], index: 1, kind: input, shape index: {}]   ;;  %s6174_s2 = inlined_call_operand.vmem [shape: f32[1,16], index: 2, kind: input, shape index: {}]   ;;  %s6175_s3 = inlined_call_operand.vmem [shape: f32[1,16], index: 3, kind: input, shape index: {}]   ;;  %s6176_s4 = inlined_call_operand.vmem [shape: f32[2,144,128], index: 4, kind: input, shape index: {}]   ;;  %s6177_s5 = inlined_call_operand.vmem [shape: f32[1,128], index: 5, kind: input, shape index: {}]   ;;  %s6178_s6 = inlined_call_operand.vmem [shape: f32[1,128], index: 6, kind: input, shape index: {}]   ;;  %s6179_s7 = inlined_call_operand.vmem [shape: f32[2,8,128], index: 7, kind: input, shape index: {}]   ;;  %s6180_s8 = inlined_call_operand.vmem [shape: f32[1,128], index: 8, kind: input, shape index: {}]   ;;  %s6181_s9 = inlined_call_operand.vmem [shape: f32[1,128], index: 9, kind: input, shape index: {}]   ;;  %s6182_s10 = inlined_call_operand.hbm [shape: f32[2,2,8,8,128], index: 10, kind: output, shape index: {}]  }
   0x1   :  { %6191 = sst [smem:[#allocation15_spill]] %s6172_s0 }
   0x2   :  { %6192 = sst [smem:[#allocation16_spill]] %s6173_s1 }
   0x3   :  { %15 = vsyncpa [#allocation5], 0 }
   0x4   :  { %17 = vsyncpa [#allocation5 + $0x1], 0  ;;  %s4412_s13 = smov 0   ;;  %s4414_s14 = smov 0  }
   0x5   :  { %s4416_s15 = smov 0   ;;  %s4418_s16 = smov 0  }
   0x6   :  { %s4420_s17 = smov 0   ;;  %s4422_s18 = smov 0  }
   0x7 LB: > { %s3566_s19 = sadd.s32 4294967295, %s4341_s18   ;;  %s3567_s20 = sadd.s32 4294967294, %s4341_s18   ;;  %s4341_s18 = sphi %s4422_s18, %s23_s18   ;;  %s4337_s17 = sphi %s4420_s17, %s6222_s17   ;;  %s4333_s16 = sphi %s4418_s16, %s6221_s16   ;;  %s4329_s15 = sphi %s4416_s15, %s6220_s15   ;;  %s4325_s14 = sphi %s4414_s14, %s6219_s14   ;;  %s4321_s13 = sphi %s4412_s13, %s6218_s13  }
   0x8   : > { %s35_s21 = sadd.s32 1, %s4337_s17  ;;  %s44_s22 = sadd.s32 1, %s4329_s15 }
   0x9   : > { %p37_p0 = scmp.ge.s32.totalorder %s35_s21, 2  ;;  %p51_p1 = scmp.ne.s32.totalorder %s4329_s15, %s4325_s14 }
   0xa   : > { %p52_p2 = scmp.eq.s32.totalorder %s4341_s18, 0  ;;  %p287_p3 = scmp.eq.s32.totalorder %s3566_s19, 1 }
   0xb   : > { %s6224_s21 = smov (%p37_p0, %s35_s21), 0  ;;  %p292_p6 = scmp.ne.s32.totalorder %s4325_s14, %s4321_s13 }
   0xc   : > { %p53_p4 = por %p52_p2, %p51_p1  ;;  %p4451_p5 = por %p287_p3, %p51_p1 }
   0xd   : > { %s41_s24 = ssub.s32 %s4337_s17, %s6224_s21  ;;  %p293_p8 = scmp.eq.s32.totalorder %s3567_s20, 1 }
   0xe   : > { %p42_p7 = scmp.eq.s32.totalorder %s41_s24, 0  ;;  %p3569_p10 = scmp.ge.s32.totalorder %s4341_s18, 2 }
   0xf   : > { %p4462_p9 = por %p293_p8, %p292_p6 }
  0x10   : > { %s4460_s25 = scalar_select %p42_p7, %s4329_s15, %s44_s22  }
  0x11   : > { %327 = sbr.rel (%p3569_p10) target bundleno = 103 (0x67), region = 40 }
  0x16   : > { %330 = sbr.rel (!%p53_p4) target bundleno = 103 (0x67), region = 44  ;;  %s332_s27 = sand.u32 (%p53_p4), 1, %s4329_s15  }
  0x17   : > { %s3913_s28 = smul.u32 (%p53_p4), 288, %s4337_s17  ;;  %s6195_s0 = sld [smem:[#allocation15_spill]] (%p53_p4) }
  0x18   : > { %s3912_s29 = smul.u32 (%p53_p4), 1152, %s332_s27 }
  0x1a   : > { %s4479_s19 = scalar_lea.vmem (%p53_p4), [#allocation3], %s3912_s29 }
  0x1d   : > { %s4474_s12 = scalar_lea.vmem %s6195_s0, %s3913_s28 }
  0x1e   : > { %v654_v0 = vld [vmem:[%s4474_s12] sm:$0xff]  ;;  %v656_v1 = vld [vmem:[%s4474_s12 + $0x8] sm:$0xff]  ;;  %v658_v2 = vld [vmem:[%s4474_s12 + $0x10] sm:$0xff] }
  0x1f   : > { %655 = vst [vmem:[%s4479_s19] sm:$0xff] %v654_v0  ;;  %657 = vst [vmem:[%s4479_s19 + $0x8] sm:$0xff] %v656_v1  ;;  %v660_v3 = vld [vmem:[%s4474_s12 + $0x18] sm:$0xff]  ;;  %v662_v4 = vld [vmem:[%s4474_s12 + $0x20] sm:$0xff] }
  0x20   : > { %659 = vst [vmem:[%s4479_s19 + $0x10] sm:$0xff] %v658_v2  ;;  %v664_v5 = vld [vmem:[%s4474_s12 + $0x28] sm:$0xff]  ;;  %661 = vst [vmem:[%s4479_s19 + $0x18] sm:$0xff] %v660_v3  ;;  %v666_v6 = vld [vmem:[%s4474_s12 + $0x30] sm:$0xff] }
  0x21   : > { %663 = vst [vmem:[%s4479_s19 + $0x20] sm:$0xff] %v662_v4  ;;  %665 = vst [vmem:[%s4479_s19 + $0x28] sm:$0xff] %v664_v5  ;;  %v668_v7 = vld [vmem:[%s4474_s12 + $0x38] sm:$0xff]  ;;  %v670_v8 = vld [vmem:[%s4474_s12 + $0x40] sm:$0xff] }
  0x22   : > { %667 = vst [vmem:[%s4479_s19 + $0x30] sm:$0xff] %v666_v6  ;;  %669 = vst [vmem:[%s4479_s19 + $0x38] sm:$0xff] %v668_v7  ;;  %v672_v9 = vld [vmem:[%s4474_s12 + $0x48] sm:$0xff]  ;;  %v674_v10 = vld [vmem:[%s4474_s12 + $0x50] sm:$0xff] }
  0x23   : > { %671 = vst [vmem:[%s4479_s19 + $0x40] sm:$0xff] %v670_v8  ;;  %v676_v11 = vld [vmem:[%s4474_s12 + $0x58] sm:$0xff]  ;;  %673 = vst [vmem:[%s4479_s19 + $0x48] sm:$0xff] %v672_v9  ;;  %v678_v12 = vld [vmem:[%s4474_s12 + $0x60] sm:$0xff] }
  0x24   : > { %675 = vst [vmem:[%s4479_s19 + $0x50] sm:$0xff] %v674_v10  ;;  %677 = vst [vmem:[%s4479_s19 + $0x58] sm:$0xff] %v676_v11  ;;  %v680_v13 = vld [vmem:[%s4474_s12 + $0x68] sm:$0xff]  ;;  %v682_v14 = vld [vmem:[%s4474_s12 + $0x70] sm:$0xff] }
  0x25   : > { %679 = vst [vmem:[%s4479_s19 + $0x60] sm:$0xff] %v678_v12  ;;  %681 = vst [vmem:[%s4479_s19 + $0x68] sm:$0xff] %v680_v13  ;;  %v684_v15 = vld [vmem:[%s4474_s12 + $0x78] sm:$0xff]  ;;  %v686_v16 = vld [vmem:[%s4474_s12 + $0x80] sm:$0xff] }
  0x26   : > { %683 = vst [vmem:[%s4479_s19 + $0x70] sm:$0xff] %v682_v14  ;;  %v688_v17 = vld [vmem:[%s4474_s12 + $0x88] sm:$0xff]  ;;  %685 = vst [vmem:[%s4479_s19 + $0x78] sm:$0xff] %v684_v15  ;;  %v690_v18 = vld [vmem:[%s4474_s12 + $0x90] sm:$0xff] }
  0x27   : > { %687 = vst [vmem:[%s4479_s19 + $0x80] sm:$0xff] %v686_v16  ;;  %689 = vst [vmem:[%s4479_s19 + $0x88] sm:$0xff] %v688_v17  ;;  %v692_v19 = vld [vmem:[%s4474_s12 + $0x98] sm:$0xff]  ;;  %v694_v20 = vld [vmem:[%s4474_s12 + $0xa0] sm:$0xff] }
  0x28   : > { %691 = vst [vmem:[%s4479_s19 + $0x90] sm:$0xff] %v690_v18  ;;  %693 = vst [vmem:[%s4479_s19 + $0x98] sm:$0xff] %v692_v19  ;;  %v696_v21 = vld [vmem:[%s4474_s12 + $0xa8] sm:$0xff]  ;;  %v698_v22 = vld [vmem:[%s4474_s12 + $0xb0] sm:$0xff] }
  0x29   : > { %695 = vst [vmem:[%s4479_s19 + $0xa0] sm:$0xff] %v694_v20  ;;  %v700_v23 = vld [vmem:[%s4474_s12 + $0xb8] sm:$0xff]  ;;  %697 = vst [vmem:[%s4479_s19 + $0xa8] sm:$0xff] %v696_v21  ;;  %v702_v24 = vld [vmem:[%s4474_s12 + $0xc0] sm:$0xff] }
  0x2a   : > { %699 = vst [vmem:[%s4479_s19 + $0xb0] sm:$0xff] %v698_v22  ;;  %701 = vst [vmem:[%s4479_s19 + $0xb8] sm:$0xff] %v700_v23  ;;  %v704_v25 = vld [vmem:[%s4474_s12 + $0xc8] sm:$0xff]  ;;  %v706_v26 = vld [vmem:[%s4474_s12 + $0xd0] sm:$0xff] }
  0x2b   : > { %703 = vst [vmem:[%s4479_s19 + $0xc0] sm:$0xff] %v702_v24  ;;  %705 = vst [vmem:[%s4479_s19 + $0xc8] sm:$0xff] %v704_v25  ;;  %v708_v27 = vld [vmem:[%s4474_s12 + $0xd8] sm:$0xff]  ;;  %v710_v28 = vld [vmem:[%s4474_s12 + $0xe0] sm:$0xff] }
  0x2c   : > { %707 = vst [vmem:[%s4479_s19 + $0xd0] sm:$0xff] %v706_v26  ;;  %v712_v29 = vld [vmem:[%s4474_s12 + $0xe8] sm:$0xff]  ;;  %709 = vst [vmem:[%s4479_s19 + $0xd8] sm:$0xff] %v708_v27  ;;  %v714_v30 = vld [vmem:[%s4474_s12 + $0xf0] sm:$0xff] }
  0x2d   : > { %711 = vst [vmem:[%s4479_s19 + $0xe0] sm:$0xff] %v710_v28  ;;  %713 = vst [vmem:[%s4479_s19 + $0xe8] sm:$0xff] %v712_v29  ;;  %v716_v31 = vld [vmem:[%s4474_s12 + $0xf8] sm:$0xff]  ;;  %v718_v32 = vld [vmem:[%s4474_s12 + $0x100] sm:$0xff] }
  0x2e   : > { %715 = vst [vmem:[%s4479_s19 + $0xf0] sm:$0xff] %v714_v30  ;;  %717 = vst [vmem:[%s4479_s19 + $0xf8] sm:$0xff] %v716_v31  ;;  %v720_v33 = vld [vmem:[%s4474_s12 + $0x108] sm:$0xff]  ;;  %v722_v34 = vld [vmem:[%s4474_s12 + $0x110] sm:$0xff] }
  0x2f   : > { %719 = vst [vmem:[%s4479_s19 + $0x100] sm:$0xff] %v718_v32  ;;  %v724_v35 = vld [vmem:[%s4474_s12 + $0x118] sm:$0xff]  ;;  %721 = vst [vmem:[%s4479_s19 + $0x108] sm:$0xff] %v720_v33  ;;  %v726_v36 = vld [vmem:[%s4474_s12 + $0x240] sm:$0xff] }
  0x30   : > { %723 = vst [vmem:[%s4479_s19 + $0x110] sm:$0xff] %v722_v34  ;;  %725 = vst [vmem:[%s4479_s19 + $0x118] sm:$0xff] %v724_v35  ;;  %v728_v37 = vld [vmem:[%s4474_s12 + $0x248] sm:$0xff]  ;;  %v730_v38 = vld [vmem:[%s4474_s12 + $0x250] sm:$0xff] }
  0x31   : > { %727 = vst [vmem:[%s4479_s19 + $0x120] sm:$0xff] %v726_v36  ;;  %729 = vst [vmem:[%s4479_s19 + $0x128] sm:$0xff] %v728_v37  ;;  %v732_v39 = vld [vmem:[%s4474_s12 + $0x258] sm:$0xff]  ;;  %v734_v40 = vld [vmem:[%s4474_s12 + $0x260] sm:$0xff] }
  0x32   : > { %731 = vst [vmem:[%s4479_s19 + $0x130] sm:$0xff] %v730_v38  ;;  %v736_v41 = vld [vmem:[%s4474_s12 + $0x268] sm:$0xff]  ;;  %733 = vst [vmem:[%s4479_s19 + $0x138] sm:$0xff] %v732_v39  ;;  %v738_v42 = vld [vmem:[%s4474_s12 + $0x270] sm:$0xff] }
  0x33   : > { %735 = vst [vmem:[%s4479_s19 + $0x140] sm:$0xff] %v734_v40  ;;  %737 = vst [vmem:[%s4479_s19 + $0x148] sm:$0xff] %v736_v41  ;;  %v740_v43 = vld [vmem:[%s4474_s12 + $0x278] sm:$0xff]  ;;  %v742_v44 = vld [vmem:[%s4474_s12 + $0x280] sm:$0xff] }
  0x34   : > { %739 = vst [vmem:[%s4479_s19 + $0x150] sm:$0xff] %v738_v42  ;;  %741 = vst [vmem:[%s4479_s19 + $0x158] sm:$0xff] %v740_v43  ;;  %v744_v45 = vld [vmem:[%s4474_s12 + $0x288] sm:$0xff]  ;;  %v746_v46 = vld [vmem:[%s4474_s12 + $0x290] sm:$0xff] }
  0x35   : > { %743 = vst [vmem:[%s4479_s19 + $0x160] sm:$0xff] %v742_v44  ;;  %v748_v47 = vld [vmem:[%s4474_s12 + $0x298] sm:$0xff]  ;;  %745 = vst [vmem:[%s4479_s19 + $0x168] sm:$0xff] %v744_v45  ;;  %v750_v48 = vld [vmem:[%s4474_s12 + $0x2a0] sm:$0xff] }
  0x36   : > { %747 = vst [vmem:[%s4479_s19 + $0x170] sm:$0xff] %v746_v46  ;;  %749 = vst [vmem:[%s4479_s19 + $0x178] sm:$0xff] %v748_v47  ;;  %v752_v49 = vld [vmem:[%s4474_s12 + $0x2a8] sm:$0xff]  ;;  %v754_v50 = vld [vmem:[%s4474_s12 + $0x2b0] sm:$0xff] }
  0x37   : > { %751 = vst [vmem:[%s4479_s19 + $0x180] sm:$0xff] %v750_v48  ;;  %753 = vst [vmem:[%s4479_s19 + $0x188] sm:$0xff] %v752_v49  ;;  %v756_v51 = vld [vmem:[%s4474_s12 + $0x2b8] sm:$0xff]  ;;  %v758_v52 = vld [vmem:[%s4474_s12 + $0x2c0] sm:$0xff] }
  0x38   : > { %755 = vst [vmem:[%s4479_s19 + $0x190] sm:$0xff] %v754_v50  ;;  %v760_v53 = vld [vmem:[%s4474_s12 + $0x2c8] sm:$0xff]  ;;  %757 = vst [vmem:[%s4479_s19 + $0x198] sm:$0xff] %v756_v51  ;;  %v762_v54 = vld [vmem:[%s4474_s12 + $0x2d0] sm:$0xff] }
  0x39   : > { %759 = vst [vmem:[%s4479_s19 + $0x1a0] sm:$0xff] %v758_v52  ;;  %761 = vst [vmem:[%s4479_s19 + $0x1a8] sm:$0xff] %v760_v53  ;;  %v764_v55 = vld [vmem:[%s4474_s12 + $0x2d8] sm:$0xff]  ;;  %v766_v56 = vld [vmem:[%s4474_s12 + $0x2e0] sm:$0xff] }
  0x3a   : > { %763 = vst [vmem:[%s4479_s19 + $0x1b0] sm:$0xff] %v762_v54  ;;  %765 = vst [vmem:[%s4479_s19 + $0x1b8] sm:$0xff] %v764_v55  ;;  %v768_v57 = vld [vmem:[%s4474_s12 + $0x2e8] sm:$0xff]  ;;  %v770_v58 = vld [vmem:[%s4474_s12 + $0x2f0] sm:$0xff] }
  0x3b   : > { %767 = vst [vmem:[%s4479_s19 + $0x1c0] sm:$0xff] %v766_v56  ;;  %v772_v59 = vld [vmem:[%s4474_s12 + $0x2f8] sm:$0xff]  ;;  %769 = vst [vmem:[%s4479_s19 + $0x1c8] sm:$0xff] %v768_v57  ;;  %v774_v60 = vld [vmem:[%s4474_s12 + $0x300] sm:$0xff] }
  0x3c   : > { %771 = vst [vmem:[%s4479_s19 + $0x1d0] sm:$0xff] %v770_v58  ;;  %773 = vst [vmem:[%s4479_s19 + $0x1d8] sm:$0xff] %v772_v59  ;;  %v776_v61 = vld [vmem:[%s4474_s12 + $0x308] sm:$0xff]  ;;  %v778_v62 = vld [vmem:[%s4474_s12 + $0x310] sm:$0xff] }
  0x3d   : > { %775 = vst [vmem:[%s4479_s19 + $0x1e0] sm:$0xff] %v774_v60  ;;  %777 = vst [vmem:[%s4479_s19 + $0x1e8] sm:$0xff] %v776_v61  ;;  %v780_v63 = vld [vmem:[%s4474_s12 + $0x318] sm:$0xff]  ;;  %v782_v0 = vld [vmem:[%s4474_s12 + $0x320] sm:$0xff] }
  0x3e   : > { %779 = vst [vmem:[%s4479_s19 + $0x1f0] sm:$0xff] %v778_v62  ;;  %v784_v1 = vld [vmem:[%s4474_s12 + $0x328] sm:$0xff]  ;;  %781 = vst [vmem:[%s4479_s19 + $0x1f8] sm:$0xff] %v780_v63  ;;  %v786_v2 = vld [vmem:[%s4474_s12 + $0x330] sm:$0xff] }
  0x3f   : > { %783 = vst [vmem:[%s4479_s19 + $0x200] sm:$0xff] %v782_v0  ;;  %785 = vst [vmem:[%s4479_s19 + $0x208] sm:$0xff] %v784_v1  ;;  %v788_v3 = vld [vmem:[%s4474_s12 + $0x338] sm:$0xff]  ;;  %v790_v4 = vld [vmem:[%s4474_s12 + $0x340] sm:$0xff] }
  0x40   : > { %787 = vst [vmem:[%s4479_s19 + $0x210] sm:$0xff] %v786_v2  ;;  %789 = vst [vmem:[%s4479_s19 + $0x218] sm:$0xff] %v788_v3  ;;  %v792_v5 = vld [vmem:[%s4474_s12 + $0x348] sm:$0xff]  ;;  %v794_v6 = vld [vmem:[%s4474_s12 + $0x350] sm:$0xff] }
  0x41   : > { %791 = vst [vmem:[%s4479_s19 + $0x220] sm:$0xff] %v790_v4  ;;  %v796_v7 = vld [vmem:[%s4474_s12 + $0x358] sm:$0xff]  ;;  %793 = vst [vmem:[%s4479_s19 + $0x228] sm:$0xff] %v792_v5  ;;  %v798_v8 = vld [vmem:[%s4474_s12 + $0x480] sm:$0xff] }
  0x42   : > { %795 = vst [vmem:[%s4479_s19 + $0x230] sm:$0xff] %v794_v6  ;;  %797 = vst [vmem:[%s4479_s19 + $0x238] sm:$0xff] %v796_v7  ;;  %v800_v9 = vld [vmem:[%s4474_s12 + $0x488] sm:$0xff]  ;;  %v802_v10 = vld [vmem:[%s4474_s12 + $0x490] sm:$0xff] }
  0x43   : > { %799 = vst [vmem:[%s4479_s19 + $0x240] sm:$0xff] %v798_v8  ;;  %801 = vst [vmem:[%s4479_s19 + $0x248] sm:$0xff] %v800_v9  ;;  %v804_v11 = vld [vmem:[%s4474_s12 + $0x498] sm:$0xff]  ;;  %v806_v12 = vld [vmem:[%s4474_s12 + $0x4a0] sm:$0xff] }
  0x44   : > { %803 = vst [vmem:[%s4479_s19 + $0x250] sm:$0xff] %v802_v10  ;;  %v808_v13 = vld [vmem:[%s4474_s12 + $0x4a8] sm:$0xff]  ;;  %805 = vst [vmem:[%s4479_s19 + $0x258] sm:$0xff] %v804_v11  ;;  %v810_v14 = vld [vmem:[%s4474_s12 + $0x4b0] sm:$0xff] }
  0x45   : > { %807 = vst [vmem:[%s4479_s19 + $0x260] sm:$0xff] %v806_v12  ;;  %809 = vst [vmem:[%s4479_s19 + $0x268] sm:$0xff] %v808_v13  ;;  %v812_v15 = vld [vmem:[%s4474_s12 + $0x4b8] sm:$0xff]  ;;  %v814_v16 = vld [vmem:[%s4474_s12 + $0x4c0] sm:$0xff] }
  0x46   : > { %811 = vst [vmem:[%s4479_s19 + $0x270] sm:$0xff] %v810_v14  ;;  %813 = vst [vmem:[%s4479_s19 + $0x278] sm:$0xff] %v812_v15  ;;  %v816_v17 = vld [vmem:[%s4474_s12 + $0x4c8] sm:$0xff]  ;;  %v818_v18 = vld [vmem:[%s4474_s12 + $0x4d0] sm:$0xff] }
  0x47   : > { %815 = vst [vmem:[%s4479_s19 + $0x280] sm:$0xff] %v814_v16  ;;  %v820_v19 = vld [vmem:[%s4474_s12 + $0x4d8] sm:$0xff]  ;;  %817 = vst [vmem:[%s4479_s19 + $0x288] sm:$0xff] %v816_v17  ;;  %v822_v20 = vld [vmem:[%s4474_s12 + $0x4e0] sm:$0xff] }
  0x48   : > { %819 = vst [vmem:[%s4479_s19 + $0x290] sm:$0xff] %v818_v18  ;;  %821 = vst [vmem:[%s4479_s19 + $0x298] sm:$0xff] %v820_v19  ;;  %v824_v21 = vld [vmem:[%s4474_s12 + $0x4e8] sm:$0xff]  ;;  %v826_v22 = vld [vmem:[%s4474_s12 + $0x4f0] sm:$0xff] }
  0x49   : > { %823 = vst [vmem:[%s4479_s19 + $0x2a0] sm:$0xff] %v822_v20  ;;  %825 = vst [vmem:[%s4479_s19 + $0x2a8] sm:$0xff] %v824_v21  ;;  %v828_v23 = vld [vmem:[%s4474_s12 + $0x4f8] sm:$0xff]  ;;  %v830_v24 = vld [vmem:[%s4474_s12 + $0x500] sm:$0xff] }
  0x4a   : > { %827 = vst [vmem:[%s4479_s19 + $0x2b0] sm:$0xff] %v826_v22  ;;  %v832_v25 = vld [vmem:[%s4474_s12 + $0x508] sm:$0xff]  ;;  %829 = vst [vmem:[%s4479_s19 + $0x2b8] sm:$0xff] %v828_v23  ;;  %v834_v26 = vld [vmem:[%s4474_s12 + $0x510] sm:$0xff] }
  0x4b   : > { %831 = vst [vmem:[%s4479_s19 + $0x2c0] sm:$0xff] %v830_v24  ;;  %833 = vst [vmem:[%s4479_s19 + $0x2c8] sm:$0xff] %v832_v25  ;;  %v836_v27 = vld [vmem:[%s4474_s12 + $0x518] sm:$0xff]  ;;  %v838_v28 = vld [vmem:[%s4474_s12 + $0x520] sm:$0xff] }
  0x4c   : > { %835 = vst [vmem:[%s4479_s19 + $0x2d0] sm:$0xff] %v834_v26  ;;  %837 = vst [vmem:[%s4479_s19 + $0x2d8] sm:$0xff] %v836_v27  ;;  %v840_v29 = vld [vmem:[%s4474_s12 + $0x528] sm:$0xff]  ;;  %v842_v30 = vld [vmem:[%s4474_s12 + $0x530] sm:$0xff] }
  0x4d   : > { %839 = vst [vmem:[%s4479_s19 + $0x2e0] sm:$0xff] %v838_v28  ;;  %v844_v31 = vld [vmem:[%s4474_s12 + $0x538] sm:$0xff]  ;;  %841 = vst [vmem:[%s4479_s19 + $0x2e8] sm:$0xff] %v840_v29  ;;  %v846_v32 = vld [vmem:[%s4474_s12 + $0x540] sm:$0xff] }
  0x4e   : > { %843 = vst [vmem:[%s4479_s19 + $0x2f0] sm:$0xff] %v842_v30  ;;  %845 = vst [vmem:[%s4479_s19 + $0x2f8] sm:$0xff] %v844_v31  ;;  %v848_v33 = vld [vmem:[%s4474_s12 + $0x548] sm:$0xff]  ;;  %v850_v34 = vld [vmem:[%s4474_s12 + $0x550] sm:$0xff] }
  0x4f   : > { %847 = vst [vmem:[%s4479_s19 + $0x300] sm:$0xff] %v846_v32  ;;  %849 = vst [vmem:[%s4479_s19 + $0x308] sm:$0xff] %v848_v33  ;;  %v852_v35 = vld [vmem:[%s4474_s12 + $0x558] sm:$0xff]  ;;  %v854_v36 = vld [vmem:[%s4474_s12 + $0x560] sm:$0xff] }
  0x50   : > { %851 = vst [vmem:[%s4479_s19 + $0x310] sm:$0xff] %v850_v34  ;;  %v856_v37 = vld [vmem:[%s4474_s12 + $0x568] sm:$0xff]  ;;  %853 = vst [vmem:[%s4479_s19 + $0x318] sm:$0xff] %v852_v35  ;;  %v858_v38 = vld [vmem:[%s4474_s12 + $0x570] sm:$0xff] }
  0x51   : > { %855 = vst [vmem:[%s4479_s19 + $0x320] sm:$0xff] %v854_v36  ;;  %857 = vst [vmem:[%s4479_s19 + $0x328] sm:$0xff] %v856_v37  ;;  %v860_v39 = vld [vmem:[%s4474_s12 + $0x578] sm:$0xff]  ;;  %v862_v40 = vld [vmem:[%s4474_s12 + $0x580] sm:$0xff] }
  0x52   : > { %859 = vst [vmem:[%s4479_s19 + $0x330] sm:$0xff] %v858_v38  ;;  %861 = vst [vmem:[%s4479_s19 + $0x338] sm:$0xff] %v860_v39  ;;  %v864_v41 = vld [vmem:[%s4474_s12 + $0x588] sm:$0xff]  ;;  %v866_v42 = vld [vmem:[%s4474_s12 + $0x590] sm:$0xff] }
  0x53   : > { %863 = vst [vmem:[%s4479_s19 + $0x340] sm:$0xff] %v862_v40  ;;  %v868_v43 = vld [vmem:[%s4474_s12 + $0x598] sm:$0xff]  ;;  %865 = vst [vmem:[%s4479_s19 + $0x348] sm:$0xff] %v864_v41  ;;  %v870_v44 = vld [vmem:[%s4474_s12 + $0x6c0] sm:$0xff] }
  0x54   : > { %867 = vst [vmem:[%s4479_s19 + $0x350] sm:$0xff] %v866_v42  ;;  %869 = vst [vmem:[%s4479_s19 + $0x358] sm:$0xff] %v868_v43  ;;  %v872_v45 = vld [vmem:[%s4474_s12 + $0x6c8] sm:$0xff]  ;;  %v874_v46 = vld [vmem:[%s4474_s12 + $0x6d0] sm:$0xff] }
  0x55   : > { %871 = vst [vmem:[%s4479_s19 + $0x360] sm:$0xff] %v870_v44  ;;  %873 = vst [vmem:[%s4479_s19 + $0x368] sm:$0xff] %v872_v45  ;;  %v876_v47 = vld [vmem:[%s4474_s12 + $0x6d8] sm:$0xff]  ;;  %v878_v48 = vld [vmem:[%s4474_s12 + $0x6e0] sm:$0xff] }
  0x56   : > { %875 = vst [vmem:[%s4479_s19 + $0x370] sm:$0xff] %v874_v46  ;;  %v880_v49 = vld [vmem:[%s4474_s12 + $0x6e8] sm:$0xff]  ;;  %877 = vst [vmem:[%s4479_s19 + $0x378] sm:$0xff] %v876_v47  ;;  %v882_v50 = vld [vmem:[%s4474_s12 + $0x6f0] sm:$0xff] }
  0x57   : > { %879 = vst [vmem:[%s4479_s19 + $0x380] sm:$0xff] %v878_v48  ;;  %881 = vst [vmem:[%s4479_s19 + $0x388] sm:$0xff] %v880_v49  ;;  %v884_v51 = vld [vmem:[%s4474_s12 + $0x6f8] sm:$0xff]  ;;  %v886_v52 = vld [vmem:[%s4474_s12 + $0x700] sm:$0xff] }
  0x58   : > { %883 = vst [vmem:[%s4479_s19 + $0x390] sm:$0xff] %v882_v50  ;;  %885 = vst [vmem:[%s4479_s19 + $0x398] sm:$0xff] %v884_v51  ;;  %v888_v53 = vld [vmem:[%s4474_s12 + $0x708] sm:$0xff]  ;;  %v890_v54 = vld [vmem:[%s4474_s12 + $0x710] sm:$0xff] }
  0x59   : > { %887 = vst [vmem:[%s4479_s19 + $0x3a0] sm:$0xff] %v886_v52  ;;  %v892_v55 = vld [vmem:[%s4474_s12 + $0x718] sm:$0xff]  ;;  %889 = vst [vmem:[%s4479_s19 + $0x3a8] sm:$0xff] %v888_v53  ;;  %v894_v56 = vld [vmem:[%s4474_s12 + $0x720] sm:$0xff] }
  0x5a   : > { %891 = vst [vmem:[%s4479_s19 + $0x3b0] sm:$0xff] %v890_v54  ;;  %893 = vst [vmem:[%s4479_s19 + $0x3b8] sm:$0xff] %v892_v55  ;;  %v896_v57 = vld [vmem:[%s4474_s12 + $0x728] sm:$0xff]  ;;  %v898_v58 = vld [vmem:[%s4474_s12 + $0x730] sm:$0xff] }
  0x5b   : > { %895 = vst [vmem:[%s4479_s19 + $0x3c0] sm:$0xff] %v894_v56  ;;  %897 = vst [vmem:[%s4479_s19 + $0x3c8] sm:$0xff] %v896_v57  ;;  %v900_v59 = vld [vmem:[%s4474_s12 + $0x738] sm:$0xff]  ;;  %v902_v60 = vld [vmem:[%s4474_s12 + $0x740] sm:$0xff] }
  0x5c   : > { %899 = vst [vmem:[%s4479_s19 + $0x3d0] sm:$0xff] %v898_v58  ;;  %v904_v61 = vld [vmem:[%s4474_s12 + $0x748] sm:$0xff]  ;;  %901 = vst [vmem:[%s4479_s19 + $0x3d8] sm:$0xff] %v900_v59  ;;  %v906_v62 = vld [vmem:[%s4474_s12 + $0x750] sm:$0xff] }
  0x5d   : > { %903 = vst [vmem:[%s4479_s19 + $0x3e0] sm:$0xff] %v902_v60  ;;  %905 = vst [vmem:[%s4479_s19 + $0x3e8] sm:$0xff] %v904_v61  ;;  %v908_v63 = vld [vmem:[%s4474_s12 + $0x758] sm:$0xff]  ;;  %v910_v0 = vld [vmem:[%s4474_s12 + $0x760] sm:$0xff] }
  0x5e   : > { %907 = vst [vmem:[%s4479_s19 + $0x3f0] sm:$0xff] %v906_v62  ;;  %909 = vst [vmem:[%s4479_s19 + $0x3f8] sm:$0xff] %v908_v63  ;;  %v912_v1 = vld [vmem:[%s4474_s12 + $0x768] sm:$0xff]  ;;  %v914_v2 = vld [vmem:[%s4474_s12 + $0x770] sm:$0xff] }
  0x5f   : > { %911 = vst [vmem:[%s4479_s19 + $0x400] sm:$0xff] %v910_v0  ;;  %v916_v3 = vld [vmem:[%s4474_s12 + $0x778] sm:$0xff]  ;;  %913 = vst [vmem:[%s4479_s19 + $0x408] sm:$0xff] %v912_v1  ;;  %v918_v4 = vld [vmem:[%s4474_s12 + $0x780] sm:$0xff] }
  0x60   : > { %915 = vst [vmem:[%s4479_s19 + $0x410] sm:$0xff] %v914_v2  ;;  %917 = vst [vmem:[%s4479_s19 + $0x418] sm:$0xff] %v916_v3  ;;  %v920_v5 = vld [vmem:[%s4474_s12 + $0x788] sm:$0xff]  ;;  %v922_v6 = vld [vmem:[%s4474_s12 + $0x790] sm:$0xff] }
  0x61   : > { %919 = vst [vmem:[%s4479_s19 + $0x420] sm:$0xff] %v918_v4  ;;  %921 = vst [vmem:[%s4479_s19 + $0x428] sm:$0xff] %v920_v5  ;;  %v924_v7 = vld [vmem:[%s4474_s12 + $0x798] sm:$0xff]  ;;  %v926_v8 = vld [vmem:[%s4474_s12 + $0x7a0] sm:$0xff] }
  0x62   : > { %923 = vst [vmem:[%s4479_s19 + $0x430] sm:$0xff] %v922_v6  ;;  %v928_v9 = vld [vmem:[%s4474_s12 + $0x7a8] sm:$0xff]  ;;  %925 = vst [vmem:[%s4479_s19 + $0x438] sm:$0xff] %v924_v7  ;;  %v930_v10 = vld [vmem:[%s4474_s12 + $0x7b0] sm:$0xff] }
  0x63   : > { %927 = vst [vmem:[%s4479_s19 + $0x440] sm:$0xff] %v926_v8  ;;  %929 = vst [vmem:[%s4479_s19 + $0x448] sm:$0xff] %v928_v9  ;;  %v932_v11 = vld [vmem:[%s4474_s12 + $0x7b8] sm:$0xff]  ;;  %v934_v12 = vld [vmem:[%s4474_s12 + $0x7c0] sm:$0xff] }
  0x64   : > { %931 = vst [vmem:[%s4479_s19 + $0x450] sm:$0xff] %v930_v10  ;;  %933 = vst [vmem:[%s4479_s19 + $0x458] sm:$0xff] %v932_v11  ;;  %v936_v13 = vld [vmem:[%s4474_s12 + $0x7c8] sm:$0xff]  ;;  %v938_v14 = vld [vmem:[%s4474_s12 + $0x7d0] sm:$0xff] }
  0x65   : > { %935 = vst [vmem:[%s4479_s19 + $0x460] sm:$0xff] %v934_v12  ;;  %v940_v15 = vld [vmem:[%s4474_s12 + $0x7d8] sm:$0xff]  ;;  %937 = vst [vmem:[%s4479_s19 + $0x468] sm:$0xff] %v936_v13 }
  0x66   : > { %939 = vst [vmem:[%s4479_s19 + $0x470] sm:$0xff] %v938_v14  ;;  %941 = vst [vmem:[%s4479_s19 + $0x478] sm:$0xff] %v940_v15 }
  0x67 PF: > { %p3573_p11 = scmp.ge.s32.totalorder %s4341_s18, 1  ;;  %p969_p12 = scmp.lt.s32.totalorder %s4341_s18, 3 }
  0x69   : > { %p970_p13 = pnand %p3573_p11, %p969_p12 }
  0x6b   : > { %973 = sbr.rel (%p970_p13) target bundleno = 1054 (0x41e), region = 94 }
  0x70   : > { %s4769_s20 = sand.u32 1, %s4325_s14   ;;  %s4343_s27 = smov 16   ;;  %vm1705_vm0 = vcmask 64512   ;;  %vm1722_vm1 = vcmask 130048   ;;  %vm1739_vm2 = vcmask 195584   ;;  %vm1756_vm3 = vcmask 261120  }
  0x71   : > { %s3914_s22 = smul.u32 1152, %s4769_s20  ;;  %s6185_s28 = smov 8   ;;  %vm1773_vm4 = vcmask 326656   ;;  %vm1790_vm5 = vcmask 392192   ;;  %vm1807_vm6 = vcmask 457728   ;;  %vm1824_vm7 = vcmask 523264  }
  0x72   : > { %s6183_s29 = smov 24   ;;  %p1029_p0 = scmp.lt.s32.totalorder %s4333_s16, 1  ;;  %vm1850_vm8 = vcmask 588800   ;;  %vm2107_vm9 = vcmask 123904   ;;  %vm3077_vm10 = vcmask 654336   ;;  %vm3094_vm11 = vcmask 785408  }
  0x73   : > { %s4772_s24 = scalar_lea.vmem [#allocation3], %s3914_s22  ;;  %s4346_s30 = smov 32   ;;  %vm3111_vm12 = vcmask 916480  }
  0x74   : > { %v1077_v16 = vld [vmem:[%s4772_s24 + $0x1] sm:$0xff]  ;;  %v4779_v18 = vld [vmem:[%s4772_s24 + $0x11] sm:$0xff]  ;;  %s4795_s11 = scalar_select %p1029_p0, %s4333_s16, 1 }
  0x75   : > { %v3578_v17 = vld [vmem:[%s4772_s24 + $0x120] sm:$0xff]  ;;  %1273 = vrot.lane.b32.xlu1 %v1077_v16, %s4343_s27  ;;  %v3579_v19 = vld [vmem:[%s4772_s24 + $0x130] sm:$0xff]  ;;  %s4347_s19 = smov 40   ;;  %s6196_s1 = sld [smem:[#allocation16_spill]] }
  0x76   : > { %1209 = vrot.lane.b32.xlu0 %v3578_v17, %s6185_s28  ;;  %v3595_v20 = vld [vmem:[%s4772_s24 + $0x250] sm:$0xff]  ;;  %v3594_v21 = vld [vmem:[%s4772_s24 + $0x240] sm:$0xff]  ;;  %s3915_s12 = smul.u32 72, %s4795_s11  ;;  %s6197_s0 = smov 8  }
  0x77   : > { %v3580_v22 = vld [vmem:[%s4772_s24 + $0x140] sm:$0xff]  ;;  %v3611_v25 = vld [vmem:[%s4772_s24 + $0x370] sm:$0xff]  ;;  %s4349_s22 = smov 56  }
  0x78   : > { %v3610_v23 = vld [vmem:[%s4772_s24 + $0x360] sm:$0xff]  ;;  %v4804_v27 = vld [vmem:[%s4772_s24 + $0x150] sm:$0xff] }
  0x79   : > { %1275 = vrot.lane.b32.xlu1 %v4779_v18, %s4343_s27  ;;  %v3626_v24 = vld [vmem:[%s4772_s24 + $0x241] sm:$0xff]  ;;  %v4815_v28 = vld [vmem:[%s4772_s24 + $0x10] sm:$0xff] }
  0x7a   : > { %1211 = vrot.lane.b32.xlu0 %v3579_v19, %s6185_s28  ;;  %v1079_v26 = vld [vmem:[%s4772_s24 + $0x21] sm:$0xff]  ;;  %v3627_v29 = vld [vmem:[%s4772_s24 + $0x251] sm:$0xff] }
  0x7b   : > { %v3596_v33 = vld [vmem:[%s4772_s24 + $0x260] sm:$0xff]  ;;  %v1080_v34 = vld [vmem:[%s4772_s24 + $0x31] sm:$0xff] }
  0x7c   : > { %v4830_v36 = vld [vmem:[%s4772_s24 + $0x20] sm:$0xff]  ;;  %v3597_v40 = vld [vmem:[%s4772_s24 + $0x270] sm:$0xff] }
  0x7d   : > { %1339 = vrot.lane.b32.xlu1 %v3595_v20, %s6183_s29  ;;  %v3612_v39 = vld [vmem:[%s4772_s24 + $0x380] sm:$0xff]  ;;  %v3613_v44 = vld [vmem:[%s4772_s24 + $0x390] sm:$0xff] }
  0x7e   : > { %1337 = vrot.lane.b32.xlu0 %v3594_v21, %s6183_s29  ;;  %s6187_s29 = smov 48   ;;  %v3582_v45 = vld [vmem:[%s4772_s24 + $0x160] sm:$0xff]  ;;  %v3583_v48 = vld [vmem:[%s4772_s24 + $0x170] sm:$0xff] }
  0x7f   : > { %v3628_v46 = vld [vmem:[%s4772_s24 + $0x261] sm:$0xff]  ;;  %v4859_v49 = vld [vmem:[%s4772_s24 + $0x30] sm:$0xff] }
  0x80   : > { %v1081_v47 = vld [vmem:[%s4772_s24 + $0x41] sm:$0xff]  ;;  %v3629_v50 = vld [vmem:[%s4772_s24 + $0x271] sm:$0xff] }
  0x81   : > { %1213 = vrot.lane.b32.xlu1 %v3580_v22, %s6185_s28  ;;  %s4809_s28 = scalar_lea.vmem %s6196_s1, %s3915_s12  ;;  %s6198_s12 = smov 24   ;;  %v3598_v51 = vld [vmem:[%s4772_s24 + $0x280] sm:$0xff]  ;;  %v1082_v52 = vld [vmem:[%s4772_s24 + $0x51] sm:$0xff] }
  0x82   : > { %1401 = vrot.lane.b32.xlu0 %v3610_v23, %s4346_s30  ;;  %v1849_v30 = vld [vmem:[%s4809_s28 + $0x40] sm:$0xff]  ;;  %v1848_v31 = vld [vmem:[%s4809_s28 + $0x38] sm:$0xff]  ;;  %v1847_v32 = vld [vmem:[%s4809_s28 + $0x30] sm:$0xff] }
  0x83   : > { %3808 = vmatprep.subr.mxu0 %v1849_v30  ;;  %v1846_v35 = vld [vmem:[%s4809_s28 + $0x28] sm:$0xff]  ;;  %v1845_v37 = vld [vmem:[%s4809_s28 + $0x20] sm:$0xff]  ;;  %v1844_v38 = vld [vmem:[%s4809_s28 + $0x18] sm:$0xff] }
  0x84   : > { %3809 = vmatpush3.msra.mxu0 %v1849_v30  ;;  %v1843_v41 = vld [vmem:[%s4809_s28 + $0x10] sm:$0xff]  ;;  %v1842_v42 = vld [vmem:[%s4809_s28 + $0x8] sm:$0xff]  ;;  %v1841_v43 = vld [vmem:[%s4809_s28] sm:$0xff]  ;;  %s6199_s28 = smov 48  }
  0x85   : > { %1465 = vrot.lane.b32.xlu1 %v3626_v24, %s4347_s19  ;;  %3810 = vmatprep.subr.mxu0 %v1848_v31  ;;  %v4870_v53 = vld [vmem:[%s4772_s24 + $0x40] sm:$0xff]  ;;  %v3599_v55 = vld [vmem:[%s4772_s24 + $0x290] sm:$0xff] }
  0x86   : > { %1403 = vrot.lane.b32.xlu0 %v3611_v25, %s4346_s30  ;;  %3811 = vmatpush3.msra.mxu0 %v1848_v31  ;;  %v3614_v54 = vld [vmem:[%s4772_s24 + $0x3a0] sm:$0xff]  ;;  %v3615_v56 = vld [vmem:[%s4772_s24 + $0x3b0] sm:$0xff] }
  0x87   : > { %3812 = vmatprep.subr.mxu0 %v1847_v32  ;;  %v3584_v57 = vld [vmem:[%s4772_s24 + $0x180] sm:$0xff]  ;;  %v3585_v60 = vld [vmem:[%s4772_s24 + $0x190] sm:$0xff] }
  0x88   : > { %3813 = vmatpush3.msra.mxu0 %v1847_v32  ;;  %v3630_v58 = vld [vmem:[%s4772_s24 + $0x281] sm:$0xff]  ;;  %v4894_v61 = vld [vmem:[%s4772_s24 + $0x50] sm:$0xff] }
  0x89   : > { %1277 = vrot.lane.b32.xlu1 %v1079_v26, %s4343_s27  ;;  %3814 = vmatprep.subr.mxu0 %v1846_v35  ;;  %v1083_v59 = vld [vmem:[%s4772_s24 + $0x61] sm:$0xff]  ;;  %v3631_v62 = vld [vmem:[%s4772_s24 + $0x291] sm:$0xff] }
  0x8a   : > { %1215 = vrot.lane.b32.xlu0 %v4804_v27, %s6197_s0  ;;  %3815 = vmatpush3.msra.mxu0 %v1846_v35  ;;  %v3600_v63 = vld [vmem:[%s4772_s24 + $0x2a0] sm:$0xff]  ;;  %v1084_v0 = vld [vmem:[%s4772_s24 + $0x71] sm:$0xff] }
  0x8b   : > { %3816 = vmatprep.subr.mxu0 %v1845_v37  ;;  %v4905_v1 = vld [vmem:[%s4772_s24 + $0x60] sm:$0xff]  ;;  %v3601_v3 = vld [vmem:[%s4772_s24 + $0x2b0] sm:$0xff] }
  0x8c   : > { %3817 = vmatpush3.msra.mxu0 %v1845_v37  ;;  %v3616_v2 = vld [vmem:[%s4772_s24 + $0x3c0] sm:$0xff]  ;;  %v3617_v5 = vld [vmem:[%s4772_s24 + $0x3d0] sm:$0xff] }
  0x8d   : > { %1529 = vrot.lane.b32.xlu1 %v4815_v28, %s6187_s29  ;;  %3818 = vmatprep.subr.mxu0 %v1844_v38  ;;  %v3632_v4 = vld [vmem:[%s4772_s24 + $0x2a1] sm:$0xff]  ;;  %v3633_v6 = vld [vmem:[%s4772_s24 + $0x2b1] sm:$0xff] }
  0x8e   : > { %1467 = vrot.lane.b32.xlu0 %v3627_v29, %s4347_s19  ;;  %3819 = vmatpush3.msra.mxu0 %v1844_v38  ;;  %v3649_v7 = vld [vmem:[%s4772_s24 + $0x80] sm:$0xff]  ;;  %v4925_v8 = vld [vmem:[%s4772_s24 + $0x70] sm:$0xff] }
  0x8f   : > { %3820 = vmatprep.subr.mxu0 %v1843_v41  ;;  %v3665_v11 = vld [vmem:[%s4772_s24 + $0x1a0] sm:$0xff]  ;;  %v3586_v14 = vld [vmem:[%s4772_s24 + $0x1b0] sm:$0xff] }
  0x90   : > { %3821 = vmatpush3.msra.mxu0 %v1843_v41  ;;  %v3587_v17 = vld [vmem:[%s4772_s24 + $0x1c0] sm:$0xff]  ;;  %v4964_v31 = vld [vmem:[%s4772_s24 + $0x3f0] sm:$0xff] }
  0x91   : > { %1341 = vrot.lane.b32.xlu1 %v3596_v33, %s6198_s12  ;;  %3822 = vmatprep.subr.mxu0 %v1842_v42  ;;  %v1086_v21 = vld [vmem:[%s4772_s24 + $0xa1] sm:$0xff]  ;;  %v3634_v35 = vld [vmem:[%s4772_s24 + $0x2d1] sm:$0xff] }
  0x92   : > { %1279 = vrot.lane.b32.xlu0 %v1080_v34, %s4343_s27  ;;  %3823 = vmatpush3.msra.mxu0 %v1842_v42  ;;  %v3603_v25 = vld [vmem:[%s4772_s24 + $0x2e0] sm:$0xff] }
  0x93   : > { %3824 = vmatprep.subr.mxu0 %v1841_v43  ;;  %v3619_v30 = vld [vmem:[%s4772_s24 + $0x400] sm:$0xff] }
  0x94   : > { %3825 = vmatpush3.msra.mxu0 %v1841_v43  ;;  %v4982_v41 = vld [vmem:[%s4772_s24 + $0xa0] sm:$0xff] }
  0x95   : > { %1593 = vrot.lane.b32.xlu1 %v3579_v19, %s4349_s22 }
  0x96   : > { %1531 = vrot.lane.b32.xlu0 %v4830_v36, %s6187_s29  ;;  %s6189_s29 = smov 64  }
  0x99   : > { %1405 = vrot.lane.b32.xlu1 %v3612_v39, %s4346_s30  ;;  %v1044_v39 = vld [vmem:[%s4772_s24] sm:$0xff] }
  0x9a   : > { %1343 = vrot.lane.b32.xlu0 %v3597_v40, %s6198_s12  ;;  %v4979_v40 = vld [vmem:[%s4772_s24 + $0xb0] sm:$0xff] }
  0x9d   : > { %1657 = vrot.lane.b32.xlu1 %v4779_v18, %s6189_s29  ;;  %v3681_v18 = vld [vmem:[%s4772_s24 + $0x81] sm:$0xff] }
  0x9e   : > { %1595 = vrot.lane.b32.xlu0 %v3580_v22, %s4349_s22  ;;  %v1085_v22 = vld [vmem:[%s4772_s24 + $0x91] sm:$0xff] }
  0xa1   : > { %1407 = vrot.lane.b32.xlu1 %v3613_v44, %s4346_s30 }
  0xa2   : > { %1217 = vrot.lane.b32.xlu0 %v3582_v45, %s6197_s0 }
  0xa5   : > { %1659 = vrot.lane.b32.xlu1 %v1079_v26, %s6189_s29  ;;  %v3602_v26 = vld [vmem:[%s4772_s24 + $0x2d0] sm:$0xff] }
  0xa6   : > { %1469 = vrot.lane.b32.xlu0 %v3628_v46, %s4347_s19  ;;  %v3588_v46 = vld [vmem:[%s4772_s24 + $0x1d0] sm:$0xff] }
  0xa9   : > { %1281 = vrot.lane.b32.xlu1 %v1081_v47, %s4343_s27 }
  0xaa   : > { %1219 = vrot.lane.b32.xlu0 %v3583_v48, %s6197_s0 }
  0xad   : > { %1533 = vrot.lane.b32.xlu1 %v4859_v49, %s6199_s28 }
  0xae   : > { %1471 = vrot.lane.b32.xlu0 %v3629_v50, %s4347_s19 }
  0xb1   : > { %1345 = vrot.lane.b32.xlu1 %v3598_v51, %s6198_s12 }
  0xb2   : > { %1283 = vrot.lane.b32.xlu0 %v1082_v52, %s4343_s27 }
  0xb5   : > { %1597 = vrot.lane.b32.xlu1 %v4804_v27, %s4349_s22 }
  0xb6   : > { %1535 = vrot.lane.b32.xlu0 %v4870_v53, %s6199_s28 }
  0xb9   : > { %1409 = vrot.lane.b32.xlu1 %v3614_v54, %s4346_s30 }
  0xba   : > { %1347 = vrot.lane.b32.xlu0 %v3599_v55, %s6198_s12 }
  0xbd   : > { %1661 = vrot.lane.b32.xlu1 %v1080_v34, %s6189_s29  ;;  %v3635_v34 = vld [vmem:[%s4772_s24 + $0x2e1] sm:$0xff] }
  0xbe   : > { %1599 = vrot.lane.b32.xlu0 %v3582_v45, %s4349_s22 }
  0xc1   : > { %1411 = vrot.lane.b32.xlu1 %v3615_v56, %s4346_s30 }
  0xc2   : > { %1221 = vrot.lane.b32.xlu0 %v3584_v57, %s6197_s0 }
  0xc5   : > { %1663 = vrot.lane.b32.xlu1 %v1081_v47, %s6189_s29 }
  0xc6   : > { %1473 = vrot.lane.b32.xlu0 %v3630_v58, %s4347_s19 }
  0xc9   : > { %1285 = vrot.lane.b32.xlu1 %v1083_v59, %s4343_s27 }
  0xca   : > { %1223 = vrot.lane.b32.xlu0 %v3585_v60, %s6197_s0 }
  0xcd   : > { %1537 = vrot.lane.b32.xlu1 %v4894_v61, %s6199_s28 }
  0xce   : > { %1475 = vrot.lane.b32.xlu0 %v3631_v62, %s4347_s19  ;;  %v1087_v62 = vld [vmem:[%s4772_s24 + $0xb1] sm:$0xff] }
  0xd1   : > { %1349 = vrot.lane.b32.xlu1 %v3600_v63, %s6198_s12  ;;  %v3589_v63 = vld [vmem:[%s4772_s24 + $0x1e0] sm:$0xff] }
  0xd2   : > { %1287 = vrot.lane.b32.xlu0 %v1084_v0, %s4343_s27 }
  0xd5   : > { %1601 = vrot.lane.b32.xlu1 %v3583_v48, %s4349_s22 }
  0xd6   : > { %1539 = vrot.lane.b32.xlu0 %v4905_v1, %s6199_s28 }
  0xd9   : > { %1413 = vrot.lane.b32.xlu1 %v3616_v2, %s4346_s30 }
  0xda   : > { %1351 = vrot.lane.b32.xlu0 %v3601_v3, %s6198_s12 }
  0xdd   : > { %1665 = vrot.lane.b32.xlu1 %v1082_v52, %s6189_s29 }
  0xde   : > { %1603 = vrot.lane.b32.xlu0 %v3584_v57, %s4349_s22 }
  0xe1   : > { %1477 = vrot.lane.b32.xlu1 %v3632_v4, %s4347_s19 }
  0xe2   : > { %1415 = vrot.lane.b32.xlu0 %v3617_v5, %s4346_s30 }
  0xe5   : > { %1479 = vrot.lane.b32.xlu1 %v3633_v6, %s4347_s19  ;;  %v1088_v6 = vld [vmem:[%s4772_s24 + $0xc1] sm:$0xff] }
  0xe6   : > { %1667 = vrot.lane.b32.xlu0 %v1083_v59, %s6189_s29 }
  0xe7   : > { %v1274_v9 = vpop.permute.xlu1 %1273 }
  0xe8   : > { %v1210_v10 = vpop.permute.xlu0 %1209 }
  0xe9   : > { %1543 = vrot.lane.b32.xlu1 %v3649_v7, %s6199_s28  ;;  %v1706_v42 = vsel %vm1705_vm0, %v1044_v39, %v1210_v10 }
  0xea   : > { %1541 = vrot.lane.b32.xlu0 %v4925_v8, %s6199_s28  ;;  %v1723_v45 = vsel %vm1722_vm1, %v1706_v42, %v1274_v9 }
  0xeb   : > { %v4931_v12 = vpop.permute.xlu1 %1275 }
  0xec   : > { %v4933_v13 = vpop.permute.xlu0 %1211 }
  0xed   : > { %1607 = vrot.lane.b32.xlu1 %v3665_v11, %s4349_s22  ;;  %v1707_v55 = vsel %vm1705_vm0, %v4815_v28, %v4933_v13  ;;  %v3604_v13 = vld [vmem:[%s4772_s24 + $0x2f0] sm:$0xff] }
  0xee   : > { %1605 = vrot.lane.b32.xlu0 %v3585_v60, %s4349_s22  ;;  %v1724_v60 = vsel %vm1722_vm1, %v1707_v55, %v4931_v12  ;;  %v3605_v12 = vld [vmem:[%s4772_s24 + $0x300] sm:$0xff] }
  0xef   : > { %v4938_v15 = vpop.permute.xlu1 %1339 }
  0xf0   : > { %v1338_v16 = vpop.permute.xlu0 %1337  ;;  %v1741_v28 = vsel %vm1739_vm2, %v1724_v60, %v4938_v15 }
  0xf1   : > { %1225 = vrot.lane.b32.xlu1 %v3586_v14, %s6197_s0  ;;  %v1740_v47 = vsel %vm1739_vm2, %v1723_v45, %v1338_v16  ;;  %v5040_v16 = vld [vmem:[%s4772_s24 + $0x420] sm:$0xff] }
  0xf2   : > { %1669 = vrot.lane.b32.xlu0 %v1084_v0, %s6189_s29 }
  0xf3   : > { %v4944_v19 = vpop.permute.xlu1 %1213 }
  0xf4   : > { %v1402_v20 = vpop.permute.xlu0 %1401 }
  0xf5   : > { %1227 = vrot.lane.b32.xlu1 %v3587_v17, %s6197_s0  ;;  %v1757_v51 = vsel %vm1756_vm3, %v1740_v47, %v1402_v20 }
  0xf6   : > { %1671 = vrot.lane.b32.xlu0 %v3681_v18, %s6189_s29 }
  0xf7   : > { %v1466_v23 = vpop.permute.xlu1 %1465 }
  0xf8   : > { %v4950_v24 = vpop.permute.xlu0 %1403  ;;  %v1774_v52 = vsel %vm1773_vm4, %v1757_v51, %v1466_v23  ;;  %v3591_v51 = vld [vmem:[%s4772_s24 + $0x200] sm:$0xff] }
  0xf9   : > { %1291 = vrot.lane.b32.xlu1 %v1086_v21, %s4343_s27  ;;  %v1758_v3 = vsel %vm1756_vm3, %v1741_v28, %v4950_v24 }
  0xfa   : > { %1289 = vrot.lane.b32.xlu0 %v1085_v22, %s4343_s27  ;;  %v3636_v22 = vld [vmem:[%s4772_s24 + $0x2f1] sm:$0xff] }
  0xfb   : > { %v4956_v27 = vpop.permute.xlu1 %1277 }
  0xfc   : > { %v4958_v29 = vpop.permute.xlu0 %1215 }
  0xfd   : > { %1355 = vrot.lane.b32.xlu1 %v3603_v25, %s6198_s12  ;;  %v5058_v25 = vld [vmem:[%s4772_s24 + $0xd0] sm:$0xff]  ;;  %v1709_v47 = vsel %vm1705_vm0, %v4859_v49, %v4958_v29 }
  0xfe   : > { %1353 = vrot.lane.b32.xlu0 %v3602_v26, %s6198_s12  ;;  %v5061_v26 = vld [vmem:[%s4772_s24 + $0xc0] sm:$0xff] }
  0xff   : > { %v1530_v32 = vpop.permute.xlu1 %1529 }
 0x100   : > { %v1468_v33 = vpop.permute.xlu0 %1467  ;;  %v1791_v54 = vsel %vm1790_vm5, %v1774_v52, %v1530_v32  ;;  %v3685_v52 = vld [vmem:[%s4772_s24 + $0xd1] sm:$0xff] }
 0x101   : > { %1419 = vrot.lane.b32.xlu1 %v3619_v30, %s4346_s30  ;;  %v1775_v4 = vsel %vm1773_vm4, %v1758_v3, %v1468_v33  ;;  %v1708_v33 = vsel %vm1705_vm0, %v4830_v36, %v4944_v19  ;;  %v5124_v3 = vld [vmem:[%s4772_s24 + $0x440] sm:$0xff] }
 0x102   : > { %1417 = vrot.lane.b32.xlu0 %v4964_v31, %s4346_s30 }
 0x103   : > { %v4971_v37 = vpop.permute.xlu1 %1341 }
 0x104   : > { %v4973_v38 = vpop.permute.xlu0 %1279 }
 0x105   : > { %1483 = vrot.lane.b32.xlu1 %v3635_v34, %s4347_s19  ;;  %v1725_v34 = vsel %vm1722_vm1, %v1708_v33, %v4956_v27 }
 0x106   : > { %1481 = vrot.lane.b32.xlu0 %v3634_v35, %s4347_s19  ;;  %v3669_v35 = vld [vmem:[%s4772_s24 + $0x1f0] sm:$0xff]  ;;  %v1742_v39 = vsel %vm1739_vm2, %v1725_v34, %v4971_v37 }
 0x107   : > { %v1594_v43 = vpop.permute.xlu1 %1593 }
 0x108   : > { %v1532_v44 = vpop.permute.xlu0 %1531  ;;  %v1808_v56 = vsel %vm1807_vm6, %v1791_v54, %v1594_v43 }
 0x109   : > { %1547 = vrot.lane.b32.xlu1 %v4979_v40, %s6199_s28  ;;  %v1792_v5 = vsel %vm1790_vm5, %v1775_v4, %v1532_v44  ;;  %v5127_v4 = vld [vmem:[%s4772_s24 + $0x430] sm:$0xff] }
 0x10a   : > { %1545 = vrot.lane.b32.xlu0 %v4982_v41, %s6199_s28 }
 0x10b   : > { %v4992_v48 = vpop.permute.xlu1 %1405 }
 0x10c   : > { %v4994_v50 = vpop.permute.xlu0 %1343  ;;  %v1759_v36 = vsel %vm1756_vm3, %v1742_v39, %v4992_v48  ;;  %v1726_v48 = vsel %vm1722_vm1, %v1709_v47, %v4973_v38  ;;  %v5193_v47 = vld [vmem:[%s4772_s24 + $0x101] sm:$0xff] }
 0x10d   : > { %1229 = vrot.lane.b32.xlu1 %v3588_v46, %s6197_s0  ;;  %v1743_v54 = vsel %vm1739_vm2, %v1726_v48, %v4994_v50  ;;  %v1090_v50 = vld [vmem:[%s4772_s24 + $0xe1] sm:$0xff] }
 0x10e   : > { %1609 = vrot.lane.b32.xlu0 %v3587_v17, %s4349_s22  ;;  %v5043_v17 = vld [vmem:[%s4772_s24 + $0x410] sm:$0xff] }
 0x10f   : > { %v1658_v57 = vpop.permute.xlu1 %1657 }
 0x110   : > { %v1596_v58 = vpop.permute.xlu0 %1595  ;;  %v1825_v59 = vsel %vm1824_vm7, %v1808_v56, %v1658_v57 }
 0x111   : > { %1673 = vrot.lane.b32.xlu1 %v1086_v21, %s6189_s29  ;;  %3826 = vmatprep.mubr.msk.f32.mxu0 %vm1850_vm8, %v1825_v59  ;;  %v1809_v7 = vsel %vm1807_vm6, %v1792_v5, %v1596_v58  ;;  %v3637_v21 = vld [vmem:[%s4772_s24 + $0x301] sm:$0xff] }
 0x112   : > { %1611 = vrot.lane.b32.xlu0 %v3588_v46, %s4349_s22 }
 0x113   : > { %v5015_v0 = vpop.permute.xlu1 %1407 }
 0x114   : > { %v5017_v2 = vpop.permute.xlu0 %1217  ;;  %v1760_v49 = vsel %vm1756_vm3, %v1743_v54, %v5015_v0  ;;  %v3609_v54 = vld [vmem:[%s4772_s24 + $0x340] sm:$0xff] }
 0x115   : > { %1293 = vrot.lane.b32.xlu1 %v1087_v62, %s4343_s27 }
 0x116   : > { %1231 = vrot.lane.b32.xlu0 %v3589_v63, %s6197_s0 }
 0x117   : > { %v1660_v9 = vpop.permute.xlu1 %1659 }
 0x118   : > { %v1470_v10 = vpop.permute.xlu0 %1469  ;;  %v1826_v11 = vsel %vm1824_vm7, %v1809_v7, %v1660_v9  ;;  %v3639_v7 = vld [vmem:[%s4772_s24 + $0x321] sm:$0xff]  ;;  %v3638_v9 = vld [vmem:[%s4772_s24 + $0x311] sm:$0xff] }
 0x119   : > { %1295 = vrot.lane.b32.xlu1 %v1088_v6, %s4343_s27  ;;  %3827 = vmatmul.mubr.msk.f32.vlgmr.msra.gmra.mxu0 %vm1850_vm8, %v1826_v11  ;;  %v1776_v19 = vsel %vm1773_vm4, %v1759_v36, %v1470_v10 }
 0x11a   : > { %1675 = vrot.lane.b32.xlu0 %v1087_v62, %s6189_s29  ;;  %v3607_v62 = vld [vmem:[%s4772_s24 + $0x320] sm:$0xff] }
 0x11b   : > { %v5033_v14 = vpop.permute.xlu1 %1281 }
 0x11c   : > { %v5035_v15 = vpop.permute.xlu0 %1219 }
 0x11d   : > { %1359 = vrot.lane.b32.xlu1 %v3605_v12, %s6198_s12  ;;  %v5140_v12 = vld [vmem:[%s4772_s24 + $0xf0] sm:$0xff] }
 0x11e   : > { %1357 = vrot.lane.b32.xlu0 %v3604_v13, %s6198_s12  ;;  %v5143_v13 = vld [vmem:[%s4772_s24 + $0xe0] sm:$0xff] }
 0x11f   : > { %v1534_v18 = vpop.permute.xlu1 %1533 }
 0x120   : > { %v1472_v20 = vpop.permute.xlu0 %1471  ;;  %v1793_v27 = vsel %vm1790_vm5, %v1776_v19, %v1534_v18  ;;  %v1711_v19 = vsel %vm1705_vm0, %v4894_v61, %v5035_v15 }
 0x121   : > { %1423 = vrot.lane.b32.xlu1 %v5040_v16, %s4346_s30  ;;  %v1777_v29 = vsel %vm1773_vm4, %v1760_v49, %v1472_v20 }
 0x122   : > { %1421 = vrot.lane.b32.xlu0 %v5043_v17, %s4346_s30 }
 0x123   : > { %v5051_v23 = vpop.permute.xlu1 %1345 }
 0x124   : > { %v5053_v24 = vpop.permute.xlu0 %1283 }
 0x125   : > { %1487 = vrot.lane.b32.xlu1 %v3637_v21, %s4347_s19  ;;  %v1710_v21 = vsel %vm1705_vm0, %v4870_v53, %v5017_v2 }
 0x126   : > { %1485 = vrot.lane.b32.xlu0 %v3636_v22, %s4347_s19  ;;  %v1727_v22 = vsel %vm1722_vm1, %v1710_v21, %v5033_v14 }
 0x127   : > { %v1598_v30 = vpop.permute.xlu1 %1597 }
 0x128   : > { %v1536_v32 = vpop.permute.xlu0 %1535  ;;  %v1810_v44 = vsel %vm1807_vm6, %v1793_v27, %v1598_v30  ;;  %v3671_v30 = vld [vmem:[%s4772_s24 + $0x210] sm:$0xff]  ;;  %v5176_v27 = vld [vmem:[%s4772_s24 + $0x220] sm:$0xff] }
 0x129   : > { %1551 = vrot.lane.b32.xlu1 %v5058_v25, %s6199_s28  ;;  %v1794_v38 = vsel %vm1790_vm5, %v1777_v29, %v1536_v32  ;;  %v1744_v32 = vsel %vm1739_vm2, %v1727_v22, %v5051_v23 }
 0x12a   : > { %1549 = vrot.lane.b32.xlu0 %v5061_v26, %s6199_s28 }
 0x12b   : > { %v5075_v42 = vpop.permute.xlu1 %1409 }
 0x12c   : > { %v5077_v43 = vpop.permute.xlu0 %1347  ;;  %v1761_v53 = vsel %vm1756_vm3, %v1744_v32, %v5075_v42  ;;  %v1728_v42 = vsel %vm1722_vm1, %v1711_v19, %v5053_v24  ;;  %v5334_v32 = vld [vmem:[%s4772_s24 + $0x100] sm:$0xff] }
 0x12d   : > { %1615 = vrot.lane.b32.xlu1 %v3669_v35, %s4349_s22 }
 0x12e   : > { %1613 = vrot.lane.b32.xlu0 %v3589_v63, %s4349_s22  ;;  %v3606_v63 = vld [vmem:[%s4772_s24 + $0x310] sm:$0xff] }
 0x12f   : > { %v1662_v37 = vpop.permute.xlu1 %1661 }
 0x130   : > { %v1600_v45 = vpop.permute.xlu0 %1599  ;;  %v1827_v46 = vsel %vm1824_vm7, %v1810_v44, %v1662_v37  ;;  %v3687_v44 = vld [vmem:[%s4772_s24 + $0xf1] sm:$0xff]  ;;  %v1745_v37 = vsel %vm1739_vm2, %v1728_v42, %v5077_v43 }
 0x131   : > { %1233 = vrot.lane.b32.xlu1 %v3669_v35, %s6197_s0  ;;  %3829 = vmatprep.mubr.msk.f32.mxu0 %vm1850_vm8, %v1827_v46  ;;  %v1811_v57 = vsel %vm1807_vm6, %v1794_v38, %v1600_v45 }
 0x132   : > { %1677 = vrot.lane.b32.xlu0 %v1088_v6, %s6189_s29 }
 0x133   : > { %v5099_v55 = vpop.permute.xlu1 %1411 }
 0x134   : > { %v5101_v56 = vpop.permute.xlu0 %1221  ;;  %v1762_v15 = vsel %vm1756_vm3, %v1745_v37, %v5099_v55  ;;  %v3608_v55 = vld [vmem:[%s4772_s24 + $0x330] sm:$0xff] }
 0x135   : > { %1235 = vrot.lane.b32.xlu1 %v3591_v51, %s6197_s0  ;;  %v1712_v38 = vsel %vm1705_vm0, %v4905_v1, %v5101_v56  ;;  %v4351_v1 = vmov 0.0  }
 0x136   : > { %1679 = vrot.lane.b32.xlu0 %v3685_v52, %s6189_s29  ;;  %2111 = vst.msk [vmem:[#allocation2 + $0x20] sm:$0xff] %vm1722_vm1, %v4351_v1  ;;  %2106 = vst.msk [vmem:[#allocation2] sm:$0xff] %vm1722_vm1, %v4351_v1  ;;  %3194 = vmatprep.subr.mxu0 %v4351_v1 }
 0x137   : > { %v1664_v58 = vpop.permute.xlu1 %1663  ;;  %2112 = vst.msk [vmem:[#allocation2 + $0x28] sm:$0x3] %vm2107_vm9, %v4351_v1  ;;  %2108 = vst.msk [vmem:[#allocation2 + $0x8] sm:$0x3] %vm2107_vm9, %v4351_v1 }
 0x138   : > { %v1474_v59 = vpop.permute.xlu0 %1473  ;;  %v1828_v60 = vsel %vm1824_vm7, %v1811_v57, %v1664_v58  ;;  %v5215_v57 = vld [vmem:[%s4772_s24 + $0x460] sm:$0xff]  ;;  %v5218_v58 = vld [vmem:[%s4772_s24 + $0x450] sm:$0xff]  ;;  %2109 = vst.msk [vmem:[#allocation2 + $0x10] sm:$0xff] %vm1722_vm1, %v4351_v1  ;;  %2113 = vst.msk [vmem:[#allocation2 + $0x30] sm:$0xff] %vm1722_vm1, %v4351_v1 }
 0x139   : > { %1299 = vrot.lane.b32.xlu1 %v1090_v50, %s4343_s27  ;;  %3830 = vmatmul.mubr.msk.f32.gmra.mxu0 %vm1850_vm8, %v1828_v60  ;;  %v1778_v2 = vsel %vm1773_vm4, %v1761_v53, %v1474_v59  ;;  %2110 = vst.msk [vmem:[#allocation2 + $0x18] sm:$0x3] %vm2107_vm9, %v4351_v1  ;;  %2114 = vst.msk [vmem:[#allocation2 + $0x38] sm:$0x3] %vm2107_vm9, %v4351_v1 }
 0x13a   : > { %1297 = vrot.lane.b32.xlu0 %v3685_v52, %s4343_s27  ;;  %2115 = vst.msk [vmem:[#allocation2 + $0x40] sm:$0xff] %vm1722_vm1, %v4351_v1  ;;  %2117 = vst.msk [vmem:[#allocation2 + $0x50] sm:$0xff] %vm1722_vm1, %v4351_v1 }
 0x13b   : > { %v5117_v28 = vpop.permute.xlu1 %1285  ;;  %2116 = vst.msk [vmem:[#allocation2 + $0x48] sm:$0x3] %vm2107_vm9, %v4351_v1  ;;  %2118 = vst.msk [vmem:[#allocation2 + $0x58] sm:$0x3] %vm2107_vm9, %v4351_v1 }
 0x13c   : > { %v5119_v0 = vpop.permute.xlu0 %1223  ;;  %2119 = vst.msk [vmem:[#allocation2 + $0x60] sm:$0xff] %vm1722_vm1, %v4351_v1  ;;  %2121 = vst.msk [vmem:[#allocation2 + $0x70] sm:$0xff] %vm1722_vm1, %v4351_v1 }
 0x13d   : > { %1363 = vrot.lane.b32.xlu1 %v3607_v62, %s6198_s12  ;;  %2120 = vst.msk [vmem:[#allocation2 + $0x68] sm:$0x3] %vm2107_vm9, %v4351_v1  ;;  %2122 = vst.msk [vmem:[#allocation2 + $0x78] sm:$0x3] %vm2107_vm9, %v4351_v1  ;;  %v1713_v56 = vsel %vm1705_vm0, %v4925_v8, %v5119_v0 }
 0x13e   : > { %1361 = vrot.lane.b32.xlu0 %v3606_v63, %s6198_s12  ;;  %2123 = vst.msk [vmem:[#allocation2 + $0x80] sm:$0xff] %vm1722_vm1, %v4351_v1  ;;  %2125 = vst.msk [vmem:[#allocation2 + $0x90] sm:$0xff] %vm1722_vm1, %v4351_v1 }
 0x13f   : > { %v1538_v5 = vpop.permute.xlu1 %1537  ;;  %2124 = vst.msk [vmem:[#allocation2 + $0x88] sm:$0x3] %vm2107_vm9, %v4351_v1  ;;  %2126 = vst.msk [vmem:[#allocation2 + $0x98] sm:$0x3] %vm2107_vm9, %v4351_v1 }
 0x140   : > { %v1476_v6 = vpop.permute.xlu0 %1475  ;;  %v1795_v14 = vsel %vm1790_vm5, %v1778_v2, %v1538_v5  ;;  %2127 = vst.msk [vmem:[#allocation2 + $0xa0] sm:$0xff] %vm1722_vm1, %v4351_v1  ;;  %2129 = vst.msk [vmem:[#allocation2 + $0xb0] sm:$0xff] %vm1722_vm1, %v4351_v1 }
 0x141   : > { %1427 = vrot.lane.b32.xlu1 %v5124_v3, %s4346_s30  ;;  %v1779_v46 = vsel %vm1773_vm4, %v1762_v15, %v1476_v6  ;;  %2128 = vst.msk [vmem:[#allocation2 + $0xa8] sm:$0x3] %vm2107_vm9, %v4351_v1  ;;  %2130 = vst.msk [vmem:[#allocation2 + $0xb8] sm:$0x3] %vm2107_vm9, %v4351_v1 }
 0x142   : > { %1425 = vrot.lane.b32.xlu0 %v5127_v4, %s4346_s30  ;;  %2131 = vst.msk [vmem:[#allocation2 + $0xc0] sm:$0xff] %vm1722_vm1, %v4351_v1  ;;  %2133 = vst.msk [vmem:[#allocation2 + $0xd0] sm:$0xff] %vm1722_vm1, %v4351_v1 }
 0x143   : > { %v1350_v10 = vpop.permute.xlu1 %1349  ;;  %2132 = vst.msk [vmem:[#allocation2 + $0xc8] sm:$0x3] %vm2107_vm9, %v4351_v1  ;;  %2134 = vst.msk [vmem:[#allocation2 + $0xd8] sm:$0x3] %vm2107_vm9, %v4351_v1 }
 0x144   : > { %v5135_v11 = vpop.permute.xlu0 %1287  ;;  %2135 = vst.msk [vmem:[#allocation2 + $0xe0] sm:$0xff] %vm1722_vm1, %v4351_v1  ;;  %2137 = vst.msk [vmem:[#allocation2 + $0xf0] sm:$0xff] %vm1722_vm1, %v4351_v1 }
 0x145   : > { %1491 = vrot.lane.b32.xlu1 %v3639_v7, %s4347_s19  ;;  %2136 = vst.msk [vmem:[#allocation2 + $0xe8] sm:$0x3] %vm2107_vm9, %v4351_v1  ;;  %2138 = vst.msk [vmem:[#allocation2 + $0xf8] sm:$0x3] %vm2107_vm9, %v4351_v1  ;;  %v1730_v5 = vsel %vm1722_vm1, %v1713_v56, %v5135_v11  ;;  %v3641_v7 = vld [vmem:[%s4772_s24 + $0x341] sm:$0xff] }
 0x146   : > { %1489 = vrot.lane.b32.xlu0 %v3638_v9, %s4347_s19  ;;  %2139 = vst.msk [vmem:[#allocation2 + $0x100] sm:$0xff] %vm1722_vm1, %v4351_v1  ;;  %2141 = vst.msk [vmem:[#allocation2 + $0x110] sm:$0xff] %vm1722_vm1, %v4351_v1  ;;  %v3640_v9 = vld [vmem:[%s4772_s24 + $0x331] sm:$0xff] }
 0x147   : > { %v1602_v18 = vpop.permute.xlu1 %1601  ;;  %2140 = vst.msk [vmem:[#allocation2 + $0x108] sm:$0x3] %vm2107_vm9, %v4351_v1  ;;  %2142 = vst.msk [vmem:[#allocation2 + $0x118] sm:$0x3] %vm2107_vm9, %v4351_v1 }
 0x148   : > { %v1540_v20 = vpop.permute.xlu0 %1539  ;;  %v1812_v35 = vsel %vm1807_vm6, %v1795_v14, %v1602_v18  ;;  %2143 = vst.msk [vmem:[#allocation2 + $0x120] sm:$0xff] %vm1722_vm1, %v4351_v1  ;;  %2145 = vst.msk [vmem:[#allocation2 + $0x130] sm:$0xff] %vm1722_vm1, %v4351_v1  ;;  %v3673_v14 = vld [vmem:[%s4772_s24 + $0x230] sm:$0xff] }
 0x149   : > { %1555 = vrot.lane.b32.xlu1 %v5140_v12, %s6199_s28  ;;  %v1796_v24 = vsel %vm1790_vm5, %v1779_v46, %v1540_v20  ;;  %2144 = vst.msk [vmem:[#allocation2 + $0x128] sm:$0x3] %vm2107_vm9, %v4351_v1  ;;  %2146 = vst.msk [vmem:[#allocation2 + $0x138] sm:$0x3] %vm2107_vm9, %v4351_v1 }
 0x14a   : > { %1553 = vrot.lane.b32.xlu0 %v5143_v13, %s6199_s28 }
 0x14b   : > { %v1414_v33 = vpop.permute.xlu1 %1413 }
 0x14c   : > { %v5157_v34 = vpop.permute.xlu0 %1351 }
 0x14d   : > { %1619 = vrot.lane.b32.xlu1 %v3671_v30, %s4349_s22  ;;  %v1747_v8 = vsel %vm1739_vm2, %v1730_v5, %v5157_v34 }
 0x14e   : > { %1617 = vrot.lane.b32.xlu0 %v3591_v51, %s4349_s22 }
 0x14f   : > { %v1666_v39 = vpop.permute.xlu1 %1665 }
 0x150   : > { %v1604_v23 = vpop.permute.xlu0 %1603  ;;  %v1829_v36 = vsel %vm1824_vm7, %v1812_v35, %v1666_v39 }
 0x151   : > { %1237 = vrot.lane.b32.xlu1 %v3671_v30, %s6197_s0  ;;  %3832 = vmatprep.mubr.msk.f32.mxu0 %vm1850_vm8, %v1829_v36  ;;  %v1813_v43 = vsel %vm1807_vm6, %v1796_v24, %v1604_v23  ;;  %v3657_v30 = vld [vmem:[%s4772_s24 + $0x110] sm:$0xff] }
 0x152   : > { %1681 = vrot.lane.b32.xlu0 %v1090_v50, %s6189_s29  ;;  %v1729_v50 = vsel %vm1722_vm1, %v1712_v38, %v5117_v28  ;;  %v3689_v23 = vld [vmem:[%s4772_s24 + $0x111] sm:$0xff] }
 0x153   : > { %v5181_v45 = vpop.permute.xlu1 %1477  ;;  %v1746_v59 = vsel %vm1739_vm2, %v1729_v50, %v1350_v10 }
 0x154   : > { %v5183_v61 = vpop.permute.xlu0 %1415  ;;  %v1763_v63 = vsel %vm1756_vm3, %v1746_v59, %v1414_v33 }
 0x155   : > { %1239 = vrot.lane.b32.xlu1 %v5176_v27, %s6197_s0  ;;  %v1780_v28 = vsel %vm1773_vm4, %v1763_v63, %v5181_v45  ;;  %v1764_v20 = vsel %vm1756_vm3, %v1747_v8, %v5183_v61  ;;  %v1052_v61 = vld [vmem:[%s4772_s24 + $0x90] sm:$0xff] }
 0x156   : > { %1683 = vrot.lane.b32.xlu0 %v3687_v44, %s6189_s29 }
 0x157   : > { %v5196_v48 = vpop.permute.xlu1 %1479 }
 0x158   : > { %v1668_v51 = vpop.permute.xlu0 %1667  ;;  %v1781_v11 = vsel %vm1773_vm4, %v1764_v20, %v5196_v48 }
 0x159   : > { %v1830_v52 = vsel %vm1824_vm7, %v1813_v43, %v1668_v51  ;;  %1303 = vrot.lane.b32.xlu1 %v5193_v47, %s4343_s27 }
 0x15a   : > { %1301 = vrot.lane.b32.xlu0 %v3687_v44, %s4343_s27  ;;  %3833 = vmatmul.mubr.msk.f32.gmra.mxu0 %vm1850_vm8, %v1830_v52 }
 0x15b   : > { %v5205_v49 = vpop.permute.xlu1 %1543 }
 0x15c   : > { %v1542_v29 = vpop.permute.xlu0 %1541  ;;  %v1798_v22 = vsel %vm1790_vm5, %v1781_v11, %v5205_v49 }
 0x15d   : > { %1367 = vrot.lane.b32.xlu1 %v3609_v54, %s6198_s12  ;;  %v1797_v6 = vsel %vm1790_vm5, %v1780_v28, %v1542_v29 }
 0x15e   : > { %1365 = vrot.lane.b32.xlu0 %v3608_v55, %s6198_s12  ;;  %s4353_s12 = smov 96  }
 0x15f   : > { %v5221_v60 = vpop.permute.xlu1 %1607 }
 0x160   : > { %v1606_v62 = vpop.permute.xlu0 %1605  ;;  %v1815_v33 = vsel %vm1807_vm6, %v1798_v22, %v5221_v60  ;;  %v3708_v22 = vld [vmem:[%s4772_s24 + $0x360] sm:$0xff] }
 0x161   : > { %1431 = vrot.lane.b32.xlu1 %v5215_v57, %s4346_s30  ;;  %v1814_v0 = vsel %vm1807_vm6, %v1797_v6, %v1606_v62  ;;  %3852 = vmatprep.mubr.msk.f32.mxu1 %vm1705_vm0, %v3708_v22 }
 0x162   : > { %1429 = vrot.lane.b32.xlu0 %v5218_v58, %s4346_s30 }
 0x163   : > { %v1226_v10 = vpop.permute.xlu1 %1225 }
 0x164   : > { %v1670_v18 = vpop.permute.xlu0 %1669  ;;  %v1714_v24 = vsel %vm1705_vm0, %v1052_v61, %v1226_v10 }
 0x165   : > { %v1831_v21 = vsel %vm1824_vm7, %v1814_v0, %v1670_v18  ;;  %1495 = vrot.lane.b32.xlu1 %v3641_v7, %s4347_s19 }
 0x166   : > { %1493 = vrot.lane.b32.xlu0 %v3640_v9, %s4347_s19  ;;  %3835 = vmatprep.mubr.msk.f32.mxu0 %vm1850_vm8, %v1831_v21  ;;  %s3577_s19 = sshll.u32 %s4795_s11, 3 }
 0x167   : > { %v1228_v34 = vpop.permute.xlu1 %1227 }
 0x168   : > { %v1672_v53 = vpop.permute.xlu0 %1671  ;;  %v1715_v50 = vsel %vm1705_vm0, %v4982_v41, %v1228_v34  ;;  %v3709_v34 = vld [vmem:[%s4772_s24 + $0x370] sm:$0xff] }
 0x169   : > { %v1832_v2 = vsel %vm1824_vm7, %v1815_v33, %v1672_v53  ;;  %1559 = vrot.lane.b32.xlu1 %v3657_v30, %s6199_s28 }
 0x16a   : > { %1557 = vrot.lane.b32.xlu0 %v5334_v32, %s6199_s28  ;;  %3836 = vmatmul.mubr.msk.f32.gmra.mxu0 %vm1850_vm8, %v1832_v2 }
 0x16b   : > { %v1292_v35 = vpop.permute.xlu1 %1291 }
 0x16c   : > { %v1290_v39 = vpop.permute.xlu0 %1289  ;;  %v1732_v59 = vsel %vm1722_vm1, %v1715_v50, %v1292_v35 }
 0x16d   : > { %1623 = vrot.lane.b32.xlu1 %v3673_v14, %s4349_s22  ;;  %v1731_v43 = vsel %vm1722_vm1, %v1714_v24, %v1290_v39  ;;  %v3710_v14 = vld [vmem:[%s4772_s24 + $0x380] sm:$0xff] }
 0x16e   : > { %1621 = vrot.lane.b32.xlu0 %v5176_v27, %s4349_s22  ;;  %s3916_s22 = smul.u32 144, %s4795_s11  ;;  %s4352_s11 = smov 112  }
 0x16f   : > { %v1356_v36 = vpop.permute.xlu1 %1355 }
 0x170   : > { %v1354_v19 = vpop.permute.xlu0 %1353  ;;  %v1749_v60 = vsel %vm1739_vm2, %v1732_v59, %v1356_v36  ;;  %v3711_v36 = vld [vmem:[%s4772_s24 + $0x390] sm:$0xff]  ;;  %v3717_v59 = vld [vmem:[%s4772_s24 + $0x400] sm:$0xff] }
 0x171   : > { %1687 = vrot.lane.b32.xlu1 %v3689_v23, %s6189_s29  ;;  %v1748_v27 = vsel %vm1739_vm2, %v1731_v43, %v1354_v19  ;;  %v3713_v43 = vld [vmem:[%s4772_s24 + $0x3b0] sm:$0xff] }
 0x172   : > { %1685 = vrot.lane.b32.xlu0 %v5193_v47, %s6189_s29  ;;  %s1042_s29 = scalar_lea.vmem %s6179_s7, %s3577_s19  ;;  %s5498_s19 = scalar_lea.vmem %s6176_s4, %s3916_s22 }
 0x173   : > { %v1420_v42 = vpop.permute.xlu1 %1419  ;;  %v2180_v11 = vld [vmem:[%s1042_s29] sm:$0xff]  ;;  %s6200_s22 = smov 64   ;;  %s3765_s29 = sshll.u32 %s4333_s16, 11 }
 0x174   : > { %v1418_v44 = vpop.permute.xlu0 %1417  ;;  %v1766_v56 = vsel %vm1756_vm3, %v1749_v60, %v1420_v42  ;;  %3850 = vmatprep.subr.mxu1 %v2180_v11 }
 0x175   : > { %v1765_v52 = vsel %vm1756_vm3, %v1748_v27, %v1418_v44  ;;  %3851 = vmatpush3.msra.mxu1 %v2180_v11  ;;  %v3714_v27 = vld [vmem:[%s4772_s24 + $0x3c0] sm:$0xff] }
 0x176   : > { %3853 = vmatmul.mubr.msk.f32.vlgmr.msra.gmra.mxu1 %vm1705_vm0, %v3709_v34  ;;  %3876 = vmatprep.subr.mxu1 %v4351_v1 }
 0x177   : > { %v1484_v37 = vpop.permute.xlu1 %1483  ;;  %3855 = vmatprep.mubr.msk.f32.mxu1 %vm1705_vm0, %v3710_v14 }
 0x178   : > { %v1482_v45 = vpop.permute.xlu0 %1481  ;;  %v1783_v28 = vsel %vm1773_vm4, %v1766_v56, %v1484_v37 }
 0x179   : > { %v1782_v54 = vsel %vm1773_vm4, %v1765_v52, %v1482_v45  ;;  %v3712_v45 = vld [vmem:[%s4772_s24 + $0x3a0] sm:$0xff]  ;;  %v3715_v52 = vld [vmem:[%s4772_s24 + $0x3d0] sm:$0xff]  ;;  %s4354_s24 = smov 80  }
 0x17a   : > { %3856 = vmatmul.mubr.msk.f32.gmra.mxu1 %vm1705_vm0, %v3711_v36 }
 0x17b   : > { %v1548_v15 = vpop.permute.xlu1 %1547  ;;  %3858 = vmatprep.mubr.msk.f32.mxu1 %vm1705_vm0, %v3712_v45 }
 0x17c   : > { %v1546_v46 = vpop.permute.xlu0 %1545  ;;  %v1800_v5 = vsel %vm1790_vm5, %v1783_v28, %v1548_v15 }
 0x17d   : > { %v1799_v47 = vsel %vm1790_vm5, %v1782_v54, %v1546_v46 }
 0x17e   : > { %3859 = vmatmul.mubr.msk.f32.gmra.mxu1 %vm1705_vm0, %v3713_v43 }
 0x17f   : > { %v1230_v48 = vpop.permute.xlu1 %1229  ;;  %3861 = vmatprep.mubr.msk.f32.mxu1 %vm1705_vm0, %v3714_v27 }
 0x180   : > { %v1610_v51 = vpop.permute.xlu0 %1609  ;;  %v1716_v53 = vsel %vm1705_vm0, %v4979_v40, %v1230_v48 }
 0x181   : > { %v1816_v55 = vsel %vm1807_vm6, %v1799_v47, %v1610_v51 }
 0x182   : > { %3862 = vmatmul.mubr.msk.f32.gmra.mxu1 %vm1705_vm0, %v3715_v52 }
 0x183   : > { %v1674_v49 = vpop.permute.xlu1 %1673  ;;  %3864 = vmatprep.mubr.msk.f32.mxu1 %vm1705_vm0, %v4964_v31 }
 0x184   : > { %v1612_v29 = vpop.permute.xlu0 %1611  ;;  %v1833_v38 = vsel %vm1824_vm7, %v1816_v55, %v1674_v49 }
 0x185   : > { %3838 = vmatprep.mubr.msk.f32.mxu0 %vm1850_vm8, %v1833_v38  ;;  %v1817_v6 = vsel %vm1807_vm6, %v1800_v5, %v1612_v29 }
 0x186   : > { %3865 = vmatmul.mubr.msk.f32.gmra.mxu1 %vm1705_vm0, %v3717_v59 }
 0x187   : > { %v1294_v62 = vpop.permute.xlu1 %1293  ;;  %3867 = vmatprep.mubr.msk.f32.mxu1 %vm1705_vm0, %v5043_v17 }
 0x188   : > { %v1232_v63 = vpop.permute.xlu0 %1231  ;;  %v1733_v2 = vsel %vm1722_vm1, %v1716_v53, %v1294_v62 }
 0x189   : > { %v1717_v42 = vsel %vm1705_vm0, %v5061_v26, %v1232_v63 }
 0x18a   : > { %3868 = vmatmul.mubr.msk.f32.gmra.mxu1 %vm1705_vm0, %v5040_v16 }
 0x18b   : > { %v1296_v7 = vpop.permute.xlu1 %1295  ;;  %3870 = vmatprep.mubr.msk.f32.mxu1 %vm1705_vm0, %v5127_v4 }
 0x18c   : > { %v1676_v41 = vpop.permute.xlu0 %1675  ;;  %v1734_v44 = vsel %vm1722_vm1, %v1717_v42, %v1296_v7  ;;  %v5451_v42 = vld [vmem:[%s6174_s2] ss:$0 sm:$0xff] }
 0x18d   : > { %v1834_v9 = vsel %vm1824_vm7, %v1817_v6, %v1676_v41 }
 0x18e   : > { %3839 = vmatmul.mubr.msk.f32.gmra.mxu0 %vm1850_vm8, %v1834_v9  ;;  %3871 = vmatmul.mubr.msk.f32.gmra.mxu1 %vm1705_vm0, %v5124_v3 }
 0x18f   : > { %v1360_v8 = vpop.permute.xlu1 %1359  ;;  %3873 = vmatprep.mubr.msk.f32.mxu1 %vm1705_vm0, %v5218_v58 }
 0x190   : > { %v1358_v0 = vpop.permute.xlu0 %1357  ;;  %v1751_v61 = vsel %vm1739_vm2, %v1734_v44, %v1360_v8  ;;  %v5456_v44 = vld [vmem:[%s6175_s3] ss:$0 sm:$0xff] }
 0x191   : > { %v1750_v35 = vsel %vm1739_vm2, %v1733_v2, %v1358_v0 }
 0x192   : > { %3874 = vmatmul.mubr.msk.f32.gmra.mxu1 %vm1705_vm0, %v5215_v57 }
 0x193   : > { %v1424_v10 = vpop.permute.xlu1 %1423 }
 0x194   : > { %v1422_v18 = vpop.permute.xlu0 %1421  ;;  %v1768_v26 = vsel %vm1756_vm3, %v1751_v61, %v1424_v10 }
 0x195   : > { %v1767_v19 = vsel %vm1756_vm3, %v1750_v35, %v1422_v18 }
 0x197   : > { %v1488_v20 = vpop.permute.xlu1 %1487 }
 0x198   : > { %v1486_v21 = vpop.permute.xlu0 %1485  ;;  %v1785_v51 = vsel %vm1773_vm4, %v1768_v26, %v1488_v20 }
 0x199   : > { %v1784_v40 = vsel %vm1773_vm4, %v1767_v19, %v1486_v21 }
 0x19b   : > { %v1552_v30 = vpop.permute.xlu1 %1551 }
 0x19c   : > { %v1550_v33 = vpop.permute.xlu0 %1549  ;;  %v1802_v54 = vsel %vm1790_vm5, %v1785_v51, %v1552_v30 }
 0x19d   : > { %v1801_v37 = vsel %vm1790_vm5, %v1784_v40, %v1550_v33 }
 0x19f   : > { %v1616_v39 = vpop.permute.xlu1 %1615 }
 0x1a0   : > { %v1614_v23 = vpop.permute.xlu0 %1613  ;;  %v1819_v47 = vsel %vm1807_vm6, %v1802_v54, %v1616_v39 }
 0x1a1   : > { %v1818_v15 = vsel %vm1807_vm6, %v1801_v37, %v1614_v23 }
 0x1a3   : > { %v1234_v46 = vpop.permute.xlu1 %1233 }
 0x1a4   : > { %v1678_v24 = vpop.permute.xlu0 %1677  ;;  %v1718_v16 = vsel %vm1705_vm0, %v5058_v25, %v1234_v46 }
 0x1a5   : > { %v1835_v48 = vsel %vm1824_vm7, %v1818_v15, %v1678_v24 }
 0x1a6   : > { %3841 = vmatprep.mubr.msk.f32.mxu0 %vm1850_vm8, %v1835_v48 }
 0x1a7   : > { %v1236_v55 = vpop.permute.xlu1 %1235 }
 0x1a8   : > { %v1680_v49 = vpop.permute.xlu0 %1679  ;;  %v1719_v58 = vsel %vm1705_vm0, %v5143_v13, %v1236_v55 }
 0x1a9   : > { %v1836_v29 = vsel %vm1824_vm7, %v1819_v47, %v1680_v49 }
 0x1aa   : > { %3842 = vmatmul.mubr.msk.f32.gmra.mxu0 %vm1850_vm8, %v1836_v29 }
 0x1ab   : > { %v1300_v38 = vpop.permute.xlu1 %1299 }
 0x1ac   : > { %v1298_v50 = vpop.permute.xlu0 %1297  ;;  %v1736_v57 = vsel %vm1722_vm1, %v1719_v58, %v1300_v38 }
 0x1ad   : > { %v1735_v4 = vsel %vm1722_vm1, %v1718_v16, %v1298_v50 }
 0x1af   : > { %v1364_v60 = vpop.permute.xlu1 %1363 }
 0x1b0   : > { %v1362_v62 = vpop.permute.xlu0 %1361  ;;  %v1753_v0 = vsel %vm1739_vm2, %v1736_v57, %v1364_v60 }
 0x1b1   : > { %v1752_v6 = vsel %vm1739_vm2, %v1735_v4, %v1362_v62 }
 0x1b3   : > { %v1428_v63 = vpop.permute.xlu1 %1427 }
 0x1b4   : > { %v1426_v56 = vpop.permute.xlu0 %1425  ;;  %v1770_v20 = vsel %vm1756_vm3, %v1753_v0, %v1428_v63  ;;  %v3142_v0 = vld [vmem:[%s5498_s19 + $0x70] sm:$0xff] }
 0x1b5   : > { %v1769_v3 = vsel %vm1756_vm3, %v1752_v6, %v1426_v56 }
 0x1b7   : > { %v1492_v31 = vpop.permute.xlu1 %1491 }
 0x1b8   : > { %v1490_v28 = vpop.permute.xlu0 %1489  ;;  %v1787_v11 = vsel %vm1773_vm4, %v1770_v20, %v1492_v31 }
 0x1b9   : > { %v1786_v9 = vsel %vm1773_vm4, %v1769_v3, %v1490_v28 }
 0x1bb   : > { %v1556_v17 = vpop.permute.xlu1 %1555 }
 0x1bc   : > { %v1554_v5 = vpop.permute.xlu0 %1553  ;;  %v1804_v13 = vsel %vm1790_vm5, %v1787_v11, %v1556_v17  ;;  %v3140_v11 = vld [vmem:[%s5498_s19 + $0x60] sm:$0xff] }
 0x1bd   : > { %v1803_v8 = vsel %vm1790_vm5, %v1786_v9, %v1554_v5 }
 0x1bf   : > { %v1620_v7 = vpop.permute.xlu1 %1619 }
 0x1c0   : > { %v1618_v41 = vpop.permute.xlu0 %1617  ;;  %v1821_v22 = vsel %vm1807_vm6, %v1804_v13, %v1620_v7 }
 0x1c1   : > { %v1820_v25 = vsel %vm1807_vm6, %v1803_v8, %v1618_v41  ;;  %v3143_v8 = vld [vmem:[%s5498_s19 + $0x78] sm:$0xff] }
 0x1c2   : > { %3894 = vmatpush1.msra.mxu1 %v3143_v8  ;;  %3195 = vmatpush1.msra.mxu0 %v3143_v8 }
 0x1c3   : > { %v1238_v10 = vpop.permute.xlu1 %1237  ;;  %3877 = vmatprep.subr.mxu1 %v4351_v1  ;;  %3196 = vmatprep.subr.mxu0 %v4351_v1 }
 0x1c4   : > { %v1682_v18 = vpop.permute.xlu0 %1681  ;;  %v1720_v46 = vsel %vm1705_vm0, %v5140_v12, %v1238_v10  ;;  %3895 = vmatpush1.msra.mxu1 %v3142_v0  ;;  %3197 = vmatpush1.msra.mxu0 %v3142_v0 }
 0x1c5   : > { %v1837_v21 = vsel %vm1824_vm7, %v1820_v25, %v1682_v18  ;;  %3878 = vmatprep.subr.mxu1 %v4351_v1  ;;  %3198 = vmatprep.subr.mxu0 %v4351_v1 }
 0x1c6   : > { %3844 = vmatprep.mubr.msk.f32.mxu0 %vm1850_vm8, %v1837_v21  ;;  %v3141_v21 = vld [vmem:[%s5498_s19 + $0x68] sm:$0xff] }
 0x1c7   : > { %v1240_v30 = vpop.permute.xlu1 %1239  ;;  %3896 = vmatpush1.msra.mxu1 %v3141_v21  ;;  %3199 = vmatpush1.msra.mxu0 %v3141_v21 }
 0x1c8   : > { %v1684_v33 = vpop.permute.xlu0 %1683  ;;  %v1721_v24 = vsel %vm1705_vm0, %v5334_v32, %v1240_v30  ;;  %3879 = vmatprep.subr.mxu1 %v4351_v1  ;;  %3200 = vmatprep.subr.mxu0 %v4351_v1 }
 0x1c9   : > { %v1838_v34 = vsel %vm1824_vm7, %v1821_v22, %v1684_v33  ;;  %3897 = vmatpush1.msra.mxu1 %v3140_v11  ;;  %3201 = vmatpush1.msra.mxu0 %v3140_v11  ;;  %v3139_v33 = vld [vmem:[%s5498_s19 + $0x58] sm:$0xff] }
 0x1ca   : > { %3845 = vmatmul.mubr.msk.f32.gmra.mxu0 %vm1850_vm8, %v1838_v34  ;;  %3880 = vmatprep.subr.mxu1 %v4351_v1  ;;  %v3138_v34 = vld [vmem:[%s5498_s19 + $0x50] sm:$0xff] }
 0x1cb   : > { %v1304_v53 = vpop.permute.xlu1 %1303  ;;  %3202 = vmatprep.subr.mxu0 %v4351_v1  ;;  %3898 = vmatpush1.msra.mxu1 %v3139_v33 }
 0x1cc   : > { %v1302_v2 = vpop.permute.xlu0 %1301  ;;  %v1738_v26 = vsel %vm1722_vm1, %v1721_v24, %v1304_v53  ;;  %3203 = vmatpush1.msra.mxu0 %v3139_v33  ;;  %3881 = vmatprep.subr.mxu1 %v4351_v1  ;;  %v3137_v53 = vld [vmem:[%s5498_s19 + $0x48] sm:$0xff]  ;;  %v3131_v24 = vld [vmem:[%s5498_s19 + $0x18] sm:$0xff] }
 0x1cd   : > { %v1737_v48 = vsel %vm1722_vm1, %v1720_v46, %v1302_v2  ;;  %3204 = vmatprep.subr.mxu0 %v4351_v1  ;;  %3899 = vmatpush1.msra.mxu1 %v3138_v34  ;;  %v3132_v46 = vld [vmem:[%s5498_s19 + $0x20] sm:$0xff] }
 0x1ce   : > { %3205 = vmatpush1.msra.mxu0 %v3138_v34  ;;  %3882 = vmatprep.subr.mxu1 %v4351_v1 }
 0x1cf   : > { %v1368_v14 = vpop.permute.xlu1 %1367  ;;  %3206 = vmatprep.subr.mxu0 %v4351_v1  ;;  %3900 = vmatpush1.msra.mxu1 %v3137_v53 }
 0x1d0   : > { %v1366_v35 = vpop.permute.xlu0 %1365  ;;  %v1755_v51 = vsel %vm1739_vm2, %v1738_v26, %v1368_v14  ;;  %3207 = vmatpush1.msra.mxu0 %v3137_v53  ;;  %3883 = vmatprep.subr.mxu1 %v4351_v1  ;;  %v3136_v14 = vld [vmem:[%s5498_s19 + $0x40] sm:$0xff]  ;;  %v3130_v26 = vld [vmem:[%s5498_s19 + $0x10] sm:$0xff] }
 0x1d1   : > { %v1754_v52 = vsel %vm1739_vm2, %v1737_v48, %v1366_v35  ;;  %3208 = vmatprep.subr.mxu0 %v4351_v1  ;;  %3901 = vmatpush1.msra.mxu1 %v3136_v14 }
 0x1d2   : > { %3209 = vmatpush1.msra.mxu0 %v3136_v14  ;;  %3884 = vmatprep.subr.mxu1 %v4351_v1 }
 0x1d3   : > { %v1432_v39 = vpop.permute.xlu1 %1431  ;;  %3210 = vmatprep.subr.mxu0 %v4351_v1 }
 0x1d4   : > { %v1430_v23 = vpop.permute.xlu0 %1429  ;;  %v1772_v49 = vsel %vm1756_vm3, %v1755_v51, %v1432_v39 }
 0x1d5   : > { %v1771_v32 = vsel %vm1756_vm3, %v1754_v52, %v1430_v23  ;;  %v3135_v23 = vld [vmem:[%s5498_s19 + $0x38] sm:$0xff] }
 0x1d6   : > { %3902 = vmatpush1.msra.mxu1 %v3135_v23  ;;  %3211 = vmatpush1.msra.mxu0 %v3135_v23 }
 0x1d7   : > { %v1496_v36 = vpop.permute.xlu1 %1495  ;;  %3885 = vmatprep.subr.mxu1 %v4351_v1  ;;  %3212 = vmatprep.subr.mxu0 %v4351_v1 }
 0x1d8   : > { %v1494_v19 = vpop.permute.xlu0 %1493  ;;  %v1789_v29 = vsel %vm1773_vm4, %v1772_v49, %v1496_v36 }
 0x1d9   : > { %v3828_v40 = vpop.f32.mrf.mxu0  ;;  %v1788_v38 = vsel %vm1773_vm4, %v1771_v32, %v1494_v19  ;;  %v3128_v32 = vld [vmem:[%s5498_s19] sm:$0xff] }
 0x1da   : > { %v2052_v37 = vmul.f32 %v3828_v40, %v5451_v42  ;;  %v3134_v40 = vld [vmem:[%s5498_s19 + $0x30] sm:$0xff] }
 0x1db   : > { %v1560_v45 = vpop.permute.xlu1 %1559  ;;  %v1965_v15 = vpop.f32.mrf.mxu0  ;;  %3903 = vmatpush1.msra.mxu1 %v3134_v40  ;;  %3213 = vmatpush1.msra.mxu0 %v3134_v40 }
 0x1dc   : > { %v1558_v61 = vpop.permute.xlu0 %1557  ;;  %v2075_v43 = vadd.f32 %v5456_v44, %v2052_v37  ;;  %v2051_v27 = vmul.f32 %v5451_v42, %v1965_v15  ;;  %v1806_v59 = vsel %vm1790_vm5, %v1789_v29, %v1560_v45  ;;  %3886 = vmatprep.subr.mxu1 %v4351_v1  ;;  %3214 = vmatprep.subr.mxu0 %v4351_v1 }
 0x1dd   : > { %v1805_v60 = vsel %vm1790_vm5, %v1788_v38, %v1558_v61  ;;  %v3133_v61 = vld [vmem:[%s5498_s19 + $0x28] sm:$0xff] }
 0x1de   : > { %v2091_v54 = vmax.f32 %v2075_v43, 0.0  ;;  %v2074_v47 = vadd.f32 %v5456_v44, %v2051_v27  ;;  %3904 = vmatpush1.msra.mxu1 %v3133_v61  ;;  %3215 = vmatpush1.msra.mxu0 %v3133_v61  ;;  %v2540_v43 = vld [vmem:[#allocation2 + $0x91] sm:$0xff] }
 0x1df   : > { %v1624_v55 = vpop.permute.xlu1 %1623  ;;  %3887 = vmatprep.subr.mxu1 %v4351_v1  ;;  %3216 = vmatprep.subr.mxu0 %v4351_v1  ;;  %v2524_v27 = vld [vmem:[#allocation2 + $0x90] sm:$0xff] }
 0x1e0   : > { %v1622_v12 = vpop.permute.xlu0 %1621  ;;  %2149 = vst.msk [vmem:[#allocation2 + $0x21] sm:$0xff] %vm1722_vm1, %v2091_v54  ;;  %v2090_v50 = vmax.f32 %v2074_v47, 0.0  ;;  %v1823_v62 = vsel %vm1807_vm6, %v1806_v59, %v1624_v55  ;;  %3905 = vmatpush1.msra.mxu1 %v3132_v46  ;;  %3217 = vmatpush1.msra.mxu0 %v3132_v46  ;;  %v3129_v55 = vld [vmem:[%s5498_s19 + $0x8] sm:$0xff] }
 0x1e1   : > { %v1822_v63 = vsel %vm1807_vm6, %v1805_v60, %v1622_v12  ;;  %3888 = vmatprep.subr.mxu1 %v4351_v1  ;;  %3218 = vmatprep.subr.mxu0 %v4351_v1  ;;  %v3145_v60 = vld [vmem:[%s5498_s19 + $0x88] sm:$0xff] }
 0x1e2   : > { %2148 = vst.msk [vmem:[#allocation2 + $0x11] sm:$0xff] %vm1722_vm1, %v2090_v50  ;;  %3906 = vmatpush1.msra.mxu1 %v3131_v24  ;;  %3219 = vmatpush1.msra.mxu0 %v3131_v24 }
 0x1e3   : > { %v1688_v56 = vpop.permute.xlu1 %1687  ;;  %3889 = vmatprep.subr.mxu1 %v4351_v1  ;;  %3220 = vmatprep.subr.mxu0 %v4351_v1 }
 0x1e4   : > { %v1686_v31 = vpop.permute.xlu0 %1685  ;;  %v1840_v28 = vsel %vm1824_vm7, %v1823_v62, %v1688_v56  ;;  %3907 = vmatpush1.msra.mxu1 %v3130_v26  ;;  %3221 = vmatpush1.msra.mxu0 %v3130_v26 }
 0x1e5   : > { %v1839_v17 = vsel %vm1824_vm7, %v1822_v63, %v1686_v31  ;;  %3890 = vmatprep.subr.mxu1 %v4351_v1  ;;  %3222 = vmatprep.subr.mxu0 %v4351_v1  ;;  %v3144_v63 = vld [vmem:[%s5498_s19 + $0x80] sm:$0xff] }
 0x1e6   : > { %3847 = vmatprep.mubr.msk.f32.mxu0 %vm1850_vm8, %v1839_v17  ;;  %3908 = vmatpush1.msra.mxu1 %v3129_v55 }
 0x1e7   : > { %3848 = vmatmul.mubr.msk.f32.gmra.mxu0 %vm1850_vm8, %v1840_v28  ;;  %v5484_v5 = vld [vmem:[#allocation2 + $0x22] sm:$0xff]  ;;  %3891 = vmatprep.subr.mxu1 %v4351_v1 }
 0x1e8   : > { %3742 = vmatprep.mubr.msk.f32.mxu0 %vm1722_vm1, %v5484_v5  ;;  %3223 = vmatpush1.msra.mxu0 %v3129_v55  ;;  %v2533_v46 = vld [vmem:[#allocation2 + $0x21] sm:$0xff] }
 0x1e9   : > { %3224 = vmatprep.subr.mxu0 %v4351_v1  ;;  %3909 = vmatpush1.msra.mxu1 %v3128_v32 }
 0x1ea   : > { %3225 = vmatpush1.msra.mxu0 %v3128_v32  ;;  %3892 = vmatprep.subr.mxu1 %v4351_v1  ;;  %v2484_v32 = vld [vmem:[#allocation2 + $0x11] sm:$0xff] }
 0x1eb   : > { %3254 = vmatprep.subr.mxu0 %v4351_v1  ;;  %3910 = vmatpush2.msra.mxu1 %v3145_v60 }
 0x1ec   : > { %3255 = vmatpush2.msra.mxu0 %v3145_v60  ;;  %3893 = vmatprep.subr.mxu1 %v4351_v1 }
 0x1ed   : > { %3256 = vmatprep.subr.mxu0 %v4351_v1  ;;  %3911 = vmatpush2.msra.mxu1 %v3144_v63 }
 0x1ee   : > { %3257 = vmatpush2.msra.mxu0 %v3144_v63 }
 0x1f9   : > { %v3831_v16 = vpop.f32.mrf.mxu0 }
 0x1fa   : > { %v2054_v4 = vmul.f32 %v3831_v16, %v5451_v42 }
 0x1fb   : > { %v1975_v6 = vpop.f32.mrf.mxu0 }
 0x1fc   : > { %v2077_v7 = vadd.f32 %v5456_v44, %v2054_v4  ;;  %v2053_v41 = vmul.f32 %v5451_v42, %v1975_v6 }
 0x1fe   : > { %v2093_v3 = vmax.f32 %v2077_v7, 0.0  ;;  %v2076_v58 = vadd.f32 %v5456_v44, %v2053_v41 }
 0x200   : > { %2151 = vst.msk [vmem:[#allocation2 + $0x41] sm:$0xff] %vm1722_vm1, %v2093_v3  ;;  %v2092_v9 = vmax.f32 %v2076_v58, 0.0  ;;  %v2452_v58 = vld [vmem:[#allocation2 + $0x2] sm:$0xff] }
 0x202   : > { %2150 = vst.msk [vmem:[#allocation2 + $0x31] sm:$0xff] %vm1722_vm1, %v2092_v9  ;;  %v2436_v9 = vld [vmem:[#allocation2 + $0x1] sm:$0xff] }
 0x21a   : > { %v3834_v57 = vpop.f32.mrf.mxu0 }
 0x21b   : > { %v2056_v25 = vmul.f32 %v3834_v57, %v5451_v42 }
 0x21c   : > { %v1985_v10 = vpop.f32.mrf.mxu0 }
 0x21d   : > { %v2079_v18 = vadd.f32 %v5456_v44, %v2056_v25  ;;  %v2055_v20 = vmul.f32 %v5451_v42, %v1985_v10  ;;  %v2460_v10 = vld [vmem:[#allocation2 + $0xa2] sm:$0xff] }
 0x21f   : > { %v2095_v13 = vmax.f32 %v2079_v18, 0.0  ;;  %v2078_v22 = vadd.f32 %v5456_v44, %v2055_v20  ;;  %v2444_v20 = vld [vmem:[#allocation2 + $0xa1] sm:$0xff] }
 0x221   : > { %2153 = vst.msk [vmem:[#allocation2 + $0x61] sm:$0xff] %vm1722_vm1, %v2095_v13  ;;  %v2094_v30 = vmax.f32 %v2078_v22, 0.0 }
 0x223   : > { %2152 = vst.msk [vmem:[#allocation2 + $0x51] sm:$0xff] %vm1722_vm1, %v2094_v30 }
 0x228   : > { %v5561_v29 = vld [vmem:[#allocation2 + $0x62] sm:$0xff] }
 0x229   : > { %v5563_v38 = vld [vmem:[#allocation2 + $0x61] sm:$0xff] }
 0x22a   : > { %v3837_v2 = vpop.f32.mrf.mxu0 }
 0x22b   : > { %v2058_v35 = vmul.f32 %v3837_v2, %v5451_v42 }
 0x22c   : > { %v1995_v39 = vpop.f32.mrf.mxu0 }
 0x22d   : > { %v2081_v36 = vadd.f32 %v5456_v44, %v2058_v35  ;;  %v2057_v19 = vmul.f32 %v5451_v42, %v1995_v39 }
 0x22f   : > { %v2097_v37 = vmax.f32 %v2081_v36, 0.0  ;;  %v2080_v45 = vadd.f32 %v5456_v44, %v2057_v19 }
 0x231   : > { %2155 = vst.msk [vmem:[#allocation2 + $0x81] sm:$0xff] %vm1722_vm1, %v2097_v37  ;;  %v2096_v15 = vmax.f32 %v2080_v45, 0.0  ;;  %v5614_v37 = vld [vmem:[#allocation2 + $0x20] sm:$0xff] }
 0x233   : > { %2154 = vst.msk [vmem:[#allocation2 + $0x71] sm:$0xff] %vm1722_vm1, %v2096_v15 }
 0x238   : > { %v2555_v48 = vld [vmem:[#allocation2 + $0x82] sm:$0xff] }
 0x239   : > { %v2539_v51 = vld [vmem:[#allocation2 + $0x81] sm:$0xff]  ;;  %3748 = vmatprep.mubr.msk.f32.mxu1 %vm1722_vm1, %v2555_v48 }
 0x23a   : > { %v2523_v52 = vld [vmem:[#allocation2 + $0x80] sm:$0xff]  ;;  %v3990_v54 = vpack.i.bf16 %v2540_v43, %v2539_v51  ;;  %v2459_v12 = vld [vmem:[#allocation2 + $0x72] sm:$0xff] }
 0x23b   : > { %v3985_v47 = vpack.i.bf16 %v2524_v27, %v2523_v52  ;;  %v5556_v49 = vld [vmem:[#allocation2 + $0x71] sm:$0xff]  ;;  %v4000_v50 = vpack.i.bf16 %v2459_v12, %v5561_v29  ;;  %v4015_v28 = vpack.i.bf16 %v2555_v48, %v2459_v12 }
 0x23c   : > { %3991 = vrot.lane.b32.xlu0 %v3990_v54, %s4352_s11  ;;  %v3995_v59 = vpack.i.bf16 %v5556_v49, %v5563_v38  ;;  %v5571_v62 = vld [vmem:[#allocation2 + $0x70] sm:$0xff]  ;;  %v4010_v56 = vpack.i.bf16 %v2539_v51, %v5556_v49 }
 0x23d   : > { %3986 = vrot.lane.b32.xlu1 %v3985_v47, %s4353_s12  ;;  %v4005_v31 = vpack.i.bf16 %v2523_v52, %v5571_v62  ;;  %v5636_v52 = vld [vmem:[#allocation2 + $0x10] sm:$0xff] }
 0x240   : > { %3996 = vrot.lane.b32.xlu0 %v3995_v59, %s4343_s27 }
 0x241   : > { %4001 = vrot.lane.b32.xlu1 %v4000_v50, %s4346_s30 }
 0x244   : > { %4006 = vrot.lane.b32.xlu0 %v4005_v31, %s6199_s28 }
 0x245   : > { %4011 = vrot.lane.b32.xlu1 %v4010_v56, %s6200_s22 }
 0x248   : > { %4016 = vrot.lane.b32.xlu0 %v4015_v28, %s4354_s24  ;;  %v2500_v28 = vld [vmem:[#allocation2 + $0x12] sm:$0xff] }
 0x24e   : > { %v3840_v17 = vpop.f32.mrf.mxu0 }
 0x24f   : > { %v2060_v16 = vmul.f32 %v3840_v17, %v5451_v42 }
 0x250   : > { %v2005_v4 = vpop.f32.mrf.mxu0 }
 0x251   : > { %v2083_v6 = vadd.f32 %v5456_v44, %v2060_v16  ;;  %v2059_v7 = vmul.f32 %v5451_v42, %v2005_v4  ;;  %v5655_v4 = vld [vmem:[#allocation2 + $0x40] sm:$0xff] }
 0x253   : > { %v2099_v41 = vmax.f32 %v2083_v6, 0.0  ;;  %v2082_v1 = vadd.f32 %v5456_v44, %v2059_v7 }
 0x255   : > { %2157 = vst.msk [vmem:[#allocation2 + $0xc1] sm:$0xff] %vm1722_vm1, %v2099_v41  ;;  %v2098_v3 = vmax.f32 %v2082_v1, 0.0  ;;  %v2535_v1 = vld [vmem:[#allocation2 + $0x41] sm:$0xff] }
 0x257   : > { %2156 = vst.msk [vmem:[#allocation2 + $0xb1] sm:$0xff] %vm1722_vm1, %v2098_v3 }
 0x25c   : > { %v5591_v57 = vld [vmem:[#allocation2 + $0xc2] sm:$0xff] }
 0x25d   : > { %v2446_v8 = vld [vmem:[#allocation2 + $0xc1] sm:$0xff]  ;;  %v4025_v0 = vpack.i.bf16 %v5591_v57, %v2452_v58 }
 0x25e   : > { %v4020_v25 = vpack.i.bf16 %v2446_v8, %v2436_v9  ;;  %v2461_v18 = vld [vmem:[#allocation2 + $0xb2] sm:$0xff]  ;;  %v5600_v30 = vld [vmem:[#allocation2 + $0xc0] sm:$0xff] }
 0x25f   : > { %v2445_v21 = vld [vmem:[#allocation2 + $0xb1] sm:$0xff]  ;;  %4026 = vrot.lane.b32.xlu1 %v4025_v0, %s4346_s30  ;;  %v4035_v11 = vpack.i.bf16 %v2461_v18, %v2460_v10  ;;  %v4050_v53 = vpack.i.bf16 %v5591_v57, %v2461_v18  ;;  %v5667_v9 = vld [vmem:[#allocation2 + $0x42] sm:$0xff] }
 0x260   : > { %4021 = vrot.lane.b32.xlu0 %v4020_v25, %s4343_s27  ;;  %v4030_v13 = vpack.i.bf16 %v2445_v21, %v2444_v20  ;;  %v5596_v22 = vld [vmem:[#allocation2 + $0xb0] sm:$0xff]  ;;  %v4045_v33 = vpack.i.bf16 %v2446_v8, %v2445_v21 }
 0x261   : > { %v4040_v34 = vpack.i.bf16 %v5600_v30, %v5596_v22  ;;  %v5675_v25 = vld [vmem:[#allocation2 + $0x30] sm:$0xff] }
 0x263   : > { %4031 = vrot.lane.b32.xlu1 %v4030_v13, %s4343_s27 }
 0x264   : > { %4036 = vrot.lane.b32.xlu0 %v4035_v11, %s4346_s30  ;;  %v2534_v11 = vld [vmem:[#allocation2 + $0x31] sm:$0xff] }
 0x267   : > { %4041 = vrot.lane.b32.xlu1 %v4040_v34, %s6199_s28 }
 0x268   : > { %4046 = vrot.lane.b32.xlu0 %v4045_v33, %s6200_s22 }
 0x26a   : > { %v3843_v2 = vpop.f32.mrf.mxu0 }
 0x26b   : > { %v2062_v14 = vmul.f32 %v3843_v2, %v5451_v42  ;;  %4051 = vrot.lane.b32.xlu1 %v4050_v53, %s4354_s24 }
 0x26c   : > { %v2015_v35 = vpop.f32.mrf.mxu0 }
 0x26d   : > { %v2085_v39 = vadd.f32 %v5456_v44, %v2062_v14  ;;  %v2061_v23 = vmul.f32 %v5451_v42, %v2015_v35 }
 0x26f   : > { %v2101_v36 = vmax.f32 %v2085_v39, 0.0  ;;  %v2084_v19 = vadd.f32 %v5456_v44, %v2061_v23 }
 0x271   : > { %2159 = vst.msk [vmem:[#allocation2 + $0xe1] sm:$0xff] %vm1722_vm1, %v2101_v36  ;;  %v2100_v40 = vmax.f32 %v2084_v19, 0.0 }
 0x273   : > { %2158 = vst.msk [vmem:[#allocation2 + $0xd1] sm:$0xff] %vm1722_vm1, %v2100_v40 }
 0x278   : > { %v5616_v45 = vld [vmem:[#allocation2 + $0xe0] sm:$0xff] }
 0x279   : > { %v4055_v61 = vpack.i.bf16 %v5616_v45, %v5614_v37  ;;  %v2543_v15 = vld [vmem:[#allocation2 + $0xe1] sm:$0xff] }
 0x27a   : > { %v4065_v24 = vpack.i.bf16 %v2543_v15, %v2533_v46  ;;  %v5622_v43 = vld [vmem:[#allocation2 + $0xe2] sm:$0xff]  ;;  %v5628_v26 = vld [vmem:[#allocation2 + $0xd0] sm:$0xff] }
 0x27b   : > { %4056 = vrot.lane.b32.xlu1 %v4055_v61, %s4353_s12  ;;  %4061 = vrot.lane.b32.xlu0 %v4055_v61, %s6199_s28  ;;  %v4080_v27 = vpack.i.bf16 %v5622_v43, %v5484_v5  ;;  %v4090_v48 = vpack.i.bf16 %v5628_v26, %v5600_v30  ;;  %v2542_v51 = vld [vmem:[#allocation2 + $0xd1] sm:$0xff]  ;;  %v4100_v5 = vpack.i.bf16 %v5628_v26, %v5636_v52 }
 0x27c   : > { %v4095_v54 = vpack.i.bf16 %v2542_v51, %v2446_v8  ;;  %v4105_v60 = vpack.i.bf16 %v2542_v51, %v2484_v32  ;;  %v5645_v63 = vld [vmem:[#allocation2 + $0xd2] sm:$0xff] }
 0x27d   : > { %v4115_v16 = vpack.i.bf16 %v5645_v63, %v2500_v28 }
 0x27f   : > { %4066 = vrot.lane.b32.xlu1 %v4065_v24, %s4352_s11  ;;  %4071 = vrot.lane.b32.xlu0 %v4065_v24, %s6200_s22 }
 0x283   : > { %4081 = vrot.lane.b32.xlu0 %v4080_v27, %s4354_s24  ;;  %4076 = vrot.lane.b32.xlu1 %v4065_v24, %s4343_s27 }
 0x287   : > { %4086 = vrot.lane.b32.xlu1 %v4080_v27, %s4346_s30  ;;  %4091 = vrot.lane.b32.xlu0 %v4090_v48, %s4353_s12  ;;  %v2426_v27 = vld [vmem:[#allocation2 + $0x60] sm:$0xff] }
 0x28a   : > { %v3846_v47 = vpop.f32.mrf.mxu0 }
 0x28b   : > { %v2064_v55 = vmul.f32 %v3846_v47, %v5451_v42  ;;  %4096 = vrot.lane.b32.xlu1 %v4095_v54, %s4352_s11  ;;  %4101 = vrot.lane.b32.xlu0 %v4100_v5, %s6199_s28 }
 0x28c   : > { %v2025_v12 = vpop.f32.mrf.mxu0 }
 0x28d   : > { %v2087_v50 = vadd.f32 %v5456_v44, %v2064_v55  ;;  %v2063_v59 = vmul.f32 %v5451_v42, %v2025_v12 }
 0x28f   : > { %v2103_v56 = vmax.f32 %v2087_v50, 0.0  ;;  %v2086_v31 = vadd.f32 %v5456_v44, %v2063_v59  ;;  %4106 = vrot.lane.b32.xlu1 %v4105_v60, %s6200_s22  ;;  %4111 = vrot.lane.b32.xlu0 %v4105_v60, %s4343_s27 }
 0x291   : > { %2161 = vst.msk [vmem:[#allocation2 + $0x101] sm:$0xff] %vm1722_vm1, %v2103_v56  ;;  %v2102_v17 = vmax.f32 %v2086_v31, 0.0 }
 0x293   : > { %2160 = vst.msk [vmem:[#allocation2 + $0xf1] sm:$0xff] %vm1722_vm1, %v2102_v17  ;;  %4116 = vrot.lane.b32.xlu1 %v4115_v16, %s4354_s24  ;;  %4121 = vrot.lane.b32.xlu0 %v4115_v16, %s4346_s30 }
 0x298   : > { %v5657_v6 = vld [vmem:[#allocation2 + $0x100] sm:$0xff] }
 0x299   : > { %v4125_v7 = vpack.i.bf16 %v5657_v6, %v5655_v4  ;;  %v2545_v41 = vld [vmem:[#allocation2 + $0x101] sm:$0xff] }
 0x29a   : > { %v4135_v3 = vpack.i.bf16 %v2545_v41, %v2535_v1  ;;  %v5663_v58 = vld [vmem:[#allocation2 + $0x102] sm:$0xff]  ;;  %v5671_v0 = vld [vmem:[#allocation2 + $0xf0] sm:$0xff] }
 0x29b   : > { %4126 = vrot.lane.b32.xlu1 %v4125_v7, %s4353_s12  ;;  %4131 = vrot.lane.b32.xlu0 %v4125_v7, %s6199_s28  ;;  %v4150_v8 = vpack.i.bf16 %v5663_v58, %v5667_v9  ;;  %v4160_v10 = vpack.i.bf16 %v5671_v0, %v5675_v25  ;;  %v2544_v18 = vld [vmem:[#allocation2 + $0xf1] sm:$0xff] }
 0x29c   : > { %v4170_v33 = vpack.i.bf16 %v2544_v18, %v2534_v11  ;;  %v5690_v36 = vld [vmem:[#allocation2 + $0xf2] sm:$0xff] }
 0x29f   : > { %4136 = vrot.lane.b32.xlu1 %v4135_v3, %s4352_s11  ;;  %4141 = vrot.lane.b32.xlu0 %v4135_v3, %s6200_s22 }
 0x2a3   : > { %4151 = vrot.lane.b32.xlu0 %v4150_v8, %s4354_s24  ;;  %4146 = vrot.lane.b32.xlu1 %v4135_v3, %s4343_s27 }
 0x2a7   : > { %4156 = vrot.lane.b32.xlu1 %v4150_v8, %s4346_s30  ;;  %4161 = vrot.lane.b32.xlu0 %v4160_v10, %s4353_s12  ;;  %v3849_v20 = vpop.f32.mrf.mxu0 }
 0x2a8   : > { %v2066_v21 = vmul.f32 %v3849_v20, %v5451_v42 }
 0x2a9   : > { %v2035_v13 = vpop.f32.mrf.mxu0 }
 0x2aa   : > { %v2089_v34 = vadd.f32 %v5456_v44, %v2066_v21  ;;  %v2065_v53 = vmul.f32 %v5451_v42, %v2035_v13  ;;  %v5695_v42 = vld [vmem:[#allocation2 + $0x32] sm:$0xff] }
 0x2ab   : > { %4171 = vrot.lane.b32.xlu0 %v4170_v33, %s4352_s11  ;;  %4166 = vrot.lane.b32.xlu1 %v4160_v10, %s6199_s28  ;;  %v4185_v19 = vpack.i.bf16 %v5690_v36, %v5695_v42 }
 0x2ac   : > { %v2105_v2 = vmax.f32 %v2089_v34, 0.0  ;;  %v2088_v14 = vadd.f32 %v5456_v44, %v2065_v53  ;;  %v2556_v53 = vld [vmem:[#allocation2 + $0x92] sm:$0xff] }
 0x2ae   : > { %2163 = vst.msk [vmem:[#allocation2 + $0x121] sm:$0xff] %vm1722_vm1, %v2105_v2  ;;  %v2104_v35 = vmax.f32 %v2088_v14, 0.0  ;;  %v5688_v39 = vpop.permute.xlu0 %3991 }
 0x2af   : > { %v3987_v23 = vpop.permute.xlu1 %3986  ;;  %4176 = vrot.lane.b32.xlu1 %v4170_v33, %s6200_s22  ;;  %4181 = vrot.lane.b32.xlu0 %v4170_v33, %s4343_s27  ;;  %v3993_v20 = vunpack.i.l.bf16 %v5688_v39 }
 0x2b0   : > { %2162 = vst.msk [vmem:[#allocation2 + $0x111] sm:$0xff] %vm1722_vm1, %v2104_v35  ;;  %v3988_v8 = vunpack.i.l.bf16 %v3987_v23  ;;  %v3989_v13 = vunpack.i.h.bf16 %v3987_v23  ;;  %v2536_v23 = vld [vmem:[#allocation2 + $0x51] sm:$0xff] }
 0x2b2   : > { %v3997_v40 = vpop.permute.xlu0 %3996 }
 0x2b3   : > { %v4002_v44 = vpop.permute.xlu1 %4001  ;;  %v3999_v61 = vunpack.i.h.bf16 %v3997_v40  ;;  %v3998_v15 = vunpack.i.l.bf16 %v3997_v40  ;;  %4186 = vrot.lane.b32.xlu1 %v4185_v19, %s4354_s24  ;;  %4191 = vrot.lane.b32.xlu0 %v4185_v19, %s4346_s30  ;;  %v3994_v19 = vunpack.i.h.bf16 %v5688_v39 }
 0x2b4   : > { %v4004_v46 = vunpack.i.h.bf16 %v4002_v44  ;;  %v4003_v24 = vunpack.i.l.bf16 %v4002_v44 }
 0x2b5   : > { %v3019_v48 = vsel %vm1722_vm1, %v2426_v27, %v3998_v15  ;;  %v3020_v51 = vsel %vm1722_vm1, %v5571_v62, %v3999_v61  ;;  %v2531_v54 = vld [vmem:[#allocation2 + $0x120] sm:$0xff]  ;;  %v5738_v15 = vld [vmem:[#allocation2 + $0x52] sm:$0xff] }
 0x2b6   : > { %v4007_v47 = vpop.permute.xlu0 %4006  ;;  %v4195_v55 = vpack.i.bf16 %v2531_v54, %v2426_v27  ;;  %v2547_v50 = vld [vmem:[#allocation2 + $0x121] sm:$0xff]  ;;  %v3035_v56 = vsel %vm1756_vm3, %v3019_v48, %v4003_v24  ;;  %v3036_v31 = vsel %vm1756_vm3, %v3020_v51, %v4004_v46  ;;  %v3854_v46 = vpop.f32.mrf.mxu1  ;;  %v5745_v24 = vld [vmem:[%s6180_s8] ss:$0 sm:$0xff] }
 0x2b7   : > { %v4012_v5 = vpop.permute.xlu1 %4011  ;;  %v4009_v12 = vunpack.i.h.bf16 %v4007_v47  ;;  %v4008_v32 = vunpack.i.l.bf16 %v4007_v47  ;;  %v4205_v7 = vpack.i.bf16 %v2547_v50, %v5563_v38  ;;  %v5711_v3 = vld [vmem:[#allocation2 + $0x110] sm:$0xff]  ;;  %v5748_v27 = vld [vmem:[#allocation2 + $0x122] sm:$0xff]  ;;  %v2382_v48 = vmul.f32 %v3854_v46, %v5745_v24 }
 0x2b8   : > { %v4014_v59 = vunpack.i.h.bf16 %v4012_v5  ;;  %v4013_v60 = vunpack.i.l.bf16 %v4012_v5  ;;  %4196 = vrot.lane.b32.xlu1 %v4195_v55, %s4353_s12  ;;  %4201 = vrot.lane.b32.xlu0 %v4195_v55, %s6199_s28  ;;  %v5719_v38 = vld [vmem:[#allocation2 + $0x50] sm:$0xff]  ;;  %v2295_v51 = vpop.f32.mrf.mxu1  ;;  %v4245_v47 = vpack.i.bf16 %v5748_v27, %v5561_v29 }
 0x2b9   : > { %v3051_v28 = vsel %vm1790_vm5, %v3035_v56, %v4008_v32  ;;  %v3052_v17 = vsel %vm1790_vm5, %v3036_v31, %v4009_v12  ;;  %v4215_v34 = vpack.i.bf16 %v5711_v3, %v5719_v38  ;;  %v2546_v14 = vld [vmem:[#allocation2 + $0x111] sm:$0xff]  ;;  %v2381_v5 = vmul.f32 %v5745_v24, %v2295_v51 }
 0x2ba   : > { %v4017_v16 = vpop.permute.xlu0 %4016  ;;  %v3067_v10 = vsel %vm1824_vm7, %v3051_v28, %v4013_v60  ;;  %v3068_v18 = vsel %vm1824_vm7, %v3052_v17, %v4014_v59  ;;  %v4225_v44 = vpack.i.bf16 %v2546_v14, %v2536_v23  ;;  %v5733_v61 = vld [vmem:[#allocation2 + $0x112] sm:$0xff]  ;;  %v3857_v12 = vpop.f32.mrf.mxu1 }
 0x2bb   : > { %v4019_v41 = vunpack.i.h.bf16 %v4017_v16  ;;  %v4018_v1 = vunpack.i.l.bf16 %v4017_v16  ;;  %v4240_v39 = vpack.i.bf16 %v5733_v61, %v5738_v15  ;;  %v2532_v55 = vld [vmem:[#allocation2 + $0x130] sm:$0xff]  ;;  %v2384_v59 = vmul.f32 %v3857_v12, %v5745_v24 }
 0x2bc   : > { %4206 = vrot.lane.b32.xlu1 %v4205_v7, %s4352_s11  ;;  %4211 = vrot.lane.b32.xlu0 %v4205_v7, %s6200_s22  ;;  %v2548_v32 = vld [vmem:[#allocation2 + $0x131] sm:$0xff]  ;;  %v2305_v60 = vpop.f32.mrf.mxu1  ;;  %v4255_v56 = vpack.i.bf16 %v2532_v55, %v5571_v62 }
 0x2bd   : > { %v3084_v21 = vsel %vm3077_vm10, %v3067_v10, %v4018_v1  ;;  %v3085_v11 = vsel %vm3077_vm10, %v3068_v18, %v4019_v41  ;;  %v2383_v29 = vmul.f32 %v5745_v24, %v2305_v60  ;;  %v4260_v28 = vpack.i.bf16 %v2548_v32, %v5556_v49 }
 0x2be   : > { %v3101_v33 = vsel %vm3094_vm11, %v3084_v21, %v3988_v8  ;;  %v3102_v35 = vsel %vm3094_vm11, %v3085_v11, %v3989_v13  ;;  %v3860_v17 = vpop.f32.mrf.mxu1 }
 0x2bf   : > { %v3118_v2 = vsel %vm3111_vm12, %v3101_v33, %v3993_v20  ;;  %v3119_v40 = vsel %vm3111_vm12, %v3102_v35, %v3994_v19  ;;  %v2386_v7 = vmul.f32 %v3860_v17, %v5745_v24 }
 0x2c0   : > { %3289 = vmatmul.mubr.f32.vlgmr.msra.gmra.mxu1 %v3118_v2  ;;  %4216 = vrot.lane.b32.xlu0 %v4215_v34, %s4353_s12  ;;  %v2315_v41 = vpop.f32.mrf.mxu1 }
 0x2c1   : > { %4221 = vrot.lane.b32.xlu1 %v4215_v34, %s6199_s28  ;;  %3749 = vmatprep.mubr.msk.f32.mxu1 %vm1722_vm1, %v2556_v53  ;;  %v2385_v1 = vmul.f32 %v5745_v24, %v2315_v41 }
 0x2c2   : > { %v5785_v8 = vpop.f32.mrf.mxu1 }
 0x2c4   : > { %3294 = vmatmul.mubr.f32.gmra.mxu1 %v3119_v40  ;;  %4226 = vrot.lane.b32.xlu0 %v4225_v44, %s4352_s11  ;;  %v5790_v10 = vpop.f32.mrf.mxu1 }
 0x2c5   : > { %3750 = vmatprep.mubr.msk.f32.mxu1 %vm1722_vm1, %v5591_v57  ;;  %4231 = vrot.lane.b32.xlu1 %v4225_v44, %s6200_s22  ;;  %v5755_v57 = vld [vmem:[%s6181_s9] ss:$0 sm:$0xff] }
 0x2c6   : > { %v5758_v54 = vadd.f32 %v5755_v57, %v2382_v48  ;;  %v5765_v50 = vadd.f32 %v5755_v57, %v2381_v5  ;;  %v5771_v31 = vadd.f32 %v5755_v57, %v2384_v59  ;;  %v5777_v16 = vadd.f32 %v5755_v57, %v2383_v29  ;;  %v3866_v20 = vpop.f32.mrf.mxu1 }
 0x2c7   : > { %v5782_v62 = vadd.f32 %v5755_v57, %v2386_v7  ;;  %v5788_v49 = vadd.f32 %v5755_v57, %v2385_v1  ;;  %v2390_v21 = vmul.f32 %v3866_v20, %v5745_v24 }
 0x2c8   : > { %4236 = vrot.lane.b32.xlu0 %v4225_v44, %s4343_s27  ;;  %6201 = vst [vmem:[#allocation7_spill] sm:$0xff] %v5771_v31  ;;  %6202 = vst [vmem:[#allocation8_spill] sm:$0xff] %v5777_v16  ;;  %v2335_v11 = vpop.f32.mrf.mxu1  ;;  %v2420_v31 = vld [vmem:[#allocation2] sm:$0xff] }
 0x2c9   : > { %4241 = vrot.lane.b32.xlu1 %v4240_v39, %s4354_s24  ;;  %6203 = vst [vmem:[#allocation9_spill] sm:$0xff] %v5782_v62  ;;  %6204 = vst [vmem:[#allocation10_spill] sm:$0xff] %v5788_v49  ;;  %v5796_v13 = vadd.f32 %v5755_v57, %v2390_v21  ;;  %v2389_v33 = vmul.f32 %v5745_v24, %v2335_v11 }
 0x2ca   : > { %v3869_v34 = vpop.f32.mrf.mxu1 }
 0x2cb   : > { %v5802_v14 = vadd.f32 %v5755_v57, %v2389_v33  ;;  %v2392_v35 = vmul.f32 %v3869_v34, %v5745_v24  ;;  %v2428_v33 = vld [vmem:[#allocation2 + $0xa0] sm:$0xff] }
 0x2cc   : > { %4251 = vrot.lane.b32.xlu0 %v4240_v39, %s4346_s30  ;;  %v2345_v19 = vpop.f32.mrf.mxu1  ;;  %s6119_s30 = scalar_lea.hbm %s6182_s10, %s3765_s29 }
 0x2cd   : > { %4246 = vrot.lane.b32.xlu1 %v4245_v47, %s4354_s24  ;;  %v5806_v23 = vadd.f32 %v5755_v57, %v2392_v35  ;;  %v2391_v44 = vmul.f32 %v5745_v24, %v2345_v19  ;;  %s3574_s24 = sshll.u32 %s4769_s20, 7 }
 0x2ce   : > { %v3872_v40 = vpop.f32.mrf.mxu1  ;;  %s6056_s28 = scalar_lea.vmem [#allocation4], %s3574_s24 }
 0x2cf   : > { %v5810_v39 = vadd.f32 %v5755_v57, %v2391_v44  ;;  %v2394_v46 = vmul.f32 %v3872_v40, %v5745_v24  ;;  %s3450_s19 = sshll.u32 %s6056_s28, 4  ;;  %s6121_s19 = int_to_ptr.vmem [resolvable:$true] %s3450_s19 }
 0x2d0   : > { %4256 = vrot.lane.b32.xlu0 %v4255_v56, %s4353_s12  ;;  %v2355_v48 = vpop.f32.mrf.mxu1  ;;  %s4355_s12 = smov [#allocation4]  }
 0x2d1   : > { %4261 = vrot.lane.b32.xlu1 %v4260_v28, %s4352_s11  ;;  %v5792_v18 = vpop.permute.xlu1 %4026  ;;  %v5814_v47 = vadd.f32 %v5755_v57, %v2394_v46  ;;  %v2393_v55 = vmul.f32 %v5745_v24, %v2355_v48  ;;  %s4265_s11 = scalar_lea.vmem %s6121_s19, 2048  ;;  %s4269_s24 = sshll.u32 %s4355_s12, 4  ;;  %s4270_s24 = int_to_ptr.vmem [resolvable:$false] %s4269_s24 }
 0x2d2   : > { %v5799_v53 = vpop.permute.xlu0 %4021  ;;  %v3875_v12 = vpop.f32.mrf.mxu1  ;;  %p4266_p1 = scmp.ne.s32.totalorder %s6121_s19, %s4265_s11  ;;  %s4271_s29 = scalar_lea.vmem %s4270_s24, 4096 }
 0x2d3   : > { %6205 = vst [vmem:[#allocation11_spill] sm:$0xff] %v5814_v47  ;;  %v5818_v32 = vadd.f32 %v5755_v57, %v2393_v55  ;;  %v2396_v59 = vmul.f32 %v3875_v12, %v5745_v24  ;;  %p4272_p4 = scmp.lt.s32.totalorder %s6121_s19, %s4270_s24  ;;  %p4273_p6 = scmp.lt.s32.totalorder %s4271_s29, %s4265_s11 }
 0x2d4   : > { %v2365_v60 = vpop.f32.mrf.mxu1  ;;  %p4267_p2 = pnand %p4266_p1, %p4451_p5 }
 0x2d5   : > { %v4032_v2 = vpop.permute.xlu1 %4031  ;;  %6206 = vst [vmem:[#allocation12_spill] sm:$0xff] %v5818_v32  ;;  %v5822_v56 = vadd.f32 %v5755_v57, %v2396_v59  ;;  %v2395_v29 = vmul.f32 %v5745_v24, %v2365_v60  ;;  %p4274_p7 = por %p4273_p6, %p4272_p4 }
 0x2d6   : > { %v4037_v51 = vpop.permute.xlu0 %4036  ;;  %v4033_v11 = vunpack.i.l.bf16 %v4032_v2  ;;  %v4034_v44 = vunpack.i.h.bf16 %v4032_v2  ;;  %v4024_v2 = vunpack.i.h.bf16 %v5799_v53  ;;  %p4268_p3 = pneg %p4267_p2 }
 0x2d7   : > { %6207 = vst [vmem:[#allocation13_spill] sm:$0xff] %v5822_v56  ;;  %v5826_v7 = vadd.f32 %v5755_v57, %v2395_v29  ;;  %v4038_v34 = vunpack.i.l.bf16 %v4037_v51  ;;  %v4039_v48 = vunpack.i.h.bf16 %v4037_v51 }
 0x2d8   : > { %v3021_v40 = vsel %vm1722_vm1, %v2428_v33, %v4033_v11  ;;  %v3022_v29 = vsel %vm1722_vm1, %v5596_v22, %v4034_v44  ;;  %v4023_v11 = vunpack.i.l.bf16 %v5799_v53  ;;  %p4275_p8 = pnand %p4274_p7, %p4268_p3 }
 0x2d9   : > { %v4042_v5 = vpop.permute.xlu1 %4041  ;;  %6208 = vst [vmem:[#allocation14_spill] sm:$0xff] %v5826_v7  ;;  %v3037_v12 = vsel %vm1756_vm3, %v3021_v40, %v4038_v34  ;;  %v3038_v51 = vsel %vm1756_vm3, %v3022_v29, %v4039_v48  ;;  %v4028_v48 = vunpack.i.l.bf16 %v5792_v18 }
 0x2da   : > { %v4047_v28 = vpop.permute.xlu0 %4046  ;;  %v4043_v46 = vunpack.i.l.bf16 %v4042_v5  ;;  %v4044_v56 = vunpack.i.h.bf16 %v4042_v5  ;;  %v3013_v29 = vsel %vm1722_vm1, %v2420_v31, %v4023_v11 }
 0x2db   : > { %v4048_v55 = vunpack.i.l.bf16 %v4047_v28  ;;  %v4049_v33 = vunpack.i.h.bf16 %v4047_v28  ;;  %v4029_v28 = vunpack.i.h.bf16 %v5792_v18  ;;  %v3029_v11 = vsel %vm1756_vm3, %v3013_v29, %v4028_v48 }
 0x2dc   : > { %v3053_v62 = vsel %vm1790_vm5, %v3037_v12, %v4043_v46  ;;  %v3054_v32 = vsel %vm1790_vm5, %v3038_v51, %v4044_v56 }
 0x2dd   : > { %v4052_v17 = vpop.permute.xlu1 %4051  ;;  %v3069_v40 = vsel %vm1824_vm7, %v3053_v62, %v4048_v55  ;;  %v3070_v56 = vsel %vm1824_vm7, %v3054_v32, %v4049_v33 }
 0x2de   : > { %v4053_v7 = vunpack.i.l.bf16 %v4052_v17  ;;  %v4054_v22 = vunpack.i.h.bf16 %v4052_v17  ;;  %v3023_v17 = vsel %vm1722_vm1, %v5600_v30, %v4024_v2 }
 0x2df   : > { %v3039_v32 = vsel %vm1756_vm3, %v3023_v17, %v4029_v28 }
 0x2e0   : > { %v3086_v44 = vsel %vm3077_vm10, %v3069_v40, %v4053_v7 }
 0x2ed   : > { %v5828_v41 = vpop.permute.xlu1 %4056  ;;  %v5830_v1 = vpop.permute.xlu0 %4061 }
 0x2ee   : > { %v4059_v40 = vunpack.i.h.bf16 %v5828_v41 }
 0x2f1   : > { %v5832_v20 = vpop.permute.xlu1 %4066  ;;  %v5834_v21 = vpop.permute.xlu0 %4071 }
 0x2f5   : > { %v5836_v35 = vpop.permute.xlu0 %4081  ;;  %v5838_v19 = vpop.permute.xlu1 %4076 }
 0x2f9   : > { %v5842_v59 = vpop.permute.xlu1 %4086  ;;  %v4092_v60 = vpop.permute.xlu0 %4091 }
 0x2fa   : > { %v4093_v49 = vunpack.i.l.bf16 %v4092_v60  ;;  %v4094_v46 = vunpack.i.h.bf16 %v4092_v60 }
 0x2fc   : > { %v3103_v12 = vsel %vm3094_vm11, %v3086_v44, %v4093_v49  ;;  %v3087_v49 = vsel %vm3077_vm10, %v3070_v56, %v4054_v22  ;;  %v4058_v22 = vunpack.i.l.bf16 %v5828_v41  ;;  %v4069_v44 = vunpack.i.h.bf16 %v5832_v20 }
 0x2fd   : > { %v4097_v47 = vpop.permute.xlu1 %4096  ;;  %v4102_v34 = vpop.permute.xlu0 %4101  ;;  %v3104_v18 = vsel %vm3094_vm11, %v3087_v49, %v4094_v46  ;;  %v4068_v46 = vunpack.i.l.bf16 %v5832_v20 }
 0x2fe   : > { %v4098_v5 = vunpack.i.l.bf16 %v4097_v47  ;;  %v4099_v16 = vunpack.i.h.bf16 %v4097_v47  ;;  %v4104_v7 = vunpack.i.h.bf16 %v4102_v34  ;;  %v4103_v55 = vunpack.i.l.bf16 %v4102_v34 }
 0x300   : > { %v3120_v53 = vsel %vm3111_vm12, %v3103_v12, %v4098_v5  ;;  %v3121_v31 = vsel %vm3111_vm12, %v3104_v18, %v4099_v16  ;;  %v3055_v2 = vsel %vm1790_vm5, %v3039_v32, %v4104_v7  ;;  %v3045_v33 = vsel %vm1790_vm5, %v3029_v11, %v4103_v55 }
 0x301   : > { %3299 = vmatmul.mubr.f32.gmra.mxu1 %v3120_v53  ;;  %v4107_v62 = vpop.permute.xlu1 %4106  ;;  %v4112_v51 = vpop.permute.xlu0 %4111  ;;  %v4063_v32 = vunpack.i.l.bf16 %v5830_v1 }
 0x302   : > { %3751 = vmatprep.mubr.msk.f32.mxu1 %vm1722_vm1, %v5645_v63  ;;  %v4109_v47 = vunpack.i.h.bf16 %v4107_v62  ;;  %v4108_v60 = vunpack.i.l.bf16 %v4107_v62  ;;  %v4114_v56 = vunpack.i.h.bf16 %v4112_v51  ;;  %v4113_v17 = vunpack.i.l.bf16 %v4112_v51 }
 0x303   : > { %v4064_v51 = vunpack.i.h.bf16 %v5830_v1  ;;  %v4083_v1 = vunpack.i.l.bf16 %v5836_v35 }
 0x304   : > { %v3061_v16 = vsel %vm1824_vm7, %v3045_v33, %v4108_v60  ;;  %v3071_v5 = vsel %vm1824_vm7, %v3055_v2, %v4109_v47  ;;  %v3014_v60 = vsel %vm1722_vm1, %v5636_v52, %v4113_v17  ;;  %v4074_v52 = vunpack.i.h.bf16 %v5834_v21 }
 0x305   : > { %3304 = vmatmul.mubr.f32.gmra.mxu1 %v3121_v31  ;;  %v4117_v30 = vpop.permute.xlu1 %4116  ;;  %v4122_v28 = vpop.permute.xlu0 %4121  ;;  %v4089_v17 = vunpack.i.h.bf16 %v5842_v59 }
 0x306   : > { %v4119_v63 = vunpack.i.h.bf16 %v4117_v30  ;;  %v4118_v34 = vunpack.i.l.bf16 %v4117_v30  ;;  %3752 = vmatprep.mubr.msk.f32.mxu1 %vm1722_vm1, %v5622_v43  ;;  %v4124_v7 = vunpack.i.h.bf16 %v4122_v28  ;;  %v4123_v55 = vunpack.i.l.bf16 %v4122_v28 }
 0x308   : > { %v3078_v12 = vsel %vm3077_vm10, %v3061_v16, %v4118_v34  ;;  %v3088_v53 = vsel %vm3077_vm10, %v3071_v5, %v4119_v63  ;;  %v4084_v5 = vunpack.i.h.bf16 %v5836_v35 }
 0x309   : > { %v3095_v48 = vsel %vm3094_vm11, %v3078_v12, %v4058_v22  ;;  %v3105_v43 = vsel %vm3094_vm11, %v3088_v53, %v4059_v40 }
 0x30a   : > { %v3112_v29 = vsel %vm3111_vm12, %v3095_v48, %v4068_v46  ;;  %v3122_v41 = vsel %vm3111_vm12, %v3105_v43, %v4069_v44 }
 0x30b   : > { %3259 = vmatmul.mubr.f32.vlgmr.msra.gmra.mxu0 %v3112_v29  ;;  %3309 = vmatmul.mubr.f32.gmra.mxu1 %v3122_v41  ;;  %v4079_v29 = vunpack.i.h.bf16 %v5838_v19  ;;  %v4078_v41 = vunpack.i.l.bf16 %v5838_v19 }
 0x30c   : > { %3743 = vmatprep.mubr.msk.f32.mxu0 %vm1722_vm1, %v5695_v42  ;;  %3753 = vmatprep.mubr.msk.f32.mxu1 %vm1722_vm1, %v5690_v36  ;;  %v3024_v42 = vsel %vm1722_vm1, %v5628_v26, %v4114_v56  ;;  %v3030_v36 = vsel %vm1756_vm3, %v3014_v60, %v4123_v55  ;;  %v4073_v26 = vunpack.i.l.bf16 %v5834_v21 }
 0x30d   : > { %v5888_v20 = vpop.permute.xlu1 %4126  ;;  %v5890_v62 = vpop.permute.xlu0 %4131  ;;  %v3040_v18 = vsel %vm1756_vm3, %v3024_v42, %v4124_v7  ;;  %v3046_v30 = vsel %vm1790_vm5, %v3030_v36, %v4063_v32  ;;  %v4088_v7 = vunpack.i.l.bf16 %v5842_v59  ;;  %v3025_v59 = vsel %vm1722_vm1, %v5616_v45, %v4079_v29 }
 0x30e   : > { %v3056_v2 = vsel %vm1790_vm5, %v3040_v18, %v4064_v51  ;;  %v3062_v22 = vsel %vm1824_vm7, %v3046_v30, %v4073_v26  ;;  %v3015_v51 = vsel %vm1722_vm1, %v5614_v37, %v4078_v41  ;;  %v3041_v30 = vsel %vm1756_vm3, %v3025_v59, %v4089_v17 }
 0x30f   : > { %v3072_v16 = vsel %vm1824_vm7, %v3056_v2, %v4074_v52  ;;  %v3079_v28 = vsel %vm3077_vm10, %v3062_v22, %v4083_v1  ;;  %v3031_v32 = vsel %vm1756_vm3, %v3015_v51, %v4088_v7  ;;  %v4129_v2 = vunpack.i.h.bf16 %v5888_v20 }
 0x310   : > { %v3089_v21 = vsel %vm3077_vm10, %v3072_v16, %v4084_v5  ;;  %v4128_v52 = vunpack.i.l.bf16 %v5888_v20  ;;  %v4134_v17 = vunpack.i.h.bf16 %v5890_v62  ;;  %v4133_v7 = vunpack.i.l.bf16 %v5890_v62 }
 0x311   : > { %v5892_v49 = vpop.permute.xlu1 %4136  ;;  %v5894_v47 = vpop.permute.xlu0 %4141 }
 0x312   : > { %v4139_v37 = vunpack.i.h.bf16 %v5892_v49  ;;  %v4138_v45 = vunpack.i.l.bf16 %v5892_v49 }
 0x315   : > { %v5902_v31 = vpop.permute.xlu0 %4151  ;;  %v5904_v11 = vpop.permute.xlu1 %4146 }
 0x316   : > { %v4149_v59 = vunpack.i.h.bf16 %v5904_v11 }
 0x319   : > { %v5912_v33 = vpop.permute.xlu1 %4156  ;;  %v4162_v63 = vpop.permute.xlu0 %4161 }
 0x31a   : > { %v4164_v34 = vunpack.i.h.bf16 %v4162_v63  ;;  %v4163_v40 = vunpack.i.l.bf16 %v4162_v63 }
 0x31c   : > { %v3096_v48 = vsel %vm3094_vm11, %v3079_v28, %v4163_v40  ;;  %v3106_v43 = vsel %vm3094_vm11, %v3089_v21, %v4164_v34 }
 0x31d   : > { %v4172_v44 = vpop.permute.xlu0 %4171  ;;  %v4167_v46 = vpop.permute.xlu1 %4166 }
 0x31e   : > { %v4174_v12 = vunpack.i.h.bf16 %v4172_v44  ;;  %v4173_v53 = vunpack.i.l.bf16 %v4172_v44  ;;  %v4169_v42 = vunpack.i.h.bf16 %v4167_v46  ;;  %v4168_v36 = vunpack.i.l.bf16 %v4167_v46 }
 0x320   : > { %v3113_v56 = vsel %vm3111_vm12, %v3096_v48, %v4173_v53  ;;  %v3123_v35 = vsel %vm3111_vm12, %v3106_v43, %v4174_v12  ;;  %v3047_v63 = vsel %vm1790_vm5, %v3031_v32, %v4168_v36  ;;  %v4154_v36 = vunpack.i.h.bf16 %v5902_v31 }
 0x321   : > { %3264 = vmatmul.mubr.f32.gmra.mxu0 %v3113_v56  ;;  %3314 = vmatmul.mubr.f32.gmra.mxu1 %v3123_v35  ;;  %v4177_v55 = vpop.permute.xlu1 %4176  ;;  %v4182_v60 = vpop.permute.xlu0 %4181  ;;  %v4148_v32 = vunpack.i.l.bf16 %v5904_v11  ;;  %v3027_v11 = vsel %vm1722_vm1, %v5657_v6, %v4149_v59 }
 0x322   : > { %3744 = vmatprep.mubr.msk.f32.mxu0 %vm1722_vm1, %v5667_v9  ;;  %3754 = vmatprep.mubr.msk.f32.mxu1 %vm1722_vm1, %v5663_v58  ;;  %v4179_v19 = vunpack.i.h.bf16 %v4177_v55  ;;  %v4178_v18 = vunpack.i.l.bf16 %v4177_v55  ;;  %v3057_v58 = vsel %vm1790_vm5, %v3041_v30, %v4169_v42  ;;  %v4184_v5 = vunpack.i.h.bf16 %v4182_v60 }
 0x323   : > { %v4183_v1 = vunpack.i.l.bf16 %v4182_v60 }
 0x324   : > { %v3063_v22 = vsel %vm1824_vm7, %v3047_v63, %v4178_v18  ;;  %v3073_v16 = vsel %vm1824_vm7, %v3057_v58, %v4179_v19  ;;  %v3026_v41 = vsel %vm1722_vm1, %v5671_v0, %v4184_v5  ;;  %v4153_v19 = vunpack.i.l.bf16 %v5902_v31 }
 0x325   : > { %v4187_v9 = vpop.permute.xlu1 %4186  ;;  %v4192_v26 = vpop.permute.xlu0 %4191  ;;  %v3016_v29 = vsel %vm1722_vm1, %v5675_v25, %v4183_v1 }
 0x326   : > { %v4189_v34 = vunpack.i.h.bf16 %v4187_v9  ;;  %v4188_v40 = vunpack.i.l.bf16 %v4187_v9  ;;  %v4194_v46 = vunpack.i.h.bf16 %v4192_v26  ;;  %v4193_v12 = vunpack.i.l.bf16 %v4192_v26 }
 0x328   : > { %v3080_v20 = vsel %vm3077_vm10, %v3063_v22, %v4188_v40  ;;  %v3090_v44 = vsel %vm3077_vm10, %v3073_v16, %v4189_v34  ;;  %v3032_v56 = vsel %vm1756_vm3, %v3016_v29, %v4193_v12  ;;  %v3042_v35 = vsel %vm1756_vm3, %v3026_v41, %v4194_v46  ;;  %v2553_v12 = vld [vmem:[#allocation2 + $0x62] sm:$0xff] }
 0x329   : > { %v3097_v53 = vsel %vm3094_vm11, %v3080_v20, %v4128_v52  ;;  %v3107_v28 = vsel %vm3094_vm11, %v3090_v44, %v4129_v2  ;;  %v3048_v0 = vsel %vm1790_vm5, %v3032_v56, %v4133_v7  ;;  %v3058_v60 = vsel %vm1790_vm5, %v3042_v35, %v4134_v17 }
 0x32a   : > { %v5950_v21 = vpop.permute.xlu1 %4196  ;;  %v5952_v48 = vpop.permute.xlu0 %4201  ;;  %v3114_v49 = vsel %vm3111_vm12, %v3097_v53, %v4138_v45  ;;  %v3124_v43 = vsel %vm3111_vm12, %v3107_v28, %v4139_v37  ;;  %v4159_v52 = vunpack.i.h.bf16 %v5912_v33  ;;  %v3017_v45 = vsel %vm1722_vm1, %v5655_v4, %v4148_v32 }
 0x32b   : > { %3269 = vmatmul.mubr.f32.gmra.mxu0 %v3114_v49  ;;  %3319 = vmatmul.mubr.f32.gmra.mxu1 %v3124_v43  ;;  %v4199_v6 = vunpack.i.h.bf16 %v5950_v21  ;;  %v4198_v53 = vunpack.i.l.bf16 %v5950_v21  ;;  %v4204_v17 = vunpack.i.h.bf16 %v5952_v48  ;;  %v4203_v7 = vunpack.i.l.bf16 %v5952_v48 }
 0x32c   : > { %3745 = vmatprep.mubr.msk.f32.mxu0 %vm1722_vm1, %v5738_v15  ;;  %3755 = vmatprep.mubr.msk.f32.mxu1 %vm1722_vm1, %v5733_v61  ;;  %v4144_v15 = vunpack.i.h.bf16 %v5894_v47  ;;  %v4143_v61 = vunpack.i.l.bf16 %v5894_v47  ;;  %v4158_v47 = vunpack.i.l.bf16 %v5912_v33  ;;  %v3043_v46 = vsel %vm1756_vm3, %v3027_v11, %v4159_v52 }
 0x32e   : > { %v5968_v55 = vpop.permute.xlu1 %4206  ;;  %v5970_v25 = vpop.permute.xlu0 %4211  ;;  %v3064_v62 = vsel %vm1824_vm7, %v3048_v0, %v4143_v61  ;;  %v3074_v51 = vsel %vm1824_vm7, %v3058_v60, %v4144_v15  ;;  %v3033_v44 = vsel %vm1756_vm3, %v3017_v45, %v4158_v47 }
 0x32f   : > { %v3081_v26 = vsel %vm3077_vm10, %v3064_v62, %v4153_v19  ;;  %v3091_v31 = vsel %vm3077_vm10, %v3074_v51, %v4154_v36  ;;  %v4209_v60 = vunpack.i.h.bf16 %v5968_v55  ;;  %v4208_v15 = vunpack.i.l.bf16 %v5968_v55  ;;  %v2564_v51 = vld [vmem:[#allocation2 + $0x132] sm:$0xff] }
 0x330   : > { %v4213_v52 = vunpack.i.l.bf16 %v5970_v25 }
 0x332   : > { %v4217_v42 = vpop.permute.xlu0 %4216 }
 0x333   : > { %v4222_v18 = vpop.permute.xlu1 %4221  ;;  %v4219_v30 = vunpack.i.h.bf16 %v4217_v42  ;;  %v4218_v2 = vunpack.i.l.bf16 %v4217_v42 }
 0x334   : > { %v4224_v58 = vunpack.i.h.bf16 %v4222_v18  ;;  %v4223_v63 = vunpack.i.l.bf16 %v4222_v18 }
 0x335   : > { %v3098_v22 = vsel %vm3094_vm11, %v3081_v26, %v4218_v2  ;;  %v3108_v33 = vsel %vm3094_vm11, %v3091_v31, %v4219_v30  ;;  %v4214_v2 = vunpack.i.h.bf16 %v5970_v25  ;;  %v2554_v26 = vld [vmem:[#allocation2 + $0x72] sm:$0xff] }
 0x336   : > { %v4227_v9 = vpop.permute.xlu0 %4226  ;;  %v3059_v28 = vsel %vm1790_vm5, %v3043_v46, %v4224_v58  ;;  %v3049_v49 = vsel %vm1790_vm5, %v3033_v44, %v4223_v63  ;;  %v2387_v46 = vmul.f32 %v5745_v24, %v5790_v10 }
 0x337   : > { %v4229_v34 = vunpack.i.h.bf16 %v4227_v9  ;;  %v4228_v40 = vunpack.i.l.bf16 %v4227_v9  ;;  %v4232_v37 = vpop.permute.xlu1 %4231 }
 0x338   : > { %v4234_v16 = vunpack.i.h.bf16 %v4232_v37  ;;  %v4233_v5 = vunpack.i.l.bf16 %v4232_v37 }
 0x339   : > { %v3115_v1 = vsel %vm3111_vm12, %v3098_v22, %v4228_v40  ;;  %v3125_v20 = vsel %vm3111_vm12, %v3108_v33, %v4229_v34 }
 0x33a   : > { %3274 = vmatmul.mubr.f32.gmra.mxu0 %v3115_v1  ;;  %3324 = vmatmul.mubr.f32.gmra.mxu1 %v3125_v20  ;;  %v4237_v4 = vpop.permute.xlu0 %4236  ;;  %v3065_v21 = vsel %vm1824_vm7, %v3049_v49, %v4233_v5  ;;  %v3075_v0 = vsel %vm1824_vm7, %v3059_v28, %v4234_v16  ;;  %v2410_v28 = vadd.f32 %v5755_v57, %v2387_v46  ;;  %v6210_v46 = vld [vmem:[#allocation12_spill] sm:$0xff] }
 0x33b   : > { %v4242_v43 = vpop.permute.xlu1 %4241  ;;  %3746 = vmatprep.mubr.msk.f32.mxu0 %vm1722_vm1, %v2553_v12  ;;  %3756 = vmatprep.mubr.msk.f32.mxu1 %vm1722_vm1, %v5748_v27  ;;  %v4239_v56 = vunpack.i.h.bf16 %v4237_v4  ;;  %v4238_v35 = vunpack.i.l.bf16 %v4237_v4  ;;  %v6040_v4 = vld [vmem:[%s6177_s5] ss:$0 sm:$0xff] }
 0x33c   : > { %v4244_v29 = vunpack.i.h.bf16 %v4242_v43  ;;  %v4243_v41 = vunpack.i.l.bf16 %v4242_v43 }
 0x33d   : > { %v3018_v59 = vsel %vm1722_vm1, %v5719_v38, %v4238_v35  ;;  %v3028_v32 = vsel %vm1722_vm1, %v5711_v3, %v4239_v56 }
 0x33e   : > { %v4252_v61 = vpop.permute.xlu0 %4251  ;;  %v3082_v42 = vsel %vm3077_vm10, %v3065_v21, %v4243_v41  ;;  %v3092_v27 = vsel %vm3077_vm10, %v3075_v0, %v4244_v29 }
 0x33f   : > { %v4247_v36 = vpop.permute.xlu1 %4246  ;;  %v4254_v19 = vunpack.i.h.bf16 %v4252_v61  ;;  %v4253_v18 = vunpack.i.l.bf16 %v4252_v61  ;;  %v3099_v62 = vsel %vm3094_vm11, %v3082_v42, %v4198_v53  ;;  %v3109_v48 = vsel %vm3094_vm11, %v3092_v27, %v4199_v6  ;;  %v6045_v6 = vld [vmem:[%s6178_s6] ss:$0 sm:$0xff] }
 0x340   : > { %v3116_v55 = vsel %vm3111_vm12, %v3099_v62, %v4208_v15  ;;  %v3126_v30 = vsel %vm3111_vm12, %v3109_v48, %v4209_v60  ;;  %v4249_v31 = vunpack.i.h.bf16 %v4247_v36  ;;  %v4248_v38 = vunpack.i.l.bf16 %v4247_v36 }
 0x341   : > { %v3034_v47 = vsel %vm1756_vm3, %v3018_v59, %v4253_v18  ;;  %v3044_v9 = vsel %vm1756_vm3, %v3028_v32, %v4254_v19  ;;  %3279 = vmatmul.mubr.f32.gmra.mxu0 %v3116_v55  ;;  %3329 = vmatmul.mubr.f32.gmra.mxu1 %v3126_v30  ;;  %v2388_v53 = vmul.f32 %v5785_v8, %v5745_v24 }
 0x342   : > { %v3050_v58 = vsel %vm1790_vm5, %v3034_v47, %v4203_v7  ;;  %v3060_v3 = vsel %vm1790_vm5, %v3044_v9, %v4204_v17  ;;  %3747 = vmatprep.mubr.msk.f32.mxu0 %vm1722_vm1, %v2554_v26  ;;  %v4257_v63 = vpop.permute.xlu0 %4256  ;;  %3757 = vmatprep.mubr.msk.f32.mxu1 %vm1722_vm1, %v2564_v51 }
 0x343   : > { %v4262_v34 = vpop.permute.xlu1 %4261  ;;  %v4259_v25 = vunpack.i.h.bf16 %v4257_v63  ;;  %v4258_v40 = vunpack.i.l.bf16 %v4257_v63  ;;  %v3066_v37 = vsel %vm1824_vm7, %v3050_v58, %v4213_v52  ;;  %v3076_v45 = vsel %vm1824_vm7, %v3060_v3, %v4214_v2 }
 0x344   : > { %v4264_v11 = vunpack.i.h.bf16 %v4262_v34  ;;  %v4263_v22 = vunpack.i.l.bf16 %v4262_v34  ;;  %v3083_v33 = vsel %vm3077_vm10, %v3066_v37, %v4248_v38  ;;  %v3093_v16 = vsel %vm3077_vm10, %v3076_v45, %v4249_v31 }
 0x345   : > { %v3100_v5 = vsel %vm3094_vm11, %v3083_v33, %v4258_v40  ;;  %v3110_v1 = vsel %vm3094_vm11, %v3093_v16, %v4259_v25  ;;  %v2411_v41 = vadd.f32 %v5755_v57, %v2388_v53 }
 0x346   : > { %v3117_v20 = vsel %vm3111_vm12, %v3100_v5, %v4263_v22  ;;  %v3127_v44 = vsel %vm3111_vm12, %v3110_v1, %v4264_v11 }
 0x347   : > { %3284 = vmatmul.mubr.f32.gmra.mxu0 %v3117_v20  ;;  %3334 = vmatmul.mubr.f32.gmra.mxu1 %v3127_v44  ;;  %v6209_v44 = vld [vmem:[#allocation8_spill] sm:$0xff] }
 0x380   : > { %v3290_v12 = vpop.f32.mrf.mxu1 }
 0x381   : > { %v3352_v49 = vmul.f32 %v6040_v4, %v3290_v12 }
 0x382   : > { %v3292_v43 = vpop.f32.mrf.mxu1 }
 0x383   : > { %v3375_v10 = vadd.f32 %v6045_v6, %v3352_v49 }
 0x384   : > { %v3295_v29 = vpop.f32.mrf.mxu1 }
 0x385   : > { %v3391_v56 = vadd.f32 %v3375_v10, %v2410_v28  ;;  %v3353_v35 = vmul.f32 %v6040_v4, %v3295_v29 }
 0x386   : > { %v3297_v17 = vpop.f32.mrf.mxu1 }
 0x387   : > { %v3407_v7 = vmax.f32 %v3391_v56, 0.0  ;;  %v3376_v21 = vadd.f32 %v6045_v6, %v3353_v35 }
 0x389   : > { %3423 = vst [vmem:[%s6056_s28 + $0x30] sm:$0xff] %v3407_v7  ;;  %v3392_v24 = vadd.f32 %v3376_v21, %v2411_v41  ;;  %v6211_v7 = vld [vmem:[#allocation7_spill] sm:$0xff] }
 0x38b   : > { %v3408_v8 = vmax.f32 %v3392_v24, 0.0  ;;  %v6212_v24 = vld [vmem:[#allocation11_spill] sm:$0xff] }
 0x38d   : > { %3424 = vst [vmem:[%s6056_s28 + $0x38] sm:$0xff] %v3408_v8 }
 0x3c1   : > { %v3300_v0 = vpop.f32.mrf.mxu1 }
 0x3c2   : > { %v3354_v60 = vmul.f32 %v6040_v4, %v3300_v0 }
 0x3c3   : > { %v3302_v57 = vpop.f32.mrf.mxu1 }
 0x3c4   : > { %v3377_v15 = vadd.f32 %v6045_v6, %v3354_v60 }
 0x3c5   : > { %v3305_v61 = vpop.f32.mrf.mxu1 }
 0x3c6   : > { %v3393_v42 = vadd.f32 %v3377_v15, %v5802_v14  ;;  %v3355_v27 = vmul.f32 %v6040_v4, %v3305_v61 }
 0x3c7   : > { %v3307_v36 = vpop.f32.mrf.mxu1 }
 0x3c8   : > { %v3409_v19 = vmax.f32 %v3393_v42, 0.0  ;;  %v3378_v18 = vadd.f32 %v6045_v6, %v3355_v27 }
 0x3ca   : > { %3425 = vst [vmem:[%s6056_s28 + $0x40] sm:$0xff] %v3409_v19  ;;  %v3394_v62 = vadd.f32 %v3378_v18, %v5796_v13 }
 0x3cb   : > { %v3260_v48 = vpop.f32.mrf.mxu0  ;;  %v3310_v51 = vpop.f32.mrf.mxu1 }
 0x3cc   : > { %v3410_v59 = vmax.f32 %v3394_v62, 0.0  ;;  %v3346_v32 = vmul.f32 %v6040_v4, %v3260_v48  ;;  %v3356_v55 = vmul.f32 %v6040_v4, %v3310_v51  ;;  %v6213_v62 = vld [vmem:[#allocation10_spill] sm:$0xff] }
 0x3cd   : > { %v3262_v30 = vpop.f32.mrf.mxu0  ;;  %v3312_v14 = vpop.f32.mrf.mxu1  ;;  %v6214_v51 = vld [vmem:[#allocation14_spill] sm:$0xff] }
 0x3ce   : > { %3426 = vst [vmem:[%s6056_s28 + $0x48] sm:$0xff] %v3410_v59  ;;  %v3369_v2 = vadd.f32 %v6045_v6, %v3346_v32  ;;  %v3379_v52 = vadd.f32 %v6045_v6, %v3356_v55 }
 0x3d0   : > { %v3385_v47 = vadd.f32 %v3369_v2, %v5765_v50  ;;  %v3395_v9 = vadd.f32 %v3379_v52, %v5810_v39 }
 0x3d2   : > { %v3401_v13 = vmax.f32 %v3385_v47, 0.0  ;;  %v3411_v26 = vmax.f32 %v3395_v9, 0.0 }
 0x3d4   : > { %3417 = vst [vmem:[%s6056_s28] sm:$0xff] %v3401_v13  ;;  %3427 = vst [vmem:[%s6056_s28 + $0x50] sm:$0xff] %v3411_v26 }
 0x3e1   : > { %v3265_v31 = vpop.f32.mrf.mxu0  ;;  %v3315_v38 = vpop.f32.mrf.mxu1 }
 0x3e2   : > { %v3347_v58 = vmul.f32 %v6040_v4, %v3265_v31  ;;  %v3357_v3 = vmul.f32 %v6040_v4, %v3315_v38  ;;  %v6215_v31 = vld [vmem:[#allocation9_spill] sm:$0xff] }
 0x3e3   : > { %v3267_v63 = vpop.f32.mrf.mxu0  ;;  %v3317_v34 = vpop.f32.mrf.mxu1 }
 0x3e4   : > { %v3370_v25 = vadd.f32 %v6045_v6, %v3347_v58  ;;  %v3380_v50 = vadd.f32 %v6045_v6, %v3357_v3  ;;  %v6216_v58 = vld [vmem:[#allocation13_spill] sm:$0xff] }
 0x3e6   : > { %v3386_v39 = vadd.f32 %v3370_v25, %v5758_v54  ;;  %v3396_v40 = vadd.f32 %v3380_v50, %v5806_v23 }
 0x3e8   : > { %v3402_v37 = vmax.f32 %v3386_v39, 0.0  ;;  %v3412_v45 = vmax.f32 %v3396_v40, 0.0 }
 0x3ea   : > { %3418 = vst [vmem:[%s6056_s28 + $0x8] sm:$0xff] %v3402_v37  ;;  %3428 = vst [vmem:[%s6056_s28 + $0x58] sm:$0xff] %v3412_v45 }
 0x3eb   : > { %v3270_v11 = vpop.f32.mrf.mxu0  ;;  %v3320_v22 = vpop.f32.mrf.mxu1 }
 0x3ec   : > { %v3348_v33 = vmul.f32 %v6040_v4, %v3270_v11  ;;  %v3358_v16 = vmul.f32 %v6040_v4, %v3320_v22 }
 0x3ed   : > { %v3272_v5 = vpop.f32.mrf.mxu0  ;;  %v3322_v1 = vpop.f32.mrf.mxu1 }
 0x3ee   : > { %v3371_v20 = vadd.f32 %v6045_v6, %v3348_v33  ;;  %v3381_v54 = vadd.f32 %v6045_v6, %v3358_v16 }
 0x3f0   : > { %v3387_v23 = vadd.f32 %v3371_v20, %v6209_v44  ;;  %v3397_v12 = vadd.f32 %v3381_v54, %v6210_v46 }
 0x3f2   : > { %v3403_v53 = vmax.f32 %v3387_v23, 0.0  ;;  %v3413_v28 = vmax.f32 %v3397_v12, 0.0 }
 0x3f4   : > { %3419 = vst [vmem:[%s6056_s28 + $0x10] sm:$0xff] %v3403_v53  ;;  %3429 = vst [vmem:[%s6056_s28 + $0x60] sm:$0xff] %v3413_v28 }
 0x3fa   : > { %v3275_v49 = vpop.f32.mrf.mxu0  ;;  %v3325_v43 = vpop.f32.mrf.mxu1 }
 0x3fb   : > { %v3349_v10 = vmul.f32 %v6040_v4, %v3275_v49  ;;  %v3359_v29 = vmul.f32 %v6040_v4, %v3325_v43 }
 0x3fc   : > { %v3277_v41 = vpop.f32.mrf.mxu0  ;;  %v3327_v56 = vpop.f32.mrf.mxu1 }
 0x3fd   : > { %v3372_v35 = vadd.f32 %v6045_v6, %v3349_v10  ;;  %v3382_v17 = vadd.f32 %v6045_v6, %v3359_v29 }
 0x3ff   : > { %v3388_v21 = vadd.f32 %v3372_v35, %v6211_v7  ;;  %v3398_v8 = vadd.f32 %v3382_v17, %v6212_v24 }
 0x401   : > { %v3404_v0 = vmax.f32 %v3388_v21, 0.0  ;;  %v3414_v60 = vmax.f32 %v3398_v8, 0.0  ;;  %v3280_v57 = vpop.f32.mrf.mxu0  ;;  %v3330_v15 = vpop.f32.mrf.mxu1 }
 0x402   : > { %v3350_v61 = vmul.f32 %v6040_v4, %v3280_v57  ;;  %v3360_v42 = vmul.f32 %v6040_v4, %v3330_v15 }
 0x403   : > { %3420 = vst [vmem:[%s6056_s28 + $0x18] sm:$0xff] %v3404_v0  ;;  %3430 = vst [vmem:[%s6056_s28 + $0x68] sm:$0xff] %v3414_v60  ;;  %v3282_v27 = vpop.f32.mrf.mxu0  ;;  %v3332_v36 = vpop.f32.mrf.mxu1 }
 0x404   : > { %v3373_v19 = vadd.f32 %v6045_v6, %v3350_v61  ;;  %v3383_v18 = vadd.f32 %v6045_v6, %v3360_v42 }
 0x406   : > { %v3389_v48 = vadd.f32 %v3373_v19, %v6213_v62  ;;  %v3399_v59 = vadd.f32 %v3383_v18, %v6214_v51 }
 0x407   : > { %v3285_v32 = vpop.f32.mrf.mxu0  ;;  %v3335_v55 = vpop.f32.mrf.mxu1 }
 0x408   : > { %v3405_v30 = vmax.f32 %v3389_v48, 0.0  ;;  %v3415_v14 = vmax.f32 %v3399_v59, 0.0  ;;  %v3351_v2 = vmul.f32 %v6040_v4, %v3285_v32  ;;  %v3361_v52 = vmul.f32 %v6040_v4, %v3335_v55 }
 0x409   : > { %v3287_v47 = vpop.f32.mrf.mxu0  ;;  %v3337_v9 = vpop.f32.mrf.mxu1 }
 0x40a   : > { %3421 = vst [vmem:[%s6056_s28 + $0x20] sm:$0xff] %v3405_v30  ;;  %3431 = vst [vmem:[%s6056_s28 + $0x70] sm:$0xff] %v3415_v14  ;;  %v3374_v13 = vadd.f32 %v6045_v6, %v3351_v2  ;;  %v3384_v26 = vadd.f32 %v6045_v6, %v3361_v52 }
 0x40c   : > { %v3390_v38 = vadd.f32 %v3374_v13, %v6215_v31  ;;  %v3400_v3 = vadd.f32 %v3384_v26, %v6216_v58 }
 0x40e   : > { %v3406_v4 = vmax.f32 %v3390_v38, 0.0  ;;  %v3416_v63 = vmax.f32 %v3400_v3, 0.0 }
 0x410   : > { %3422 = vst [vmem:[%s6056_s28 + $0x28] sm:$0xff] %v3406_v4  ;;  %3432 = vst [vmem:[%s6056_s28 + $0x78] sm:$0xff] %v3416_v63 }
 0x411   : > { %4278 = shalt.err (!%p4275_p8)
}
 0x412   : > { %s4279_s28 = scalar_lea.hbm %s6119_s30, 2048  ;;  %s4283_s12 = scalar_lea.hbm %s6182_s10, 4096 }
 0x413   : > { %p4280_p11 = scmp.ne.s32.totalorder %s6119_s30, %s4279_s28  ;;  %p4284_p0 = scmp.lt.s32.totalorder %s6119_s30, %s6182_s10 }
 0x414   : > { %p4285_p1 = scmp.lt.s32.totalorder %s4283_s12, %s4279_s28 }
 0x415   : > { %p4281_p12 = pnand %p4280_p11, %p4451_p5 }
 0x416   : > { %p4286_p2 = por %p4285_p1, %p4284_p0 }
 0x417   : > { %p4282_p13 = pneg %p4281_p12 }
 0x419   : > { %p4287_p3 = pnand %p4286_p2, %p4282_p13 }
 0x41b   : > { %4290 = shalt.err (!%p4287_p3)
}
 0x41c   : > { %s4356_s11 = smov 128   ;;  %s6217_s24 = scalar_lea.sflag [#allocation5], %s4769_s20 }
 0x41d   : > { %3917 = dma.vmem_to_hbm [thread:$0]  (%p4451_p5), %s6121_s19, 2048, %s6119_s30, %s6217_s24, %s4356_s11, %s4356_s11, %s6197_s0  }
 0x41e PF: > { %s3465_s29 = sand.u32 1, %s4321_s13   ;;  %p3920_p4 = pnand %p3569_p10, %p4462_p9 }
 0x41f   : > { %s3466_s1 = scalar_lea.sflag [#allocation5], %s3465_s29 }
 0x420   : > { %p3921_p6 = pneg %p3920_p4 }
 0x422   : > { %4316 = dma.done.wait (%p3921_p6), %s3466_s1, 2048  }
 0x423   : > { %4318 = vsyncadd (%p3921_p6), %s3466_s1, 4294965248  ;;  %s23_s18 = sadd.s32 1, %s4341_s18   ;;  %s6218_s13 = smov %s4325_s14 }
 0x424   : > { %p20_p7 = scmp.ge.s32.totalorder %s23_s18, 4   ;;  %s6219_s14 = smov %s4329_s15 }
 0x425   : > { %s6220_s15 = smov %s4460_s25  ;;  %s6221_s16 = smov %s4337_s17 }
 0x426   : > { %s6222_s17 = smov %s6224_s21  ;;  %22 = sbr.rel (!%p20_p7) target bundleno = 7 (0x7), region = 154 }
 0x42b   :  { %3471 = vsyncpa [#allocation5], 1 }
 0x42c   :  { %3473 = vsyncpa [#allocation5 + $0x1], 1 }

</bundles_post_ra>
